<compile_context>
chip_gen: v5e
topology: v5e:2x2
jax: 0.10.0
libtpu: 0.0.40
codegen_flags: <defaults>
</compile_context>

<pallas_src>
import numpy as np
import jax
import jax.numpy as jnp
from jax.experimental import pallas as pl
from jax.experimental.pallas import tpu as pltpu

# ---- hyperparameters (match Transformer.__init__ defaults) ----
INPUT_DIM = 6
OUTPUT_DIM = 1
D_MODEL = 8
NHEAD = 4
NUM_LAYERS = 2
DIM_FF = 2048              # nn.TransformerEncoderLayer default dim_feedforward
HEAD_DIM = D_MODEL // NHEAD
LN_EPS = 1e-5
MAX_TILE_N = 128           # v7x-safe (64 MiB VMEM); v5e/v6e could raise to 256


def _layer_norm(x, w, b):
    # torch.nn.LayerNorm semantics: biased variance over last dim, eps=1e-5
    mu = jnp.mean(x, axis=-1, keepdims=True)
    xc = x - mu
    var = jnp.mean(xc * xc, axis=-1, keepdims=True)
    return xc * jax.lax.rsqrt(var + LN_EPS) * w + b


def transformer_kernel(h_ref, pe_ref,
                       wq_ref, bq_ref, wkv_ref, bkv_ref, wo_ref, bo_ref,
                       ln1_w_ref, ln1_b_ref, ln2_w_ref, ln2_b_ref,
                       ff1_w_ref, ff1_b_ref, ff2_w_ref, ff2_b_ref,
                       dec_w_ref, dec_b_ref, o_ref):
    # h_ref: (B, T, D) tile of already feature-projected inputs (B = tile_n).
    # torch works in (T, N, E) layout, but attention / LN / FFN are
    # layout-equivalent batch-first, so we compute batch-first here.
    B, T, D = h_ref.shape
    BT = B * T
    H, HD = NHEAD, HEAD_DIM
    scale = np.float32(1.0 / np.sqrt(HD))

    # positional encoding (broadcast over the batch tile); activation kept as a
    # flat (rows, D) token matrix for the layer stack.
    hf = (h_ref[...] + pe_ref[...]).reshape(BT, D)

    for l in range(NUM_LAYERS):                       # static unroll (2 layers)
        last = (l == NUM_LAYERS - 1)

        # ---- fused K/V projection over every token (K/V need the full seq) ----
        kv = (jnp.dot(hf, wkv_ref[l], preferred_element_type=jnp.float32)
              + bkv_ref[l])                           # (BT, 2D)
        k3 = kv[:, :D].reshape(B, T, D)
        v3 = kv[:, D:].reshape(B, T, D)

        if last:
            # Only the last time step feeds the decoder: the final layer's
            # query / residual / FFN / LayerNorms run on the T-1 rows only.
            hq = hf.reshape(B, T, D)[:, T - 1, :]     # (B, D)
            Tq = 1
        else:
            hq = hf                                   # (BT, D)
            Tq = T
        q = (jnp.dot(hq, wq_ref[l], preferred_element_type=jnp.float32)
             + bq_ref[l])
        q3 = q.reshape(B, Tq, D)

        # ---- attention core ----
        # Heads share the fused projections above; the tiny score/AV einsums
        # run per head on static lane slices (no per-head weight matmuls).
        ctx_heads = []
        for hh in range(H):                           # static unroll (4 heads)
            sl = slice(hh * HD, (hh + 1) * HD)
            qh, kh, vh = q3[:, :, sl], k3[:, :, sl], v3[:, :, sl]
            s = jnp.einsum('btd,bsd->bts', qh, kh,
                           preferred_element_type=jnp.float32) * scale
            s = s - jnp.max(s, axis=-1, keepdims=True)
            p = jnp.exp(s)
            p = p * pl.reciprocal(jnp.sum(p, axis=-1, keepdims=True),
                                  approx=True)
            ctx_heads.append(jnp.einsum('bts,bsd->btd', p, vh,
                                        preferred_element_type=jnp.float32))
        # head concat is free at D=8 (single vreg tile) -> ONE out-projection
        ctx = jnp.concatenate(ctx_heads, axis=-1).reshape(B * Tq, D)
        attn = (jnp.dot(ctx, wo_ref[l], preferred_element_type=jnp.float32)
                + bo_ref[l])

        # dropout layers are identity (eval-mode forward)
        x = _layer_norm(hq + attn, ln1_w_ref[l], ln1_b_ref[l])

        # ---- feed-forward: bf16 matmul operands, f32 accumulate/bias/LN;
        #      the ReLU output goes straight to bf16 (halves the wide temp) ----
        ff = (jnp.dot(x.astype(jnp.bfloat16), ff1_w_ref[l],
                      preferred_element_type=jnp.float32) + ff1_b_ref[l])
        ff = jnp.maximum(ff, 0.0).astype(jnp.bfloat16)
        ff = (jnp.dot(ff, ff2_w_ref[l],
                      preferred_element_type=jnp.float32) + ff2_b_ref[l])
        hf = _layer_norm(x + ff, ln2_w_ref[l], ln2_b_ref[l])
        # after the final layer hf is (B, D): only last-time-step rows survive

    # decoder head (torch: decoder_layer(output.transpose(1,0)[:, -1, :]))
    # OUTPUT_DIM=1 -> a masked 1-lane store per tile; a lane-dense (1, B)
    # layout would need an in-kernel (B,1)->(1,B) transpose costing more than
    # the masked store saves at this size.
    o_ref[...] = (jnp.dot(hf, dec_w_ref[...],
                          preferred_element_type=jnp.float32) + dec_b_ref[...])


def make_positional_encoding(d_model, max_len=1000):
    position = np.arange(max_len, dtype=np.float32)[:, None]
    div_term = np.exp(np.arange(0, d_model, 2).astype(np.float32)
                      * (-np.log(10000.0) / d_model))
    pe = np.zeros((max_len, d_model), dtype=np.float32)
    pe[:, 0::2] = np.sin(position * div_term)
    pe[:, 1::2] = np.cos(position * div_term)
    return jnp.asarray(pe)


def init_params(key):
    ks = jax.random.split(key, 12)

    def u(k, shape, scale=0.1):
        return jax.random.uniform(k, shape, jnp.float32, -1.0, 1.0) * scale

    L, D = NUM_LAYERS, D_MODEL

    # attention weights in the standard (x @ W) layout: in_proj_weight.T with
    # column blocks [Q | K | V]; split once here so the kernel never lane-
    # slices weights (Q separate because the last layer only projects T-1 rows)
    in_w = u(ks[2], (L, D, 3 * D))
    in_b = u(ks[3], (L, 1, 3 * D))

    return dict(
        pe=make_positional_encoding(D),
        feat_w=u(ks[0], (INPUT_DIM, D)),
        feat_b=u(ks[1], (1, D)),
        wq=in_w[:, :, :D], bq=in_b[:, :, :D],
        wkv=in_w[:, :, D:], bkv=in_b[:, :, D:],
        wo=u(ks[4], (L, D, D)), bo=u(ks[5], (L, 1, D)),
        ln1_w=jnp.ones((L, 1, D), jnp.float32),
        ln1_b=jnp.zeros((L, 1, D), jnp.float32),
        ln2_w=jnp.ones((L, 1, D), jnp.float32),
        ln2_b=jnp.zeros((L, 1, D), jnp.float32),
        # FFN weights stored bf16: halves VMEM/vld traffic and uses the native
        # bf16 MXU rate on v6e/v7x; accumulation stays f32 inside the kernel.
        ff1_w=u(ks[6], (L, D, DIM_FF)).astype(jnp.bfloat16),
        ff1_b=u(ks[7], (L, 1, DIM_FF)),
        ff2_w=u(ks[8], (L, DIM_FF, D), 0.02).astype(jnp.bfloat16),
        ff2_b=u(ks[9], (L, 1, D)),
        dec_w=u(ks[10], (D, OUTPUT_DIM)),
        dec_b=u(ks[11], (1, OUTPUT_DIM)),
    )


def transformer_forward(src, params):
    # src: (N, INPUT_DIM * T) -- same flattened input the torch forward expects.
    N = src.shape[0]
    T = src.shape[1] // INPUT_DIM
    D = D_MODEL

    # torch: reshape(N, F, T).permute(0, 2, 1) + feature Linear, folded into ONE
    # fused einsum (no standalone transpose pass over the input in HBM).
    # TODO(synk): folding this projection into the Pallas kernel itself needs an
    # in-kernel (F, T) -> (T, F) transpose of the raw src tile; kept in the
    # wrapper to stay on proven Mosaic lowerings (cost: one small (N,T,D) trip).
    x = src.reshape(N, INPUT_DIM, T).astype(jnp.float32)
    h = jnp.einsum('nft,fd->ntd', x, params['feat_w'],
                   preferred_element_type=jnp.float32) + params['feat_b']

    # batch tiling: single tile for tiny batches; otherwise >= 2 grid steps
    # (so dimension_semantics=('parallel',) can shard across v7x's two cores)
    # with tile_n a multiple of 8, capped at MAX_TILE_N. Padded rows are
    # computed then dropped (samples are independent).
    if N <= 16:
        tile_n = N
    else:
        tile_n = int(min(MAX_TILE_N, 8 * pl.cdiv(pl.cdiv(N, 2), 8)))
    n_pad = int(pl.cdiv(N, tile_n)) * tile_n
    if n_pad != N:
        h = jnp.pad(h, ((0, n_pad - N), (0, 0), (0, 0)))
    grid = (n_pad // tile_n,)

    weights = (params['pe'][:T],
               params['wq'], params['bq'], params['wkv'], params['bkv'],
               params['wo'], params['bo'],
               params['ln1_w'], params['ln1_b'], params['ln2_w'], params['ln2_b'],
               params['ff1_w'], params['ff1_b'], params['ff2_w'], params['ff2_b'],
               params['dec_w'], params['dec_b'])

    def _resident(shape):
        # constant index_map -> DMA'd once, stays VMEM-resident across the grid
        nd = len(shape)
        return pl.BlockSpec(shape, lambda i, _nd=nd: (0,) * _nd)

    in_specs = ([pl.BlockSpec((tile_n, T, D), lambda i: (i, 0, 0))]
                + [_resident(w.shape) for w in weights])
    out_specs = pl.BlockSpec((tile_n, OUTPUT_DIM), lambda i: (i, 0))

    out = pl.pallas_call(
        transformer_kernel,
        out_shape=jax.ShapeDtypeStruct((n_pad, OUTPUT_DIM), jnp.float32),
        grid_spec=pltpu.PrefetchScalarGridSpec(
            num_scalar_prefetch=0,
            grid=grid,
            in_specs=in_specs,
            out_specs=out_specs),
        compiler_params=pltpu.CompilerParams(
            dimension_semantics=("parallel",),      # megacore-shards N on v7x
            vmem_limit_bytes=48 << 20),             # peak use ~14 MiB @ tile 128
    )(h, *weights)

    return jnp.squeeze(out[:N])       # matches torch `.squeeze()` -> shape (N,)


if __name__ == "__main__":
    key = jax.random.PRNGKey(0)
    pkey, xkey = jax.random.split(key)
    params = init_params(pkey)

    N, T = 2, 8
    src = jax.random.normal(xkey, (N, INPUT_DIM * T), jnp.float32)

    out = jax.jit(transformer_forward)(src, params)
    out = jax.block_until_ready(out)
    assert out.shape == (N,)
    print("KERNEL_OK")
</pallas_src>

<mosaic_0001>
module attributes {stable_mosaic.version = 11 : i64} {
  func.func @transformer_kernel(%arg0: i32, %arg1: memref<2x8x8xf32, #tpu.memory_space<vmem>>, %arg2: memref<8x8xf32, #tpu.memory_space<vmem>>, %arg3: memref<2x8x8xf32, #tpu.memory_space<vmem>>, %arg4: memref<2x1x8xf32, #tpu.memory_space<vmem>>, %arg5: memref<2x8x16xf32, #tpu.memory_space<vmem>>, %arg6: memref<2x1x16xf32, #tpu.memory_space<vmem>>, %arg7: memref<2x8x8xf32, #tpu.memory_space<vmem>>, %arg8: memref<2x1x8xf32, #tpu.memory_space<vmem>>, %arg9: memref<2x1x8xf32, #tpu.memory_space<vmem>>, %arg10: memref<2x1x8xf32, #tpu.memory_space<vmem>>, %arg11: memref<2x1x8xf32, #tpu.memory_space<vmem>>, %arg12: memref<2x1x8xf32, #tpu.memory_space<vmem>>, %arg13: memref<2x8x2048xbf16, #tpu.memory_space<vmem>>, %arg14: memref<2x1x2048xf32, #tpu.memory_space<vmem>>, %arg15: memref<2x2048x8xbf16, #tpu.memory_space<vmem>>, %arg16: memref<2x1x8xf32, #tpu.memory_space<vmem>>, %arg17: memref<8x1xf32, #tpu.memory_space<vmem>>, %arg18: memref<1x1xf32, #tpu.memory_space<vmem>>, %arg19: memref<2x1xf32, #tpu.memory_space<vmem>>) attributes {dimension_semantics = [#tpu.dimension_semantics<parallel>], iteration_bounds = array<i64: 1>, scalar_prefetch = 0 : i64, scratch_operands = 0 : i64, tpu.core_type = #tpu.core_type<tc>, window_params = [{transform_indices = @transform_0, window_bounds = array<i64: 2, 8, 8>}, {pipeline_mode = #tpu.pipeline_mode<synchronous>, transform_indices = @transform_1, window_bounds = array<i64: 8, 8>}, {pipeline_mode = #tpu.pipeline_mode<synchronous>, transform_indices = @transform_2, window_bounds = array<i64: 2, 8, 8>}, {pipeline_mode = #tpu.pipeline_mode<synchronous>, transform_indices = @transform_3, window_bounds = array<i64: 2, 1, 8>}, {pipeline_mode = #tpu.pipeline_mode<synchronous>, transform_indices = @transform_4, window_bounds = array<i64: 2, 8, 16>}, {pipeline_mode = #tpu.pipeline_mode<synchronous>, transform_indices = @transform_5, window_bounds = array<i64: 2, 1, 16>}, {pipeline_mode = #tpu.pipeline_mode<synchronous>, transform_indices = @transform_6, window_bounds = array<i64: 2, 8, 8>}, {pipeline_mode = #tpu.pipeline_mode<synchronous>, transform_indices = @transform_7, window_bounds = array<i64: 2, 1, 8>}, {pipeline_mode = #tpu.pipeline_mode<synchronous>, transform_indices = @transform_8, window_bounds = array<i64: 2, 1, 8>}, {pipeline_mode = #tpu.pipeline_mode<synchronous>, transform_indices = @transform_9, window_bounds = array<i64: 2, 1, 8>}, {pipeline_mode = #tpu.pipeline_mode<synchronous>, transform_indices = @transform_10, window_bounds = array<i64: 2, 1, 8>}, {pipeline_mode = #tpu.pipeline_mode<synchronous>, transform_indices = @transform_11, window_bounds = array<i64: 2, 1, 8>}, {pipeline_mode = #tpu.pipeline_mode<synchronous>, transform_indices = @transform_12, window_bounds = array<i64: 2, 8, 2048>}, {pipeline_mode = #tpu.pipeline_mode<synchronous>, transform_indices = @transform_13, window_bounds = array<i64: 2, 1, 2048>}, {pipeline_mode = #tpu.pipeline_mode<synchronous>, transform_indices = @transform_14, window_bounds = array<i64: 2, 2048, 8>}, {pipeline_mode = #tpu.pipeline_mode<synchronous>, transform_indices = @transform_15, window_bounds = array<i64: 2, 1, 8>}, {pipeline_mode = #tpu.pipeline_mode<synchronous>, transform_indices = @transform_16, window_bounds = array<i64: 8, 1>}, {pipeline_mode = #tpu.pipeline_mode<synchronous>, transform_indices = @transform_17, window_bounds = array<i64: 1, 1>}, {transform_indices = @transform_18, window_bounds = array<i64: 2, 1>}]} {
    %c0 = arith.constant 0 : index
    %c0_0 = arith.constant 0 : index
    %c0_1 = arith.constant 0 : index
    %0 = vector.load %arg1[%c0, %c0_0, %c0_1] : memref<2x8x8xf32, #tpu.memory_space<vmem>>, vector<2x8x8xf32>
    %c0_2 = arith.constant 0 : index
    %c0_3 = arith.constant 0 : index
    %1 = vector.load %arg2[%c0_2, %c0_3] : memref<8x8xf32, #tpu.memory_space<vmem>>, vector<8x8xf32>
    %2 = vector.shape_cast %1 : vector<8x8xf32> to vector<1x8x8xf32>
    %3 = vector.broadcast %2 : vector<1x8x8xf32> to vector<2x8x8xf32>
    %4 = arith.addf %0, %3 : vector<2x8x8xf32>
    %5 = vector.shape_cast %4 : vector<2x8x8xf32> to vector<16x8xf32>
    %c0_4 = arith.constant 0 : index
    %c0_5 = arith.constant 0 : index
    %c0_6 = arith.constant 0 : index
    %6 = vector.load %arg5[%c0_4, %c0_5, %c0_6] : memref<2x8x16xf32, #tpu.memory_space<vmem>>, vector<1x8x16xf32>
    %7 = vector.shape_cast %6 : vector<1x8x16xf32> to vector<8x16xf32>
    %cst = arith.constant dense<0.000000e+00> : vector<16x16xf32>
    %8 = tpu.matmul %5, %7, %cst {dimension_numbers = #tpu.dot_dimension_numbers<[1], [0], [0], [1], [0, 0, 1, 1], [], []>} : vector<16x8xf32>, vector<8x16xf32>, vector<16x16xf32> -> vector<16x16xf32>
    %c0_7 = arith.constant 0 : index
    %c0_8 = arith.constant 0 : index
    %c0_9 = arith.constant 0 : index
    %9 = vector.load %arg6[%c0_7, %c0_8, %c0_9] : memref<2x1x16xf32, #tpu.memory_space<vmem>>, vector<1x1x16xf32>
    %10 = vector.shape_cast %9 : vector<1x1x16xf32> to vector<1x16xf32>
    %11 = vector.broadcast %10 : vector<1x16xf32> to vector<16x16xf32>
    %12 = arith.addf %8, %11 : vector<16x16xf32>
    %13 = vector.extract_strided_slice %12 {offsets = [0, 0], sizes = [16, 8], strides = [1, 1]} : vector<16x16xf32> to vector<16x8xf32>
    %14 = vector.shape_cast %13 : vector<16x8xf32> to vector<2x8x8xf32>
    %15 = vector.extract_strided_slice %12 {offsets = [0, 8], sizes = [16, 8], strides = [1, 1]} : vector<16x16xf32> to vector<16x8xf32>
    %16 = vector.shape_cast %15 : vector<16x8xf32> to vector<2x8x8xf32>
    %c0_10 = arith.constant 0 : index
    %c0_11 = arith.constant 0 : index
    %c0_12 = arith.constant 0 : index
    %17 = vector.load %arg3[%c0_10, %c0_11, %c0_12] : memref<2x8x8xf32, #tpu.memory_space<vmem>>, vector<1x8x8xf32>
    %18 = vector.shape_cast %17 : vector<1x8x8xf32> to vector<8x8xf32>
    %cst_13 = arith.constant dense<0.000000e+00> : vector<16x8xf32>
    %19 = tpu.matmul %5, %18, %cst_13 {dimension_numbers = #tpu.dot_dimension_numbers<[1], [0], [0], [1], [0, 0, 1, 1], [], []>} : vector<16x8xf32>, vector<8x8xf32>, vector<16x8xf32> -> vector<16x8xf32>
    %c0_14 = arith.constant 0 : index
    %c0_15 = arith.constant 0 : index
    %c0_16 = arith.constant 0 : index
    %20 = vector.load %arg4[%c0_14, %c0_15, %c0_16] : memref<2x1x8xf32, #tpu.memory_space<vmem>>, vector<1x1x8xf32>
    %21 = vector.shape_cast %20 : vector<1x1x8xf32> to vector<1x8xf32>
    %22 = vector.broadcast %21 : vector<1x8xf32> to vector<16x8xf32>
    %23 = arith.addf %19, %22 : vector<16x8xf32>
    %24 = vector.shape_cast %23 : vector<16x8xf32> to vector<2x8x8xf32>
    %25 = vector.extract_strided_slice %24 {offsets = [0, 0, 0], sizes = [2, 8, 2], strides = [1, 1, 1]} : vector<2x8x8xf32> to vector<2x8x2xf32>
    %26 = vector.extract_strided_slice %14 {offsets = [0, 0, 0], sizes = [2, 8, 2], strides = [1, 1, 1]} : vector<2x8x8xf32> to vector<2x8x2xf32>
    %27 = vector.extract_strided_slice %16 {offsets = [0, 0, 0], sizes = [2, 8, 2], strides = [1, 1, 1]} : vector<2x8x8xf32> to vector<2x8x2xf32>
    "tpu.trace_start"() <{level = 10 : i32, message = "btd,bsd->bts"}> : () -> ()
    %cst_17 = arith.constant dense<0.000000e+00> : vector<2x8x8xf32>
    %28 = tpu.matmul %25, %26, %cst_17 {dimension_numbers = #tpu.dot_dimension_numbers<[2], [2], [1], [1], [0, 0, 0, 1, 1, 1], [0], [0]>} : vector<2x8x2xf32>, vector<2x8x2xf32>, vector<2x8x8xf32> -> vector<2x8x8xf32>
    "tpu.trace_stop"() : () -> ()
    %cst_18 = arith.constant 0.707106769 : f32
    %29 = vector.broadcast %cst_18 : f32 to vector<2x8x8xf32>
    %30 = arith.mulf %28, %29 : vector<2x8x8xf32>
    %cst_19 = arith.constant dense<0xFF800000> : vector<2x8xf32>
    %31 = vector.multi_reduction <maximumf>, %30, %cst_19 [2] : vector<2x8x8xf32> to vector<2x8xf32>
    %32 = vector.shape_cast %31 : vector<2x8xf32> to vector<2x8x1xf32>
    %33 = vector.broadcast %32 : vector<2x8x1xf32> to vector<2x8x8xf32>
    %34 = arith.subf %30, %33 : vector<2x8x8xf32>
    %35 = math.exp %34 : vector<2x8x8xf32>
    %cst_20 = arith.constant dense<0.000000e+00> : vector<2x8xf32>
    %36 = vector.multi_reduction <add>, %35, %cst_20 [2] : vector<2x8x8xf32> to vector<2x8xf32>
    %37 = vector.shape_cast %36 : vector<2x8xf32> to vector<2x8x1xf32>
    %38 = tpu.reciprocal %37 {approx = true} : vector<2x8x1xf32> -> vector<2x8x1xf32>
    %39 = vector.broadcast %38 : vector<2x8x1xf32> to vector<2x8x8xf32>
    %40 = arith.mulf %35, %39 : vector<2x8x8xf32>
    "tpu.trace_start"() <{level = 10 : i32, message = "bts,bsd->btd"}> : () -> ()
    %cst_21 = arith.constant dense<0.000000e+00> : vector<2x8x2xf32>
    %41 = tpu.matmul %40, %27, %cst_21 {dimension_numbers = #tpu.dot_dimension_numbers<[2], [1], [1], [2], [0, 0, 0, 1, 1, 2], [0], [0]>} : vector<2x8x8xf32>, vector<2x8x2xf32>, vector<2x8x2xf32> -> vector<2x8x2xf32>
    "tpu.trace_stop"() : () -> ()
    %42 = vector.extract_strided_slice %24 {offsets = [0, 0, 2], sizes = [2, 8, 2], strides = [1, 1, 1]} : vector<2x8x8xf32> to vector<2x8x2xf32>
    %43 = vector.extract_strided_slice %14 {offsets = [0, 0, 2], sizes = [2, 8, 2], strides = [1, 1, 1]} : vector<2x8x8xf32> to vector<2x8x2xf32>
    %44 = vector.extract_strided_slice %16 {offsets = [0, 0, 2], sizes = [2, 8, 2], strides = [1, 1, 1]} : vector<2x8x8xf32> to vector<2x8x2xf32>
    "tpu.trace_start"() <{level = 10 : i32, message = "btd,bsd->bts"}> : () -> ()
    %cst_22 = arith.constant dense<0.000000e+00> : vector<2x8x8xf32>
    %45 = tpu.matmul %42, %43, %cst_22 {dimension_numbers = #tpu.dot_dimension_numbers<[2], [2], [1], [1], [0, 0, 0, 1, 1, 1], [0], [0]>} : vector<2x8x2xf32>, vector<2x8x2xf32>, vector<2x8x8xf32> -> vector<2x8x8xf32>
    "tpu.trace_stop"() : () -> ()
    %cst_23 = arith.constant 0.707106769 : f32
    %46 = vector.broadcast %cst_23 : f32 to vector<2x8x8xf32>
    %47 = arith.mulf %45, %46 : vector<2x8x8xf32>
    %cst_24 = arith.constant dense<0xFF800000> : vector<2x8xf32>
    %48 = vector.multi_reduction <maximumf>, %47, %cst_24 [2] : vector<2x8x8xf32> to vector<2x8xf32>
    %49 = vector.shape_cast %48 : vector<2x8xf32> to vector<2x8x1xf32>
    %50 = vector.broadcast %49 : vector<2x8x1xf32> to vector<2x8x8xf32>
    %51 = arith.subf %47, %50 : vector<2x8x8xf32>
    %52 = math.exp %51 : vector<2x8x8xf32>
    %cst_25 = arith.constant dense<0.000000e+00> : vector<2x8xf32>
    %53 = vector.multi_reduction <add>, %52, %cst_25 [2] : vector<2x8x8xf32> to vector<2x8xf32>
    %54 = vector.shape_cast %53 : vector<2x8xf32> to vector<2x8x1xf32>
    %55 = tpu.reciprocal %54 {approx = true} : vector<2x8x1xf32> -> vector<2x8x1xf32>
    %56 = vector.broadcast %55 : vector<2x8x1xf32> to vector<2x8x8xf32>
    %57 = arith.mulf %52, %56 : vector<2x8x8xf32>
    "tpu.trace_start"() <{level = 10 : i32, message = "bts,bsd->btd"}> : () -> ()
    %cst_26 = arith.constant dense<0.000000e+00> : vector<2x8x2xf32>
    %58 = tpu.matmul %57, %44, %cst_26 {dimension_numbers = #tpu.dot_dimension_numbers<[2], [1], [1], [2], [0, 0, 0, 1, 1, 2], [0], [0]>} : vector<2x8x8xf32>, vector<2x8x2xf32>, vector<2x8x2xf32> -> vector<2x8x2xf32>
    "tpu.trace_stop"() : () -> ()
    %59 = vector.extract_strided_slice %24 {offsets = [0, 0, 4], sizes = [2, 8, 2], strides = [1, 1, 1]} : vector<2x8x8xf32> to vector<2x8x2xf32>
    %60 = vector.extract_strided_slice %14 {offsets = [0, 0, 4], sizes = [2, 8, 2], strides = [1, 1, 1]} : vector<2x8x8xf32> to vector<2x8x2xf32>
    %61 = vector.extract_strided_slice %16 {offsets = [0, 0, 4], sizes = [2, 8, 2], strides = [1, 1, 1]} : vector<2x8x8xf32> to vector<2x8x2xf32>
    "tpu.trace_start"() <{level = 10 : i32, message = "btd,bsd->bts"}> : () -> ()
    %cst_27 = arith.constant dense<0.000000e+00> : vector<2x8x8xf32>
    %62 = tpu.matmul %59, %60, %cst_27 {dimension_numbers = #tpu.dot_dimension_numbers<[2], [2], [1], [1], [0, 0, 0, 1, 1, 1], [0], [0]>} : vector<2x8x2xf32>, vector<2x8x2xf32>, vector<2x8x8xf32> -> vector<2x8x8xf32>
    "tpu.trace_stop"() : () -> ()
    %cst_28 = arith.constant 0.707106769 : f32
    %63 = vector.broadcast %cst_28 : f32 to vector<2x8x8xf32>
    %64 = arith.mulf %62, %63 : vector<2x8x8xf32>
    %cst_29 = arith.constant dense<0xFF800000> : vector<2x8xf32>
    %65 = vector.multi_reduction <maximumf>, %64, %cst_29 [2] : vector<2x8x8xf32> to vector<2x8xf32>
    %66 = vector.shape_cast %65 : vector<2x8xf32> to vector<2x8x1xf32>
    %67 = vector.broadcast %66 : vector<2x8x1xf32> to vector<2x8x8xf32>
    %68 = arith.subf %64, %67 : vector<2x8x8xf32>
    %69 = math.exp %68 : vector<2x8x8xf32>
    %cst_30 = arith.constant dense<0.000000e+00> : vector<2x8xf32>
    %70 = vector.multi_reduction <add>, %69, %cst_30 [2] : vector<2x8x8xf32> to vector<2x8xf32>
    %71 = vector.shape_cast %70 : vector<2x8xf32> to vector<2x8x1xf32>
    %72 = tpu.reciprocal %71 {approx = true} : vector<2x8x1xf32> -> vector<2x8x1xf32>
    %73 = vector.broadcast %72 : vector<2x8x1xf32> to vector<2x8x8xf32>
    %74 = arith.mulf %69, %73 : vector<2x8x8xf32>
    "tpu.trace_start"() <{level = 10 : i32, message = "bts,bsd->btd"}> : () -> ()
    %cst_31 = arith.constant dense<0.000000e+00> : vector<2x8x2xf32>
    %75 = tpu.matmul %74, %61, %cst_31 {dimension_numbers = #tpu.dot_dimension_numbers<[2], [1], [1], [2], [0, 0, 0, 1, 1, 2], [0], [0]>} : vector<2x8x8xf32>, vector<2x8x2xf32>, vector<2x8x2xf32> -> vector<2x8x2xf32>
    "tpu.trace_stop"() : () -> ()
    %76 = vector.extract_strided_slice %24 {offsets = [0, 0, 6], sizes = [2, 8, 2], strides = [1, 1, 1]} : vector<2x8x8xf32> to vector<2x8x2xf32>
    %77 = vector.extract_strided_slice %14 {offsets = [0, 0, 6], sizes = [2, 8, 2], strides = [1, 1, 1]} : vector<2x8x8xf32> to vector<2x8x2xf32>
    %78 = vector.extract_strided_slice %16 {offsets = [0, 0, 6], sizes = [2, 8, 2], strides = [1, 1, 1]} : vector<2x8x8xf32> to vector<2x8x2xf32>
    "tpu.trace_start"() <{level = 10 : i32, message = "btd,bsd->bts"}> : () -> ()
    %cst_32 = arith.constant dense<0.000000e+00> : vector<2x8x8xf32>
    %79 = tpu.matmul %76, %77, %cst_32 {dimension_numbers = #tpu.dot_dimension_numbers<[2], [2], [1], [1], [0, 0, 0, 1, 1, 1], [0], [0]>} : vector<2x8x2xf32>, vector<2x8x2xf32>, vector<2x8x8xf32> -> vector<2x8x8xf32>
    "tpu.trace_stop"() : () -> ()
    %cst_33 = arith.constant 0.707106769 : f32
    %80 = vector.broadcast %cst_33 : f32 to vector<2x8x8xf32>
    %81 = arith.mulf %79, %80 : vector<2x8x8xf32>
    %cst_34 = arith.constant dense<0xFF800000> : vector<2x8xf32>
    %82 = vector.multi_reduction <maximumf>, %81, %cst_34 [2] : vector<2x8x8xf32> to vector<2x8xf32>
    %83 = vector.shape_cast %82 : vector<2x8xf32> to vector<2x8x1xf32>
    %84 = vector.broadcast %83 : vector<2x8x1xf32> to vector<2x8x8xf32>
    %85 = arith.subf %81, %84 : vector<2x8x8xf32>
    %86 = math.exp %85 : vector<2x8x8xf32>
    %cst_35 = arith.constant dense<0.000000e+00> : vector<2x8xf32>
    %87 = vector.multi_reduction <add>, %86, %cst_35 [2] : vector<2x8x8xf32> to vector<2x8xf32>
    %88 = vector.shape_cast %87 : vector<2x8xf32> to vector<2x8x1xf32>
    %89 = tpu.reciprocal %88 {approx = true} : vector<2x8x1xf32> -> vector<2x8x1xf32>
    %90 = vector.broadcast %89 : vector<2x8x1xf32> to vector<2x8x8xf32>
    %91 = arith.mulf %86, %90 : vector<2x8x8xf32>
    "tpu.trace_start"() <{level = 10 : i32, message = "bts,bsd->btd"}> : () -> ()
    %cst_36 = arith.constant dense<0.000000e+00> : vector<2x8x2xf32>
    %92 = tpu.matmul %91, %78, %cst_36 {dimension_numbers = #tpu.dot_dimension_numbers<[2], [1], [1], [2], [0, 0, 0, 1, 1, 2], [0], [0]>} : vector<2x8x8xf32>, vector<2x8x2xf32>, vector<2x8x2xf32> -> vector<2x8x2xf32>
    "tpu.trace_stop"() : () -> ()
    %93 = tpu.concatenate %41, %58, %75, %92 in 2 : vector<2x8x2xf32>, vector<2x8x2xf32>, vector<2x8x2xf32>, vector<2x8x2xf32> -> vector<2x8x8xf32>
    %94 = vector.shape_cast %93 : vector<2x8x8xf32> to vector<16x8xf32>
    %c0_37 = arith.constant 0 : index
    %c0_38 = arith.constant 0 : index
    %c0_39 = arith.constant 0 : index
    %95 = vector.load %arg7[%c0_37, %c0_38, %c0_39] : memref<2x8x8xf32, #tpu.memory_space<vmem>>, vector<1x8x8xf32>
    %96 = vector.shape_cast %95 : vector<1x8x8xf32> to vector<8x8xf32>
    %cst_40 = arith.constant dense<0.000000e+00> : vector<16x8xf32>
    %97 = tpu.matmul %94, %96, %cst_40 {dimension_numbers = #tpu.dot_dimension_numbers<[1], [0], [0], [1], [0, 0, 1, 1], [], []>} : vector<16x8xf32>, vector<8x8xf32>, vector<16x8xf32> -> vector<16x8xf32>
    %c0_41 = arith.constant 0 : index
    %c0_42 = arith.constant 0 : index
    %c0_43 = arith.constant 0 : index
    %98 = vector.load %arg8[%c0_41, %c0_42, %c0_43] : memref<2x1x8xf32, #tpu.memory_space<vmem>>, vector<1x1x8xf32>
    %99 = vector.shape_cast %98 : vector<1x1x8xf32> to vector<1x8xf32>
    %100 = vector.broadcast %99 : vector<1x8xf32> to vector<16x8xf32>
    %101 = arith.addf %97, %100 : vector<16x8xf32>
    %102 = arith.addf %5, %101 : vector<16x8xf32>
    %c0_44 = arith.constant 0 : index
    %c0_45 = arith.constant 0 : index
    %c0_46 = arith.constant 0 : index
    %103 = vector.load %arg9[%c0_44, %c0_45, %c0_46] : memref<2x1x8xf32, #tpu.memory_space<vmem>>, vector<1x1x8xf32>
    %104 = vector.shape_cast %103 : vector<1x1x8xf32> to vector<1x8xf32>
    %c0_47 = arith.constant 0 : index
    %c0_48 = arith.constant 0 : index
    %c0_49 = arith.constant 0 : index
    %105 = vector.load %arg10[%c0_47, %c0_48, %c0_49] : memref<2x1x8xf32, #tpu.memory_space<vmem>>, vector<1x1x8xf32>
    %106 = vector.shape_cast %105 : vector<1x1x8xf32> to vector<1x8xf32>
    %cst_50 = arith.constant dense<0.000000e+00> : vector<16xf32>
    %107 = vector.multi_reduction <add>, %102, %cst_50 [1] : vector<16x8xf32> to vector<16xf32>
    %108 = vector.shape_cast %107 : vector<16xf32> to vector<16x1xf32>
    %cst_51 = arith.constant 8.000000e+00 : f32
    %109 = vector.broadcast %cst_51 : f32 to vector<16x1xf32>
    %110 = arith.divf %108, %109 : vector<16x1xf32>
    %111 = vector.broadcast %110 : vector<16x1xf32> to vector<16x8xf32>
    %112 = arith.subf %102, %111 : vector<16x8xf32>
    %113 = arith.mulf %112, %112 : vector<16x8xf32>
    %cst_52 = arith.constant dense<0.000000e+00> : vector<16xf32>
    %114 = vector.multi_reduction <add>, %113, %cst_52 [1] : vector<16x8xf32> to vector<16xf32>
    %115 = vector.shape_cast %114 : vector<16xf32> to vector<16x1xf32>
    %cst_53 = arith.constant 8.000000e+00 : f32
    %116 = vector.broadcast %cst_53 : f32 to vector<16x1xf32>
    %117 = arith.divf %115, %116 : vector<16x1xf32>
    %cst_54 = arith.constant 9.99999974E-6 : f32
    %118 = vector.broadcast %cst_54 : f32 to vector<16x1xf32>
    %119 = arith.addf %117, %118 : vector<16x1xf32>
    %120 = math.rsqrt %119 : vector<16x1xf32>
    %121 = vector.broadcast %120 : vector<16x1xf32> to vector<16x8xf32>
    %122 = arith.mulf %112, %121 : vector<16x8xf32>
    %123 = vector.broadcast %104 : vector<1x8xf32> to vector<16x8xf32>
    %124 = arith.mulf %122, %123 : vector<16x8xf32>
    %125 = vector.broadcast %106 : vector<1x8xf32> to vector<16x8xf32>
    %126 = arith.addf %124, %125 : vector<16x8xf32>
    %127 = arith.truncf %126 : vector<16x8xf32> to vector<16x8xbf16>
    %c0_55 = arith.constant 0 : index
    %c0_56 = arith.constant 0 : index
    %c0_57 = arith.constant 0 : index
    %128 = vector.load %arg13[%c0_55, %c0_56, %c0_57] : memref<2x8x2048xbf16, #tpu.memory_space<vmem>>, vector<1x8x2048xbf16>
    %129 = vector.shape_cast %128 : vector<1x8x2048xbf16> to vector<8x2048xbf16>
    %cst_58 = arith.constant dense<0.000000e+00> : vector<16x2048xf32>
    %130 = tpu.matmul %127, %129, %cst_58 {dimension_numbers = #tpu.dot_dimension_numbers<[1], [0], [0], [1], [0, 0, 1, 1], [], []>} : vector<16x8xbf16>, vector<8x2048xbf16>, vector<16x2048xf32> -> vector<16x2048xf32>
    %c0_59 = arith.constant 0 : index
    %c0_60 = arith.constant 0 : index
    %c0_61 = arith.constant 0 : index
    %131 = vector.load %arg14[%c0_59, %c0_60, %c0_61] : memref<2x1x2048xf32, #tpu.memory_space<vmem>>, vector<1x1x2048xf32>
    %132 = vector.shape_cast %131 : vector<1x1x2048xf32> to vector<1x2048xf32>
    %133 = vector.broadcast %132 : vector<1x2048xf32> to vector<16x2048xf32>
    %134 = arith.addf %130, %133 : vector<16x2048xf32>
    %cst_62 = arith.constant 0.000000e+00 : f32
    %135 = vector.broadcast %cst_62 : f32 to vector<16x2048xf32>
    %136 = arith.maximumf %134, %135 : vector<16x2048xf32>
    %137 = arith.truncf %136 : vector<16x2048xf32> to vector<16x2048xbf16>
    %c0_63 = arith.constant 0 : index
    %c0_64 = arith.constant 0 : index
    %c0_65 = arith.constant 0 : index
    %138 = vector.load %arg15[%c0_63, %c0_64, %c0_65] : memref<2x2048x8xbf16, #tpu.memory_space<vmem>>, vector<1x2048x8xbf16>
    %139 = vector.shape_cast %138 : vector<1x2048x8xbf16> to vector<2048x8xbf16>
    %cst_66 = arith.constant dense<0.000000e+00> : vector<16x8xf32>
    %140 = tpu.matmul %137, %139, %cst_66 {dimension_numbers = #tpu.dot_dimension_numbers<[1], [0], [0], [1], [0, 0, 1, 1], [], []>} : vector<16x2048xbf16>, vector<2048x8xbf16>, vector<16x8xf32> -> vector<16x8xf32>
    %c0_67 = arith.constant 0 : index
    %c0_68 = arith.constant 0 : index
    %c0_69 = arith.constant 0 : index
    %141 = vector.load %arg16[%c0_67, %c0_68, %c0_69] : memref<2x1x8xf32, #tpu.memory_space<vmem>>, vector<1x1x8xf32>
    %142 = vector.shape_cast %141 : vector<1x1x8xf32> to vector<1x8xf32>
    %143 = vector.broadcast %142 : vector<1x8xf32> to vector<16x8xf32>
    %144 = arith.addf %140, %143 : vector<16x8xf32>
    %145 = arith.addf %126, %144 : vector<16x8xf32>
    %c0_70 = arith.constant 0 : index
    %c0_71 = arith.constant 0 : index
    %c0_72 = arith.constant 0 : index
    %146 = vector.load %arg11[%c0_70, %c0_71, %c0_72] : memref<2x1x8xf32, #tpu.memory_space<vmem>>, vector<1x1x8xf32>
    %147 = vector.shape_cast %146 : vector<1x1x8xf32> to vector<1x8xf32>
    %c0_73 = arith.constant 0 : index
    %c0_74 = arith.constant 0 : index
    %c0_75 = arith.constant 0 : index
    %148 = vector.load %arg12[%c0_73, %c0_74, %c0_75] : memref<2x1x8xf32, #tpu.memory_space<vmem>>, vector<1x1x8xf32>
    %149 = vector.shape_cast %148 : vector<1x1x8xf32> to vector<1x8xf32>
    %cst_76 = arith.constant dense<0.000000e+00> : vector<16xf32>
    %150 = vector.multi_reduction <add>, %145, %cst_76 [1] : vector<16x8xf32> to vector<16xf32>
    %151 = vector.shape_cast %150 : vector<16xf32> to vector<16x1xf32>
    %cst_77 = arith.constant 8.000000e+00 : f32
    %152 = vector.broadcast %cst_77 : f32 to vector<16x1xf32>
    %153 = arith.divf %151, %152 : vector<16x1xf32>
    %154 = vector.broadcast %153 : vector<16x1xf32> to vector<16x8xf32>
    %155 = arith.subf %145, %154 : vector<16x8xf32>
    %156 = arith.mulf %155, %155 : vector<16x8xf32>
    %cst_78 = arith.constant dense<0.000000e+00> : vector<16xf32>
    %157 = vector.multi_reduction <add>, %156, %cst_78 [1] : vector<16x8xf32> to vector<16xf32>
    %158 = vector.shape_cast %157 : vector<16xf32> to vector<16x1xf32>
    %cst_79 = arith.constant 8.000000e+00 : f32
    %159 = vector.broadcast %cst_79 : f32 to vector<16x1xf32>
    %160 = arith.divf %158, %159 : vector<16x1xf32>
    %cst_80 = arith.constant 9.99999974E-6 : f32
    %161 = vector.broadcast %cst_80 : f32 to vector<16x1xf32>
    %162 = arith.addf %160, %161 : vector<16x1xf32>
    %163 = math.rsqrt %162 : vector<16x1xf32>
    %164 = vector.broadcast %163 : vector<16x1xf32> to vector<16x8xf32>
    %165 = arith.mulf %155, %164 : vector<16x8xf32>
    %166 = vector.broadcast %147 : vector<1x8xf32> to vector<16x8xf32>
    %167 = arith.mulf %165, %166 : vector<16x8xf32>
    %168 = vector.broadcast %149 : vector<1x8xf32> to vector<16x8xf32>
    %169 = arith.addf %167, %168 : vector<16x8xf32>
    %c1 = arith.constant 1 : index
    %c0_81 = arith.constant 0 : index
    %c0_82 = arith.constant 0 : index
    %170 = vector.load %arg5[%c1, %c0_81, %c0_82] : memref<2x8x16xf32, #tpu.memory_space<vmem>>, vector<1x8x16xf32>
    %171 = vector.shape_cast %170 : vector<1x8x16xf32> to vector<8x16xf32>
    %cst_83 = arith.constant dense<0.000000e+00> : vector<16x16xf32>
    %172 = tpu.matmul %169, %171, %cst_83 {dimension_numbers = #tpu.dot_dimension_numbers<[1], [0], [0], [1], [0, 0, 1, 1], [], []>} : vector<16x8xf32>, vector<8x16xf32>, vector<16x16xf32> -> vector<16x16xf32>
    %c1_84 = arith.constant 1 : index
    %c0_85 = arith.constant 0 : index
    %c0_86 = arith.constant 0 : index
    %173 = vector.load %arg6[%c1_84, %c0_85, %c0_86] : memref<2x1x16xf32, #tpu.memory_space<vmem>>, vector<1x1x16xf32>
    %174 = vector.shape_cast %173 : vector<1x1x16xf32> to vector<1x16xf32>
    %175 = vector.broadcast %174 : vector<1x16xf32> to vector<16x16xf32>
    %176 = arith.addf %172, %175 : vector<16x16xf32>
    %177 = vector.extract_strided_slice %176 {offsets = [0, 0], sizes = [16, 8], strides = [1, 1]} : vector<16x16xf32> to vector<16x8xf32>
    %178 = vector.shape_cast %177 : vector<16x8xf32> to vector<2x8x8xf32>
    %179 = vector.extract_strided_slice %176 {offsets = [0, 8], sizes = [16, 8], strides = [1, 1]} : vector<16x16xf32> to vector<16x8xf32>
    %180 = vector.shape_cast %179 : vector<16x8xf32> to vector<2x8x8xf32>
    %181 = vector.shape_cast %169 : vector<16x8xf32> to vector<2x8x8xf32>
    %182 = vector.extract_strided_slice %181 {offsets = [0, 7, 0], sizes = [2, 1, 8], strides = [1, 1, 1]} : vector<2x8x8xf32> to vector<2x1x8xf32>
    %183 = vector.shape_cast %182 : vector<2x1x8xf32> to vector<2x8xf32>
    %c1_87 = arith.constant 1 : index
    %c0_88 = arith.constant 0 : index
    %c0_89 = arith.constant 0 : index
    %184 = vector.load %arg3[%c1_87, %c0_88, %c0_89] : memref<2x8x8xf32, #tpu.memory_space<vmem>>, vector<1x8x8xf32>
    %185 = vector.shape_cast %184 : vector<1x8x8xf32> to vector<8x8xf32>
    %cst_90 = arith.constant dense<0.000000e+00> : vector<2x8xf32>
    %186 = tpu.matmul %183, %185, %cst_90 {dimension_numbers = #tpu.dot_dimension_numbers<[1], [0], [0], [1], [0, 0, 1, 1], [], []>} : vector<2x8xf32>, vector<8x8xf32>, vector<2x8xf32> -> vector<2x8xf32>
    %c1_91 = arith.constant 1 : index
    %c0_92 = arith.constant 0 : index
    %c0_93 = arith.constant 0 : index
    %187 = vector.load %arg4[%c1_91, %c0_92, %c0_93] : memref<2x1x8xf32, #tpu.memory_space<vmem>>, vector<1x1x8xf32>
    %188 = vector.shape_cast %187 : vector<1x1x8xf32> to vector<1x8xf32>
    %189 = vector.broadcast %188 : vector<1x8xf32> to vector<2x8xf32>
    %190 = arith.addf %186, %189 : vector<2x8xf32>
    %191 = vector.shape_cast %190 : vector<2x8xf32> to vector<2x1x8xf32>
    %192 = vector.extract_strided_slice %191 {offsets = [0, 0, 0], sizes = [2, 1, 2], strides = [1, 1, 1]} : vector<2x1x8xf32> to vector<2x1x2xf32>
    %193 = vector.extract_strided_slice %178 {offsets = [0, 0, 0], sizes = [2, 8, 2], strides = [1, 1, 1]} : vector<2x8x8xf32> to vector<2x8x2xf32>
    %194 = vector.extract_strided_slice %180 {offsets = [0, 0, 0], sizes = [2, 8, 2], strides = [1, 1, 1]} : vector<2x8x8xf32> to vector<2x8x2xf32>
    "tpu.trace_start"() <{level = 10 : i32, message = "btd,bsd->bts"}> : () -> ()
    %cst_94 = arith.constant dense<0.000000e+00> : vector<2x1x8xf32>
    %195 = tpu.matmul %192, %193, %cst_94 {dimension_numbers = #tpu.dot_dimension_numbers<[2], [2], [1], [1], [0, 0, 0, 1, 1, 1], [0], [0]>} : vector<2x1x2xf32>, vector<2x8x2xf32>, vector<2x1x8xf32> -> vector<2x1x8xf32>
    "tpu.trace_stop"() : () -> ()
    %cst_95 = arith.constant 0.707106769 : f32
    %196 = vector.broadcast %cst_95 : f32 to vector<2x1x8xf32>
    %197 = arith.mulf %195, %196 : vector<2x1x8xf32>
    %cst_96 = arith.constant dense<0xFF800000> : vector<2x1xf32>
    %198 = vector.multi_reduction <maximumf>, %197, %cst_96 [2] : vector<2x1x8xf32> to vector<2x1xf32>
    %199 = vector.shape_cast %198 : vector<2x1xf32> to vector<2x1x1xf32>
    %200 = vector.broadcast %199 : vector<2x1x1xf32> to vector<2x1x8xf32>
    %201 = arith.subf %197, %200 : vector<2x1x8xf32>
    %202 = math.exp %201 : vector<2x1x8xf32>
    %cst_97 = arith.constant dense<0.000000e+00> : vector<2x1xf32>
    %203 = vector.multi_reduction <add>, %202, %cst_97 [2] : vector<2x1x8xf32> to vector<2x1xf32>
    %204 = vector.shape_cast %203 : vector<2x1xf32> to vector<2x1x1xf32>
    %205 = tpu.reciprocal %204 {approx = true} : vector<2x1x1xf32> -> vector<2x1x1xf32>
    %206 = vector.broadcast %205 : vector<2x1x1xf32> to vector<2x1x8xf32>
    %207 = arith.mulf %202, %206 : vector<2x1x8xf32>
    "tpu.trace_start"() <{level = 10 : i32, message = "bts,bsd->btd"}> : () -> ()
    %cst_98 = arith.constant dense<0.000000e+00> : vector<2x1x2xf32>
    %208 = tpu.matmul %207, %194, %cst_98 {dimension_numbers = #tpu.dot_dimension_numbers<[2], [1], [1], [2], [0, 0, 0, 1, 1, 2], [0], [0]>} : vector<2x1x8xf32>, vector<2x8x2xf32>, vector<2x1x2xf32> -> vector<2x1x2xf32>
    "tpu.trace_stop"() : () -> ()
    %209 = vector.extract_strided_slice %191 {offsets = [0, 0, 2], sizes = [2, 1, 2], strides = [1, 1, 1]} : vector<2x1x8xf32> to vector<2x1x2xf32>
    %210 = vector.extract_strided_slice %178 {offsets = [0, 0, 2], sizes = [2, 8, 2], strides = [1, 1, 1]} : vector<2x8x8xf32> to vector<2x8x2xf32>
    %211 = vector.extract_strided_slice %180 {offsets = [0, 0, 2], sizes = [2, 8, 2], strides = [1, 1, 1]} : vector<2x8x8xf32> to vector<2x8x2xf32>
    "tpu.trace_start"() <{level = 10 : i32, message = "btd,bsd->bts"}> : () -> ()
    %cst_99 = arith.constant dense<0.000000e+00> : vector<2x1x8xf32>
    %212 = tpu.matmul %209, %210, %cst_99 {dimension_numbers = #tpu.dot_dimension_numbers<[2], [2], [1], [1], [0, 0, 0, 1, 1, 1], [0], [0]>} : vector<2x1x2xf32>, vector<2x8x2xf32>, vector<2x1x8xf32> -> vector<2x1x8xf32>
    "tpu.trace_stop"() : () -> ()
    %cst_100 = arith.constant 0.707106769 : f32
    %213 = vector.broadcast %cst_100 : f32 to vector<2x1x8xf32>
    %214 = arith.mulf %212, %213 : vector<2x1x8xf32>
    %cst_101 = arith.constant dense<0xFF800000> : vector<2x1xf32>
    %215 = vector.multi_reduction <maximumf>, %214, %cst_101 [2] : vector<2x1x8xf32> to vector<2x1xf32>
    %216 = vector.shape_cast %215 : vector<2x1xf32> to vector<2x1x1xf32>
    %217 = vector.broadcast %216 : vector<2x1x1xf32> to vector<2x1x8xf32>
    %218 = arith.subf %214, %217 : vector<2x1x8xf32>
    %219 = math.exp %218 : vector<2x1x8xf32>
    %cst_102 = arith.constant dense<0.000000e+00> : vector<2x1xf32>
    %220 = vector.multi_reduction <add>, %219, %cst_102 [2] : vector<2x1x8xf32> to vector<2x1xf32>
    %221 = vector.shape_cast %220 : vector<2x1xf32> to vector<2x1x1xf32>
    %222 = tpu.reciprocal %221 {approx = true} : vector<2x1x1xf32> -> vector<2x1x1xf32>
    %223 = vector.broadcast %222 : vector<2x1x1xf32> to vector<2x1x8xf32>
    %224 = arith.mulf %219, %223 : vector<2x1x8xf32>
    "tpu.trace_start"() <{level = 10 : i32, message = "bts,bsd->btd"}> : () -> ()
    %cst_103 = arith.constant dense<0.000000e+00> : vector<2x1x2xf32>
    %225 = tpu.matmul %224, %211, %cst_103 {dimension_numbers = #tpu.dot_dimension_numbers<[2], [1], [1], [2], [0, 0, 0, 1, 1, 2], [0], [0]>} : vector<2x1x8xf32>, vector<2x8x2xf32>, vector<2x1x2xf32> -> vector<2x1x2xf32>
    "tpu.trace_stop"() : () -> ()
    %226 = vector.extract_strided_slice %191 {offsets = [0, 0, 4], sizes = [2, 1, 2], strides = [1, 1, 1]} : vector<2x1x8xf32> to vector<2x1x2xf32>
    %227 = vector.extract_strided_slice %178 {offsets = [0, 0, 4], sizes = [2, 8, 2], strides = [1, 1, 1]} : vector<2x8x8xf32> to vector<2x8x2xf32>
    %228 = vector.extract_strided_slice %180 {offsets = [0, 0, 4], sizes = [2, 8, 2], strides = [1, 1, 1]} : vector<2x8x8xf32> to vector<2x8x2xf32>
    "tpu.trace_start"() <{level = 10 : i32, message = "btd,bsd->bts"}> : () -> ()
    %cst_104 = arith.constant dense<0.000000e+00> : vector<2x1x8xf32>
    %229 = tpu.matmul %226, %227, %cst_104 {dimension_numbers = #tpu.dot_dimension_numbers<[2], [2], [1], [1], [0, 0, 0, 1, 1, 1], [0], [0]>} : vector<2x1x2xf32>, vector<2x8x2xf32>, vector<2x1x8xf32> -> vector<2x1x8xf32>
    "tpu.trace_stop"() : () -> ()
    %cst_105 = arith.constant 0.707106769 : f32
    %230 = vector.broadcast %cst_105 : f32 to vector<2x1x8xf32>
    %231 = arith.mulf %229, %230 : vector<2x1x8xf32>
    %cst_106 = arith.constant dense<0xFF800000> : vector<2x1xf32>
    %232 = vector.multi_reduction <maximumf>, %231, %cst_106 [2] : vector<2x1x8xf32> to vector<2x1xf32>
    %233 = vector.shape_cast %232 : vector<2x1xf32> to vector<2x1x1xf32>
    %234 = vector.broadcast %233 : vector<2x1x1xf32> to vector<2x1x8xf32>
    %235 = arith.subf %231, %234 : vector<2x1x8xf32>
    %236 = math.exp %235 : vector<2x1x8xf32>
    %cst_107 = arith.constant dense<0.000000e+00> : vector<2x1xf32>
    %237 = vector.multi_reduction <add>, %236, %cst_107 [2] : vector<2x1x8xf32> to vector<2x1xf32>
    %238 = vector.shape_cast %237 : vector<2x1xf32> to vector<2x1x1xf32>
    %239 = tpu.reciprocal %238 {approx = true} : vector<2x1x1xf32> -> vector<2x1x1xf32>
    %240 = vector.broadcast %239 : vector<2x1x1xf32> to vector<2x1x8xf32>
    %241 = arith.mulf %236, %240 : vector<2x1x8xf32>
    "tpu.trace_start"() <{level = 10 : i32, message = "bts,bsd->btd"}> : () -> ()
    %cst_108 = arith.constant dense<0.000000e+00> : vector<2x1x2xf32>
    %242 = tpu.matmul %241, %228, %cst_108 {dimension_numbers = #tpu.dot_dimension_numbers<[2], [1], [1], [2], [0, 0, 0, 1, 1, 2], [0], [0]>} : vector<2x1x8xf32>, vector<2x8x2xf32>, vector<2x1x2xf32> -> vector<2x1x2xf32>
    "tpu.trace_stop"() : () -> ()
    %243 = vector.extract_strided_slice %191 {offsets = [0, 0, 6], sizes = [2, 1, 2], strides = [1, 1, 1]} : vector<2x1x8xf32> to vector<2x1x2xf32>
    %244 = vector.extract_strided_slice %178 {offsets = [0, 0, 6], sizes = [2, 8, 2], strides = [1, 1, 1]} : vector<2x8x8xf32> to vector<2x8x2xf32>
    %245 = vector.extract_strided_slice %180 {offsets = [0, 0, 6], sizes = [2, 8, 2], strides = [1, 1, 1]} : vector<2x8x8xf32> to vector<2x8x2xf32>
    "tpu.trace_start"() <{level = 10 : i32, message = "btd,bsd->bts"}> : () -> ()
    %cst_109 = arith.constant dense<0.000000e+00> : vector<2x1x8xf32>
    %246 = tpu.matmul %243, %244, %cst_109 {dimension_numbers = #tpu.dot_dimension_numbers<[2], [2], [1], [1], [0, 0, 0, 1, 1, 1], [0], [0]>} : vector<2x1x2xf32>, vector<2x8x2xf32>, vector<2x1x8xf32> -> vector<2x1x8xf32>
    "tpu.trace_stop"() : () -> ()
    %cst_110 = arith.constant 0.707106769 : f32
    %247 = vector.broadcast %cst_110 : f32 to vector<2x1x8xf32>
    %248 = arith.mulf %246, %247 : vector<2x1x8xf32>
    %cst_111 = arith.constant dense<0xFF800000> : vector<2x1xf32>
    %249 = vector.multi_reduction <maximumf>, %248, %cst_111 [2] : vector<2x1x8xf32> to vector<2x1xf32>
    %250 = vector.shape_cast %249 : vector<2x1xf32> to vector<2x1x1xf32>
    %251 = vector.broadcast %250 : vector<2x1x1xf32> to vector<2x1x8xf32>
    %252 = arith.subf %248, %251 : vector<2x1x8xf32>
    %253 = math.exp %252 : vector<2x1x8xf32>
    %cst_112 = arith.constant dense<0.000000e+00> : vector<2x1xf32>
    %254 = vector.multi_reduction <add>, %253, %cst_112 [2] : vector<2x1x8xf32> to vector<2x1xf32>
    %255 = vector.shape_cast %254 : vector<2x1xf32> to vector<2x1x1xf32>
    %256 = tpu.reciprocal %255 {approx = true} : vector<2x1x1xf32> -> vector<2x1x1xf32>
    %257 = vector.broadcast %256 : vector<2x1x1xf32> to vector<2x1x8xf32>
    %258 = arith.mulf %253, %257 : vector<2x1x8xf32>
    "tpu.trace_start"() <{level = 10 : i32, message = "bts,bsd->btd"}> : () -> ()
    %cst_113 = arith.constant dense<0.000000e+00> : vector<2x1x2xf32>
    %259 = tpu.matmul %258, %245, %cst_113 {dimension_numbers = #tpu.dot_dimension_numbers<[2], [1], [1], [2], [0, 0, 0, 1, 1, 2], [0], [0]>} : vector<2x1x8xf32>, vector<2x8x2xf32>, vector<2x1x2xf32> -> vector<2x1x2xf32>
    "tpu.trace_stop"() : () -> ()
    %260 = tpu.concatenate %208, %225, %242, %259 in 2 : vector<2x1x2xf32>, vector<2x1x2xf32>, vector<2x1x2xf32>, vector<2x1x2xf32> -> vector<2x1x8xf32>
    %261 = vector.shape_cast %260 : vector<2x1x8xf32> to vector<2x8xf32>
    %c1_114 = arith.constant 1 : index
    %c0_115 = arith.constant 0 : index
    %c0_116 = arith.constant 0 : index
    %262 = vector.load %arg7[%c1_114, %c0_115, %c0_116] : memref<2x8x8xf32, #tpu.memory_space<vmem>>, vector<1x8x8xf32>
    %263 = vector.shape_cast %262 : vector<1x8x8xf32> to vector<8x8xf32>
    %cst_117 = arith.constant dense<0.000000e+00> : vector<2x8xf32>
    %264 = tpu.matmul %261, %263, %cst_117 {dimension_numbers = #tpu.dot_dimension_numbers<[1], [0], [0], [1], [0, 0, 1, 1], [], []>} : vector<2x8xf32>, vector<8x8xf32>, vector<2x8xf32> -> vector<2x8xf32>
    %c1_118 = arith.constant 1 : index
    %c0_119 = arith.constant 0 : index
    %c0_120 = arith.constant 0 : index
    %265 = vector.load %arg8[%c1_118, %c0_119, %c0_120] : memref<2x1x8xf32, #tpu.memory_space<vmem>>, vector<1x1x8xf32>
    %266 = vector.shape_cast %265 : vector<1x1x8xf32> to vector<1x8xf32>
    %267 = vector.broadcast %266 : vector<1x8xf32> to vector<2x8xf32>
    %268 = arith.addf %264, %267 : vector<2x8xf32>
    %269 = arith.addf %183, %268 : vector<2x8xf32>
    %c1_121 = arith.constant 1 : index
    %c0_122 = arith.constant 0 : index
    %c0_123 = arith.constant 0 : index
    %270 = vector.load %arg9[%c1_121, %c0_122, %c0_123] : memref<2x1x8xf32, #tpu.memory_space<vmem>>, vector<1x1x8xf32>
    %271 = vector.shape_cast %270 : vector<1x1x8xf32> to vector<1x8xf32>
    %c1_124 = arith.constant 1 : index
    %c0_125 = arith.constant 0 : index
    %c0_126 = arith.constant 0 : index
    %272 = vector.load %arg10[%c1_124, %c0_125, %c0_126] : memref<2x1x8xf32, #tpu.memory_space<vmem>>, vector<1x1x8xf32>
    %273 = vector.shape_cast %272 : vector<1x1x8xf32> to vector<1x8xf32>
    %cst_127 = arith.constant dense<0.000000e+00> : vector<2xf32>
    %274 = vector.multi_reduction <add>, %269, %cst_127 [1] : vector<2x8xf32> to vector<2xf32>
    %275 = vector.shape_cast %274 : vector<2xf32> to vector<2x1xf32>
    %cst_128 = arith.constant 8.000000e+00 : f32
    %276 = vector.broadcast %cst_128 : f32 to vector<2x1xf32>
    %277 = arith.divf %275, %276 : vector<2x1xf32>
    %278 = vector.broadcast %277 : vector<2x1xf32> to vector<2x8xf32>
    %279 = arith.subf %269, %278 : vector<2x8xf32>
    %280 = arith.mulf %279, %279 : vector<2x8xf32>
    %cst_129 = arith.constant dense<0.000000e+00> : vector<2xf32>
    %281 = vector.multi_reduction <add>, %280, %cst_129 [1] : vector<2x8xf32> to vector<2xf32>
    %282 = vector.shape_cast %281 : vector<2xf32> to vector<2x1xf32>
    %cst_130 = arith.constant 8.000000e+00 : f32
    %283 = vector.broadcast %cst_130 : f32 to vector<2x1xf32>
    %284 = arith.divf %282, %283 : vector<2x1xf32>
    %cst_131 = arith.constant 9.99999974E-6 : f32
    %285 = vector.broadcast %cst_131 : f32 to vector<2x1xf32>
    %286 = arith.addf %284, %285 : vector<2x1xf32>
    %287 = math.rsqrt %286 : vector<2x1xf32>
    %288 = vector.broadcast %287 : vector<2x1xf32> to vector<2x8xf32>
    %289 = arith.mulf %279, %288 : vector<2x8xf32>
    %290 = vector.broadcast %271 : vector<1x8xf32> to vector<2x8xf32>
    %291 = arith.mulf %289, %290 : vector<2x8xf32>
    %292 = vector.broadcast %273 : vector<1x8xf32> to vector<2x8xf32>
    %293 = arith.addf %291, %292 : vector<2x8xf32>
    %294 = arith.truncf %293 : vector<2x8xf32> to vector<2x8xbf16>
    %c1_132 = arith.constant 1 : index
    %c0_133 = arith.constant 0 : index
    %c0_134 = arith.constant 0 : index
    %295 = vector.load %arg13[%c1_132, %c0_133, %c0_134] : memref<2x8x2048xbf16, #tpu.memory_space<vmem>>, vector<1x8x2048xbf16>
    %296 = vector.shape_cast %295 : vector<1x8x2048xbf16> to vector<8x2048xbf16>
    %cst_135 = arith.constant dense<0.000000e+00> : vector<2x2048xf32>
    %297 = tpu.matmul %294, %296, %cst_135 {dimension_numbers = #tpu.dot_dimension_numbers<[1], [0], [0], [1], [0, 0, 1, 1], [], []>} : vector<2x8xbf16>, vector<8x2048xbf16>, vector<2x2048xf32> -> vector<2x2048xf32>
    %c1_136 = arith.constant 1 : index
    %c0_137 = arith.constant 0 : index
    %c0_138 = arith.constant 0 : index
    %298 = vector.load %arg14[%c1_136, %c0_137, %c0_138] : memref<2x1x2048xf32, #tpu.memory_space<vmem>>, vector<1x1x2048xf32>
    %299 = vector.shape_cast %298 : vector<1x1x2048xf32> to vector<1x2048xf32>
    %300 = vector.broadcast %299 : vector<1x2048xf32> to vector<2x2048xf32>
    %301 = arith.addf %297, %300 : vector<2x2048xf32>
    %cst_139 = arith.constant 0.000000e+00 : f32
    %302 = vector.broadcast %cst_139 : f32 to vector<2x2048xf32>
    %303 = arith.maximumf %301, %302 : vector<2x2048xf32>
    %304 = arith.truncf %303 : vector<2x2048xf32> to vector<2x2048xbf16>
    %c1_140 = arith.constant 1 : index
    %c0_141 = arith.constant 0 : index
    %c0_142 = arith.constant 0 : index
    %305 = vector.load %arg15[%c1_140, %c0_141, %c0_142] : memref<2x2048x8xbf16, #tpu.memory_space<vmem>>, vector<1x2048x8xbf16>
    %306 = vector.shape_cast %305 : vector<1x2048x8xbf16> to vector<2048x8xbf16>
    %cst_143 = arith.constant dense<0.000000e+00> : vector<2x8xf32>
    %307 = tpu.matmul %304, %306, %cst_143 {dimension_numbers = #tpu.dot_dimension_numbers<[1], [0], [0], [1], [0, 0, 1, 1], [], []>} : vector<2x2048xbf16>, vector<2048x8xbf16>, vector<2x8xf32> -> vector<2x8xf32>
    %c1_144 = arith.constant 1 : index
    %c0_145 = arith.constant 0 : index
    %c0_146 = arith.constant 0 : index
    %308 = vector.load %arg16[%c1_144, %c0_145, %c0_146] : memref<2x1x8xf32, #tpu.memory_space<vmem>>, vector<1x1x8xf32>
    %309 = vector.shape_cast %308 : vector<1x1x8xf32> to vector<1x8xf32>
    %310 = vector.broadcast %309 : vector<1x8xf32> to vector<2x8xf32>
    %311 = arith.addf %307, %310 : vector<2x8xf32>
    %312 = arith.addf %293, %311 : vector<2x8xf32>
    %c1_147 = arith.constant 1 : index
    %c0_148 = arith.constant 0 : index
    %c0_149 = arith.constant 0 : index
    %313 = vector.load %arg11[%c1_147, %c0_148, %c0_149] : memref<2x1x8xf32, #tpu.memory_space<vmem>>, vector<1x1x8xf32>
    %314 = vector.shape_cast %313 : vector<1x1x8xf32> to vector<1x8xf32>
    %c1_150 = arith.constant 1 : index
    %c0_151 = arith.constant 0 : index
    %c0_152 = arith.constant 0 : index
    %315 = vector.load %arg12[%c1_150, %c0_151, %c0_152] : memref<2x1x8xf32, #tpu.memory_space<vmem>>, vector<1x1x8xf32>
    %316 = vector.shape_cast %315 : vector<1x1x8xf32> to vector<1x8xf32>
    %cst_153 = arith.constant dense<0.000000e+00> : vector<2xf32>
    %317 = vector.multi_reduction <add>, %312, %cst_153 [1] : vector<2x8xf32> to vector<2xf32>
    %318 = vector.shape_cast %317 : vector<2xf32> to vector<2x1xf32>
    %cst_154 = arith.constant 8.000000e+00 : f32
    %319 = vector.broadcast %cst_154 : f32 to vector<2x1xf32>
    %320 = arith.divf %318, %319 : vector<2x1xf32>
    %321 = vector.broadcast %320 : vector<2x1xf32> to vector<2x8xf32>
    %322 = arith.subf %312, %321 : vector<2x8xf32>
    %323 = arith.mulf %322, %322 : vector<2x8xf32>
    %cst_155 = arith.constant dense<0.000000e+00> : vector<2xf32>
    %324 = vector.multi_reduction <add>, %323, %cst_155 [1] : vector<2x8xf32> to vector<2xf32>
    %325 = vector.shape_cast %324 : vector<2xf32> to vector<2x1xf32>
    %cst_156 = arith.constant 8.000000e+00 : f32
    %326 = vector.broadcast %cst_156 : f32 to vector<2x1xf32>
    %327 = arith.divf %325, %326 : vector<2x1xf32>
    %cst_157 = arith.constant 9.99999974E-6 : f32
    %328 = vector.broadcast %cst_157 : f32 to vector<2x1xf32>
    %329 = arith.addf %327, %328 : vector<2x1xf32>
    %330 = math.rsqrt %329 : vector<2x1xf32>
    %331 = vector.broadcast %330 : vector<2x1xf32> to vector<2x8xf32>
    %332 = arith.mulf %322, %331 : vector<2x8xf32>
    %333 = vector.broadcast %314 : vector<1x8xf32> to vector<2x8xf32>
    %334 = arith.mulf %332, %333 : vector<2x8xf32>
    %335 = vector.broadcast %316 : vector<1x8xf32> to vector<2x8xf32>
    %336 = arith.addf %334, %335 : vector<2x8xf32>
    %c0_158 = arith.constant 0 : index
    %c0_159 = arith.constant 0 : index
    %337 = vector.load %arg17[%c0_158, %c0_159] : memref<8x1xf32, #tpu.memory_space<vmem>>, vector<8x1xf32>
    %cst_160 = arith.constant dense<0.000000e+00> : vector<2x1xf32>
    %338 = tpu.matmul %336, %337, %cst_160 {dimension_numbers = #tpu.dot_dimension_numbers<[1], [0], [0], [1], [0, 0, 1, 1], [], []>} : vector<2x8xf32>, vector<8x1xf32>, vector<2x1xf32> -> vector<2x1xf32>
    %c0_161 = arith.constant 0 : index
    %c0_162 = arith.constant 0 : index
    %339 = vector.load %arg18[%c0_161, %c0_162] : memref<1x1xf32, #tpu.memory_space<vmem>>, vector<1x1xf32>
    %340 = vector.broadcast %339 : vector<1x1xf32> to vector<2x1xf32>
    %341 = arith.addf %338, %340 : vector<2x1xf32>
    %c0_163 = arith.constant 0 : index
    %c0_164 = arith.constant 0 : index
    %342 = vector.load %arg19[%c0_163, %c0_164] : memref<2x1xf32, #tpu.memory_space<vmem>>, vector<2x1xf32>
    tpu.vector_store %arg19[%c0_163, %c0_164], %341 {strides = array<i32>} : memref<2x1xf32, #tpu.memory_space<vmem>>, vector<2x1xf32>,
    return
  }
  func.func @transform_0(%arg0: i32) -> (i32, i32, i32) {
    %c0_i32 = arith.constant 0 : i32
    %c0_i32_0 = arith.constant 0 : i32
    %c0_i32_1 = arith.constant 0 : i32
    return %arg0, %c0_i32, %c0_i32_0 : i32, i32, i32
  }
  func.func @transform_1(%arg0: i32) -> (i32, i32) {
    %c0_i32 = arith.constant 0 : i32
    %c0_i32_0 = arith.constant 0 : i32
    %c0_i32_1 = arith.constant 0 : i32
    return %c0_i32, %c0_i32_0 : i32, i32
  }
  func.func @transform_2(%arg0: i32) -> (i32, i32, i32) {
    %c0_i32 = arith.constant 0 : i32
    %c0_i32_0 = arith.constant 0 : i32
    %c0_i32_1 = arith.constant 0 : i32
    %c0_i32_2 = arith.constant 0 : i32
    return %c0_i32, %c0_i32_0, %c0_i32_1 : i32, i32, i32
  }
  func.func @transform_3(%arg0: i32) -> (i32, i32, i32) {
    %c0_i32 = arith.constant 0 : i32
    %c0_i32_0 = arith.constant 0 : i32
    %c0_i32_1 = arith.constant 0 : i32
    %c0_i32_2 = arith.constant 0 : i32
    return %c0_i32, %c0_i32_0, %c0_i32_1 : i32, i32, i32
  }
  func.func @transform_4(%arg0: i32) -> (i32, i32, i32) {
    %c0_i32 = arith.constant 0 : i32
    %c0_i32_0 = arith.constant 0 : i32
    %c0_i32_1 = arith.constant 0 : i32
    %c0_i32_2 = arith.constant 0 : i32
    return %c0_i32, %c0_i32_0, %c0_i32_1 : i32, i32, i32
  }
  func.func @transform_5(%arg0: i32) -> (i32, i32, i32) {
    %c0_i32 = arith.constant 0 : i32
    %c0_i32_0 = arith.constant 0 : i32
    %c0_i32_1 = arith.constant 0 : i32
    %c0_i32_2 = arith.constant 0 : i32
    return %c0_i32, %c0_i32_0, %c0_i32_1 : i32, i32, i32
  }
  func.func @transform_6(%arg0: i32) -> (i32, i32, i32) {
    %c0_i32 = arith.constant 0 : i32
    %c0_i32_0 = arith.constant 0 : i32
    %c0_i32_1 = arith.constant 0 : i32
    %c0_i32_2 = arith.constant 0 : i32
    return %c0_i32, %c0_i32_0, %c0_i32_1 : i32, i32, i32
  }
  func.func @transform_7(%arg0: i32) -> (i32, i32, i32) {
    %c0_i32 = arith.constant 0 : i32
    %c0_i32_0 = arith.constant 0 : i32
    %c0_i32_1 = arith.constant 0 : i32
    %c0_i32_2 = arith.constant 0 : i32
    return %c0_i32, %c0_i32_0, %c0_i32_1 : i32, i32, i32
  }
  func.func @transform_8(%arg0: i32) -> (i32, i32, i32) {
    %c0_i32 = arith.constant 0 : i32
    %c0_i32_0 = arith.constant 0 : i32
    %c0_i32_1 = arith.constant 0 : i32
    %c0_i32_2 = arith.constant 0 : i32
    return %c0_i32, %c0_i32_0, %c0_i32_1 : i32, i32, i32
  }
  func.func @transform_9(%arg0: i32) -> (i32, i32, i32) {
    %c0_i32 = arith.constant 0 : i32
    %c0_i32_0 = arith.constant 0 : i32
    %c0_i32_1 = arith.constant 0 : i32
    %c0_i32_2 = arith.constant 0 : i32
    return %c0_i32, %c0_i32_0, %c0_i32_1 : i32, i32, i32
  }
  func.func @transform_10(%arg0: i32) -> (i32, i32, i32) {
    %c0_i32 = arith.constant 0 : i32
    %c0_i32_0 = arith.constant 0 : i32
    %c0_i32_1 = arith.constant 0 : i32
    %c0_i32_2 = arith.constant 0 : i32
    return %c0_i32, %c0_i32_0, %c0_i32_1 : i32, i32, i32
  }
  func.func @transform_11(%arg0: i32) -> (i32, i32, i32) {
    %c0_i32 = arith.constant 0 : i32
    %c0_i32_0 = arith.constant 0 : i32
    %c0_i32_1 = arith.constant 0 : i32
    %c0_i32_2 = arith.constant 0 : i32
    return %c0_i32, %c0_i32_0, %c0_i32_1 : i32, i32, i32
  }
  func.func @transform_12(%arg0: i32) -> (i32, i32, i32) {
    %c0_i32 = arith.constant 0 : i32
    %c0_i32_0 = arith.constant 0 : i32
    %c0_i32_1 = arith.constant 0 : i32
    %c0_i32_2 = arith.constant 0 : i32
    return %c0_i32, %c0_i32_0, %c0_i32_1 : i32, i32, i32
  }
  func.func @transform_13(%arg0: i32) -> (i32, i32, i32) {
    %c0_i32 = arith.constant 0 : i32
    %c0_i32_0 = arith.constant 0 : i32
    %c0_i32_1 = arith.constant 0 : i32
    %c0_i32_2 = arith.constant 0 : i32
    return %c0_i32, %c0_i32_0, %c0_i32_1 : i32, i32, i32
  }
  func.func @transform_14(%arg0: i32) -> (i32, i32, i32) {
    %c0_i32 = arith.constant 0 : i32
    %c0_i32_0 = arith.constant 0 : i32
    %c0_i32_1 = arith.constant 0 : i32
    %c0_i32_2 = arith.constant 0 : i32
    return %c0_i32, %c0_i32_0, %c0_i32_1 : i32, i32, i32
  }
  func.func @transform_15(%arg0: i32) -> (i32, i32, i32) {
    %c0_i32 = arith.constant 0 : i32
    %c0_i32_0 = arith.constant 0 : i32
    %c0_i32_1 = arith.constant 0 : i32
    %c0_i32_2 = arith.constant 0 : i32
    return %c0_i32, %c0_i32_0, %c0_i32_1 : i32, i32, i32
  }
  func.func @transform_16(%arg0: i32) -> (i32, i32) {
    %c0_i32 = arith.constant 0 : i32
    %c0_i32_0 = arith.constant 0 : i32
    %c0_i32_1 = arith.constant 0 : i32
    return %c0_i32, %c0_i32_0 : i32, i32
  }
  func.func @transform_17(%arg0: i32) -> (i32, i32) {
    %c0_i32 = arith.constant 0 : i32
    %c0_i32_0 = arith.constant 0 : i32
    %c0_i32_1 = arith.constant 0 : i32
    return %c0_i32, %c0_i32_0 : i32, i32
  }
  func.func @transform_18(%arg0: i32) -> (i32, i32) {
    %c0_i32 = arith.constant 0 : i32
    %c0_i32_0 = arith.constant 0 : i32
    return %arg0, %c0_i32 : i32, i32
  }
}

</mosaic_0001>

<bundles_post_ra>
// kernel: transformer_forward.1
= control target key start
LH: loop header
LB: loop body
LE: loop exit
PB: predicated region body
PF: predicated region fallthrough
CT: control target
= control target key end

     0   :  { %vm72_vm0 = vcmask 64512   ;;  %vm130_vm1 = vcmask 15360   ;;  %s6787_s28 = smov 126   ;;  %s6788_s30 = smov 122   ;;  %vm681_vm2 = vcmask 31744   ;;  %vm684_vm3 = vcmask 48128   ;;  %s8245_s4 = inlined_call_operand.vmem [shape: f32[2,8,16], index: 4, kind: input, shape index: {}]   ;;  %s8246_s0 = inlined_call_operand.vmem [shape: f32[2,8,8], index: 0, kind: input, shape index: {}]   ;;  %s8247_s1 = inlined_call_operand.vmem [shape: f32[8,8], index: 1, kind: input, shape index: {}]   ;;  %s8248_s2 = inlined_call_operand.vmem [shape: f32[2,8,8], index: 2, kind: input, shape index: {}]   ;;  %s8249_s5 = inlined_call_operand.vmem [shape: f32[2,1,16], index: 5, kind: input, shape index: {}]   ;;  %s8250_s3 = inlined_call_operand.vmem [shape: f32[2,1,8], index: 3, kind: input, shape index: {}]   ;;  %s8251_s7 = inlined_call_operand.vmem [shape: f32[2,1,8], index: 7, kind: input, shape index: {}]   ;;  %s8252_s6 = inlined_call_operand.vmem [shape: f32[2,8,8], index: 6, kind: input, shape index: {}]   ;;  %s8253_s8 = inlined_call_operand.vmem [shape: f32[2,1,8], index: 8, kind: input, shape index: {}]   ;;  %s8254_s9 = inlined_call_operand.vmem [shape: f32[2,1,8], index: 9, kind: input, shape index: {}]   ;;  %s8255_s12 = inlined_call_operand.vmem [shape: bf16[2,8,2048], index: 12, kind: input, shape index: {}]   ;;  %s8256_s14 = inlined_call_operand.vmem [shape: bf16[2,2048,8], index: 14, kind: input, shape index: {}]   ;;  %s8257_s15 = inlined_call_operand.vmem [shape: f32[2,1,8], index: 15, kind: input, shape index: {}]   ;;  %s8258_s13 = inlined_call_operand.vmem [shape: f32[2,1,2048], index: 13, kind: input, shape index: {}]   ;;  %s8259_s10 = inlined_call_operand.vmem [shape: f32[2,1,8], index: 10, kind: input, shape index: {}]   ;;  %s8260_s11 = inlined_call_operand.vmem [shape: f32[2,1,8], index: 11, kind: input, shape index: {}]   ;;  %s8261_s16 = inlined_call_operand.vmem [shape: f32[8,1], index: 16, kind: input, shape index: {}]   ;;  %s8262_s17 = inlined_call_operand.<no memory space> [shape: f32[1,1], index: 17, kind: input, shape index: {}]   ;;  %s8263_s18 = inlined_call_operand.vmem [shape: f32[2,1], index: 18, kind: output, shape index: {}]  }
   0x1   :  { %8276 = sst [smem:[#allocation3_spill]] %s8245_s4  ;;  %v102_v3 = vld [vmem:[%s8248_s2] sm:$0xff]  ;;  %s6789_s4 = smov 118   ;;  %vm874_vm5 = vcmask 1043456  }
   0x2   :  { %8277 = sst [smem:[#allocation4_spill]] %s8246_s0  ;;  %122 = vmatpush.msra.mxu1 %v102_v3  ;;  %v6687_v7 = vld [vmem:[%s8249_s5] ss:$0 sm:$0xff]  ;;  %s6790_s19 = smov 120  }
   0x3   :  { %8278 = sst [smem:[#allocation5_spill]] %s8247_s1  ;;  %v6688_v8 = vld [vmem:[%s8250_s3] ss:$0 sm:$0xff]  ;;  %s8275_s0 = smov 116  }
   0x4   :  { %8279 = sst [smem:[#allocation6_spill]] %s8257_s15  ;;  %s8271_s21 = smov 2  }
   0x5   :  { %s8280_s29 = sld [smem:[#allocation3_spill]]  ;;  %s8269_s22 = smov 4  }
   0x6   :  { %s8281_s15 = sld [smem:[#allocation4_spill]]  ;;  %s8267_s1 = smov 6  }
   0x7   :  { %s8282_s20 = sld [smem:[#allocation5_spill]] }
   0xb   :  { %v67_v0 = vld [vmem:[%s8280_s29] sm:$0xff] }
   0xc   :  { %v62_v1 = vld [vmem:[%s8281_s15] sm:$0xff]  ;;  %94 = vmatpush.msra.mxu0 %v67_v0  ;;  %v63_v5 = vld [vmem:[%s8281_s15 + $0x8] sm:$0xff]  ;;  %s6786_s15 = smov 124  }
   0xd   :  { %v64_v2 = vld [vmem:[%s8282_s20] sm:$0xff]  ;;  %s8273_s20 = smov 114  }
   0xe   :  { %v6904_v4 = vadd.f32 %v64_v2, %v62_v1  ;;  %v6913_v6 = vadd.f32 %v64_v2, %v63_v5 }
  0x10   :  { %4998 = vmatmul.msk.f32.vlgmr.msra.gmra.mxu0 %vm72_vm0, %v6904_v4  ;;  %5000 = vmatmul.msk.f32.vlgmr.msra.gmra.mxu1 %vm72_vm0, %v6904_v4 }
  0x18   :  { %4999 = vmatmul.msk.f32.gmra.mxu0 %vm72_vm0, %v6913_v6  ;;  %5001 = vmatmul.msk.f32.gmra.mxu1 %vm72_vm0, %v6913_v6 }
  0x8d   :  { %v96_v9 = vpop.f32.mrf.mxu0  ;;  %v124_v10 = vpop.f32.mrf.mxu1 }
  0x8e   :  { %v6925_v11 = vadd.f32 %v6687_v7, %v96_v9  ;;  %v125_v12 = vadd.f32 %v6688_v8, %v124_v10 }
  0x90   :  { %393 = vrot.lane.b32.xlu1 %v6925_v11, %s6786_s15  ;;  %261 = vrot.lane.b32.xlu0 %v6925_v11, %s6787_s28 }
  0x91   :  { %5002 = vmatpush.xpose.msk.msra.mxu2 %vm130_vm1, %v6925_v11  ;;  %391 = vrot.lane.b32.xlu2 %v125_v12, %s6786_s15 }
  0x94   :  { %5003 = vmatmul.msk.f32.vlgmr.msra.gmra.mxu2 %vm130_vm1, %v125_v12 }
  0x95   :  { %v99_v13 = vpop.f32.mrf.mxu0  ;;  %v127_v14 = vpop.f32.mrf.mxu1 }
  0x96   :  { %v6935_v15 = vadd.f32 %v6687_v7, %v99_v13  ;;  %v128_v16 = vadd.f32 %v6688_v8, %v127_v14 }
  0x98   :  { %5004 = vmatpush.xpose.msk.msra.mxu3 %vm130_vm1, %v6935_v15  ;;  %289 = vrot.lane.b32.xlu1 %v6935_v15, %s6787_s28  ;;  %v6662_v58 = vpack.i.bf16 %v6935_v15, %v6925_v11 }
  0x99   :  { %259 = vrot.lane.b32.xlu0 %v125_v12, %s6787_s28  ;;  %287 = vrot.lane.b32.xlu2 %v128_v16, %s6787_s28 }
  0x9b   :  { %5005 = vmatmul.msk.f32.vlgmr.msra.gmra.mxu3 %vm130_vm1, %v128_v16 }
  0xa0   :  { %525 = vrot.lane.b32.xlu1 %v6925_v11, %s6788_s30 }
  0xa1   :  { %421 = vrot.lane.b32.xlu0 %v6935_v15, %s6786_s15  ;;  %419 = vrot.lane.b32.xlu2 %v128_v16, %s6786_s15 }
  0xa8   :  { %553 = vrot.lane.b32.xlu1 %v6935_v15, %s6788_s30 }
  0xa9   :  { %523 = vrot.lane.b32.xlu0 %v125_v12, %s6788_s30  ;;  %551 = vrot.lane.b32.xlu2 %v128_v16, %s6788_s30 }
  0xeb   :  { %v392_v17 = vpop.permute.xlu2 %391 }
  0xf3   :  { %v288_v20 = vpop.permute.xlu2 %287 }
  0xfb   :  { %v420_v25 = vpop.permute.xlu2 %419 }
 0x102   :  { %v394_v18 = vpop.permute.xlu1 %393  ;;  %v262_v19 = vpop.permute.xlu0 %261 }
 0x103   :  { %5008 = vmatpush.xpose.msk.msrb.mxu0 %vm130_vm1, %v262_v19  ;;  %v552_v31 = vpop.permute.xlu2 %551 }
 0x107   :  { %5014 = vmatpush.xpose.msk.msra.mxu0 %vm130_vm1, %v394_v18 }
 0x10a   :  { %v290_v21 = vpop.permute.xlu1 %289 }
 0x10b   :  { %v260_v22 = vpop.permute.xlu0 %259  ;;  %5010 = vmatpush.xpose.msk.msrb.mxu1 %vm130_vm1, %v290_v21 }
 0x10c   :  { %5009 = vmatmul.msk.f32.vlgmr.msrb.gmra.mxu0 %vm130_vm1, %v260_v22 }
 0x10e   :  { %5011 = vmatmul.msk.f32.vlgmr.msrb.gmra.mxu1 %vm130_vm1, %v288_v20 }
 0x112   :  { %v526_v23 = vpop.permute.xlu1 %525 }
 0x113   :  { %v422_v24 = vpop.permute.xlu0 %421  ;;  %5020 = vmatpush.xpose.msk.msrb.mxu0 %vm130_vm1, %v526_v23 }
 0x114   :  { %5015 = vmatmul.msk.f32.vlgmr.msra.gmra.mxu0 %vm130_vm1, %v392_v17  ;;  %5016 = vmatpush.xpose.msk.msra.mxu1 %vm130_vm1, %v422_v24 }
 0x117   :  { %v154_v26 = vpop.f32.mrf.mxu2  ;;  %5017 = vmatmul.msk.f32.vlgmr.msra.gmra.mxu1 %vm130_vm1, %v420_v25 }
 0x118   :  { %v183_v27 = vmul.f32 0.70710677, %v154_v26 }
 0x11a   :  { %v554_v28 = vpop.permute.xlu1 %553  ;;  %v185_v29 = vsel %vm72_vm0, %v183_v27, -inf }
 0x11b   :  { %v524_v30 = vpop.permute.xlu0 %523  ;;  %186 = vmax.xlane.f32.xlu0 %v185_v29  ;;  %5022 = vmatpush.xpose.msk.msrb.mxu1 %vm130_vm1, %v554_v28 }
 0x11c   :  { %5021 = vmatmul.msk.f32.vlgmr.msrb.gmra.mxu0 %vm130_vm1, %v524_v30 }
 0x11e   :  { %v180_v32 = vpop.f32.mrf.mxu3 }
 0x11f   :  { %v184_v33 = vmul.f32 0.70710677, %v180_v32  ;;  %5023 = vmatmul.msk.f32.vlgmr.msrb.gmra.mxu1 %vm130_vm1, %v552_v31 }
 0x121   :  { %v188_v34 = vsel %vm72_vm0, %v184_v33, -inf }
 0x122   :  { %189 = vmax.xlane.f32.xlu1 %v188_v34 }
 0x189   :  { %v284_v35 = vpop.f32.mrf.mxu0 }
 0x18a   :  { %v315_v36 = vmul.f32 0.70710677, %v284_v35 }
 0x18b   :  { %v312_v37 = vpop.f32.mrf.mxu1 }
 0x18c   :  { %v317_v38 = vsel %vm72_vm0, %v315_v36, -inf  ;;  %v316_v39 = vmul.f32 0.70710677, %v312_v37 }
 0x18d   :  { %318 = vmax.xlane.f32.xlu2 %v317_v38 }
 0x18e   :  { %v187_v40 = vpop.xlane.xlu0 %186  ;;  %v320_v45 = vsel %vm72_vm0, %v316_v39, -inf }
 0x18f   :  { %v191_v41 = vsub.f32 %v183_v27, %v187_v40 }
 0x191   :  { %v416_v42 = vpop.f32.mrf.mxu0  ;;  %v193_v43 = vmul.f32 1.442695, %v191_v41 }
 0x192   :  { %v447_v44 = vmul.f32 0.70710677, %v416_v42 }
 0x193   :  { %6704 = vpow2.f32 %v193_v43 }
 0x194   :  { %v444_v46 = vpop.f32.mrf.mxu1  ;;  %v449_v47 = vsel %vm72_vm0, %v447_v44, -inf }
 0x195   :  { %v448_v48 = vmul.f32 0.70710677, %v444_v46  ;;  %321 = vmax.xlane.f32.xlu2 %v320_v45  ;;  %450 = vmax.xlane.f32.xlu0 %v449_v47  ;;  %v190_v59 = vpop.xlane.xlu1 %189 }
 0x196   :  { %v192_v60 = vsub.f32 %v184_v33, %v190_v59 }
 0x197   :  { %v452_v49 = vsel %vm72_vm0, %v448_v48, -inf }
 0x198   :  { %453 = vmax.xlane.f32.xlu1 %v452_v49  ;;  %v195_v61 = vmul.f32 1.442695, %v192_v60 }
 0x199   :  { %v548_v50 = vpop.f32.mrf.mxu0  ;;  %v6971_v52 = vpop.eup %6704 }
 0x19a   :  { %v579_v51 = vmul.f32 0.70710677, %v548_v50  ;;  %v197_v57 = vsel %vm72_vm0, %v6971_v52, 0.0  ;;  %6706 = vpow2.f32 %v195_v61 }
 0x19c   :  { %v576_v53 = vpop.f32.mrf.mxu1  ;;  %v581_v54 = vsel %vm72_vm0, %v579_v51, -inf }
 0x19d   :  { %v580_v55 = vmul.f32 0.70710677, %v576_v53  ;;  %582 = vmax.xlane.f32.xlu2 %v581_v54 }
 0x19f   :  { %v584_v56 = vsel %vm72_vm0, %v580_v55, -inf }
 0x1a0   :  { %585 = vmax.xlane.f32.xlu0 %v584_v56  ;;  %198 = vadd.xlane.f32.xlu1 %v197_v57  ;;  %v6984_v62 = vpop.eup %6706 }
 0x1a1   :  { %v200_v63 = vsel %vm72_vm0, %v6984_v62, 0.0 }
 0x1b5   :  { %6663 = vrot.lane.b32.xlu2 %v6662_v58, %s6789_s4 }
 0x1b9   :  { %6658 = vrot.lane.b32.xlu1 %v6662_v58, %s6790_s19 }
 0x1c1   :  { %6668 = vrot.lane.b32.xlu1 %v6662_v58, %s8275_s0 }
 0x1c9   :  { %603 = vrot.lane.b32.xlu1 %v6925_v11, %s8273_s20 }
 0x1de   :  { %201 = vadd.xlane.f32.xlu2 %v200_v63 }
 0x200   :  { %v319_v0 = vpop.xlane.xlu2 %318 }
 0x201   :  { %v323_v1 = vsub.f32 %v315_v36, %v319_v0 }
 0x203   :  { %v325_v2 = vmul.f32 1.442695, %v323_v1 }
 0x205   :  { %6708 = vpow2.f32 %v325_v2 }
 0x208   :  { %v322_v3 = vpop.xlane.xlu2 %321  ;;  %v451_v5 = vpop.xlane.xlu0 %450 }
 0x209   :  { %v324_v7 = vsub.f32 %v316_v39, %v322_v3  ;;  %v455_v8 = vsub.f32 %v447_v44, %v451_v5 }
 0x20b   :  { %v6988_v9 = vpop.eup %6708  ;;  %v327_v10 = vmul.f32 1.442695, %v324_v7  ;;  %v457_v11 = vmul.f32 1.442695, %v455_v8  ;;  %v454_v12 = vpop.xlane.xlu1 %453 }
 0x20c   :  { %v456_v13 = vsub.f32 %v448_v48, %v454_v12  ;;  %v329_v14 = vsel %vm72_vm0, %v6988_v9, 0.0 }
 0x20d   :  { %6710 = vpow2.f32 %v327_v10  ;;  %330 = vadd.xlane.f32.xlu0 %v329_v14 }
 0x20e   :  { %6712 = vpow2.f32 %v457_v11  ;;  %v459_v16 = vmul.f32 1.442695, %v456_v13  ;;  %v687_v13 = vld [vmem:[%s8252_s6] sm:$0xff] }
 0x20f   :  { %713 = vmatpush.msra.mxu0 %v687_v13 }
 0x210   :  { %v583_v17 = vpop.xlane.xlu2 %582  ;;  %6714 = vpow2.f32 %v459_v16 }
 0x211   :  { %v587_v20 = vsub.f32 %v579_v51, %v583_v17 }
 0x213   :  { %v6711_v18 = vpop.eup %6710  ;;  %v589_v23 = vmul.f32 1.442695, %v587_v20  ;;  %v586_v24 = vpop.xlane.xlu0 %585 }
 0x214   :  { %v6992_v19 = vpop.eup %6712  ;;  %v332_v21 = vsel %vm72_vm0, %v6711_v18, 0.0  ;;  %v588_v26 = vsub.f32 %v580_v55, %v586_v24  ;;  %v199_v28 = vpop.xlane.xlu1 %198 }
 0x215   :  { %333 = vadd.xlane.f32.xlu2 %v332_v21  ;;  %v461_v22 = vsel %vm72_vm0, %v6992_v19, 0.0  ;;  %6716 = vpow2.f32 %v589_v23 }
 0x216   :  { %462 = vadd.xlane.f32.xlu0 %v461_v22  ;;  %v6715_v25 = vpop.eup %6714  ;;  %v591_v29 = vmul.f32 1.442695, %v588_v26  ;;  %6718 = vrcp.f32 %v199_v28 }
 0x217   :  { %v464_v27 = vsel %vm72_vm0, %v6715_v25, 0.0 }
 0x218   :  { %6720 = vpow2.f32 %v591_v29  ;;  %v6664_v34 = vpop.permute.xlu2 %6663 }
 0x219   :  { %v6666_v40 = vunpack.i.h.bf16 %v6664_v34  ;;  %v6665_v41 = vunpack.i.l.bf16 %v6664_v34 }
 0x21b   :  { %v6717_v30 = vpop.eup %6716 }
 0x21c   :  { %v593_v31 = vsel %vm72_vm0, %v6717_v30, 0.0  ;;  %v6719_v32 = vpop.eup %6718 }
 0x21d   :  { %v205_v39 = vmul.f32 %v6719_v32, %v6971_v52 }
 0x21e   :  { %465 = vadd.xlane.f32.xlu0 %v464_v27  ;;  %v6721_v33 = vpop.eup %6720  ;;  %v6689_v27 = vld [vmem:[%s8251_s7] ss:$0 sm:$0xff] }
 0x21f   :  { %v596_v38 = vsel %vm72_vm0, %v6721_v33, 0.0 }
 0x226   :  { %594 = vadd.xlane.f32.xlu0 %v593_v31 }
 0x22b   :  { %v6659_v35 = vpop.permute.xlu1 %6658 }
 0x22c   :  { %v6660_v36 = vunpack.i.l.bf16 %v6659_v35  ;;  %v6661_v37 = vunpack.i.h.bf16 %v6659_v35 }
 0x22d   :  { %629 = vrot.lane.b32.xlu2 %v6935_v15, %s8273_s20 }
 0x22e   :  { %597 = vadd.xlane.f32.xlu0 %v596_v38  ;;  %228 = vmatpush.msrb.mxu2 %v6660_v36  ;;  %v6796_v36 = vmov 8.0  }
 0x22f   :  { %254 = vmatpush.msrb.mxu3 %v6661_v37  ;;  %5006 = vmatmul.msk.f32.vlgmr.msrb.gmra.mxu2 %vm72_vm0, %v205_v39 }
 0x230   :  { %360 = vmatpush.msra.mxu2 %v6665_v41 }
 0x231   :  { %386 = vmatpush.msra.mxu3 %v6666_v40 }
 0x233   :  { %v6669_v42 = vpop.permute.xlu1 %6668 }
 0x234   :  { %v6670_v43 = vunpack.i.l.bf16 %v6669_v42  ;;  %v6671_v46 = vunpack.i.h.bf16 %v6669_v42 }
 0x236   :  { %492 = vmatpush.msrb.mxu2 %v6670_v43 }
 0x23b   :  { %v604_v52 = vpop.permute.xlu1 %603 }
 0x251   :  { %v202_v44 = vpop.xlane.xlu2 %201 }
 0x252   :  { %6722 = vrcp.f32 %v202_v44 }
 0x258   :  { %v6723_v45 = vpop.eup %6722 }
 0x259   :  { %v206_v15 = vmul.f32 %v6723_v45, %v6984_v62 }
 0x25b   :  { %5007 = vmatmul.msk.f32.vlgmr.msrb.gmra.mxu3 %vm72_vm0, %v206_v15 }
 0x25c   :  { %518 = vmatpush.msrb.mxu3 %v6671_v46 }
 0x280   :  { %v331_v47 = vpop.xlane.xlu0 %330 }
 0x281   :  { %6724 = vrcp.f32 %v331_v47 }
 0x287   :  { %v6725_v48 = vpop.eup %6724 }
 0x288   :  { %v337_v49 = vmul.f32 %v6725_v48, %v6988_v9  ;;  %v334_v50 = vpop.xlane.xlu2 %333 }
 0x289   :  { %6726 = vrcp.f32 %v334_v50  ;;  %v463_v51 = vpop.xlane.xlu0 %462 }
 0x28a   :  { %6728 = vrcp.f32 %v463_v51  ;;  %5012 = vmatmul.msk.f32.vlgmr.msra.gmra.mxu2 %vm72_vm0, %v337_v49 }
 0x28b   :  { %624 = vmatpush.msra.mxu2 %v604_v52 }
 0x28f   :  { %v6727_v53 = vpop.eup %6726 }
 0x290   :  { %v6729_v54 = vpop.eup %6728  ;;  %v338_v55 = vmul.f32 %v6727_v53, %v6711_v18  ;;  %v630_v56 = vpop.permute.xlu2 %629  ;;  %v787_v53 = vld [vmem:[%s8255_s12] sm:$0xff] }
 0x291   :  { %v469_v57 = vmul.f32 %v6729_v54, %v6992_v19  ;;  %v466_v58 = vpop.xlane.xlu0 %465  ;;  %v788_v54 = vld [vmem:[%s8255_s12 + $0x8] sm:$0xff] }
 0x292   :  { %6730 = vrcp.f32 %v466_v58  ;;  %5013 = vmatmul.msk.f32.vlgmr.msra.gmra.mxu3 %vm72_vm0, %v338_v55  ;;  %v839_v55 = vunpack.c.l.b16 %v787_v53  ;;  %v842_v58 = vunpack.c.h.b16 %v788_v54 }
 0x293   :  { %5018 = vmatmul.msk.f32.vlgmr.msrb.gmra.mxu2 %vm72_vm0, %v469_v57  ;;  %650 = vmatpush.msra.mxu3 %v630_v56  ;;  %v840_v56 = vunpack.c.h.b16 %v787_v53  ;;  %v841_v57 = vunpack.c.l.b16 %v788_v54 }
 0x298   :  { %v6731_v59 = vpop.eup %6730 }
 0x299   :  { %v470_v60 = vmul.f32 %v6731_v59, %v6715_v25  ;;  %v595_v61 = vpop.xlane.xlu0 %594 }
 0x29a   :  { %6732 = vrcp.f32 %v595_v61  ;;  %v856_v61 = vpack.c.b16 %v840_v56, %v840_v56 }
 0x29b   :  { %5019 = vmatmul.msk.f32.vlgmr.msrb.gmra.mxu3 %vm72_vm0, %v470_v60  ;;  %v855_v60 = vpack.c.b16 %v839_v55, %v839_v55 }
 0x2a0   :  { %v6733_v62 = vpop.eup %6732 }
 0x2a1   :  { %v601_v63 = vmul.f32 %v6733_v62, %v6717_v30  ;;  %v598_v0 = vpop.xlane.xlu0 %597  ;;  %v857_v62 = vpack.c.b16 %v841_v57, %v841_v57 }
 0x2a2   :  { %6734 = vrcp.f32 %v598_v0  ;;  %v876_v0 = vsel %vm874_vm5, %v855_v60, 0 }
 0x2a3   :  { %5024 = vmatmul.msk.f32.vlgmr.msra.gmra.mxu2 %vm72_vm0, %v601_v63  ;;  %6736 = vrcp.f32 %v6796_v36  ;;  %v858_v63 = vpack.c.b16 %v842_v58, %v842_v58  ;;  %930 = vmatpush.bf16.msra.mxu1 %v876_v0  ;;  %v793_v58 = vld [vmem:[%s8255_s12 + $0x30] sm:$0xff] }
 0x2a4   :  { %v851_v60 = vunpack.c.l.b16 %v793_v58 }
 0x2a6   :  { %v867_v0 = vpack.c.b16 %v851_v60, %v851_v60  ;;  %v6442_v60 = vld [vmem:[%s8256_s14 + $0x1a0] sm:$0xff] }
 0x2a8   :  { %v6735_v1 = vpop.eup %6734 }
 0x2a9   :  { %v602_v2 = vmul.f32 %v6735_v1, %v6721_v33  ;;  %v6737_v37 = vpop.eup %6736  ;;  %v879_v1 = vsel %vm874_vm5, %v856_v61, 0  ;;  %v852_v61 = vunpack.c.h.b16 %v793_v58  ;;  %v6449_v58 = vld [vmem:[%s8256_s14 + $0x1d8] sm:$0xff] }
 0x2aa   :  { %v732_v38 = vmul.f32 8.0, %v6737_v37  ;;  %vm736_vm4 = vweird.f32 %v6737_v37  ;;  %944 = vmatpush.bf16.msrb.mxu2 %v879_v1 }
 0x2ab   :  { %5025 = vmatmul.msk.f32.vlgmr.msra.gmra.mxu3 %vm72_vm0, %v602_v2  ;;  %v882_v2 = vsel %vm874_vm5, %v857_v62, 0  ;;  %v868_v1 = vpack.c.b16 %v852_v61, %v852_v61  ;;  %v6424_v61 = vld [vmem:[%s8256_s14 + $0x110] sm:$0xff] }
 0x2ac   :  { %v733_v39 = vsub.f32 1.0, %v732_v38  ;;  %958 = vmatpush.bf16.msrb.mxu3 %v882_v2 }
 0x2ae   :  { %v734_v40 = vmul.f32 %v6737_v37, %v733_v39  ;;  %v792_v39 = vld [vmem:[%s8255_s12 + $0x28] sm:$0xff] }
 0x2b0   :  { %v735_v41 = vadd.f32 %v6737_v37, %v734_v40 }
 0x2b2   :  { %v230_v3 = vpop.f32.mrf.mxu2  ;;  %v7038_v42 = vsel %vm736_vm4, %v6737_v37, %v735_v41  ;;  %v791_v37 = vld [vmem:[%s8255_s12 + $0x20] sm:$0xff] }
 0x2b3   :  { %v847_v41 = vunpack.c.l.b16 %v791_v37 }
 0x2de   :  { %v256_v7 = vpop.f32.mrf.mxu3 }
 0x30d   :  { %v362_v5 = vpop.f32.mrf.mxu2 }
 0x30e   :  { %657 = vrot.lane.b32.xlu0 %v362_v5, %s8271_s21  ;;  %v885_v5 = vsel %vm874_vm5, %v858_v63, 0 }
 0x30f   :  { %972 = vmatpush.bf16.msrb.mxu0 %v885_v5  ;;  %v912_v5 = vsel %vm874_vm5, %v867_v0, 0  ;;  %v6441_v0 = vld [vmem:[%s8256_s14 + $0x198] sm:$0xff] }
 0x315   :  { %v388_v9 = vpop.f32.mrf.mxu3 }
 0x316   :  { %v494_v8 = vpop.f32.mrf.mxu2 }
 0x317   :  { %665 = vrot.lane.b32.xlu1 %v494_v8, %s8269_s22 }
 0x31e   :  { %v520_v10 = vpop.f32.mrf.mxu3 }
 0x31f   :  { %659 = vrot.lane.b32.xlu1 %v388_v9, %s8271_s21  ;;  %v789_v9 = vld [vmem:[%s8255_s12 + $0x10] sm:$0xff] }
 0x320   :  { %v844_v13 = vunpack.c.h.b16 %v789_v9 }
 0x326   :  { %v626_v11 = vpop.f32.mrf.mxu2 }
 0x327   :  { %673 = vrot.lane.b32.xlu2 %v626_v11, %s8267_s1 }
 0x32e   :  { %v652_v12 = vpop.f32.mrf.mxu3 }
 0x32f   :  { %667 = vrot.lane.b32.xlu2 %v520_v10, %s8269_s22  ;;  %675 = vrot.lane.b32.xlu1 %v652_v12, %s8267_s1  ;;  %v790_v10 = vld [vmem:[%s8255_s12 + $0x18] sm:$0xff]  ;;  %v843_v12 = vunpack.c.l.b16 %v789_v9  ;;  %s8283_s1 = sld [smem:[#allocation6_spill]] }
 0x380   :  { %v658_v14 = vpop.permute.xlu0 %657 }
 0x381   :  { %v679_v16 = vsel %vm130_vm1, %v230_v3, %v658_v14  ;;  %v674_v18 = vpop.permute.xlu2 %673  ;;  %v845_v14 = vunpack.c.l.b16 %v790_v10 }
 0x389   :  { %v666_v17 = vpop.permute.xlu1 %665  ;;  %v668_v23 = vpop.permute.xlu2 %667 }
 0x38a   :  { %v682_v19 = vsel %vm681_vm2, %v679_v16, %v666_v17  ;;  %v846_v16 = vunpack.c.h.b16 %v790_v10  ;;  %v6397_v10 = vld [vmem:[%s8256_s14 + $0x38] sm:$0xff] }
 0x38b   :  { %v685_v20 = vsel %vm684_vm3, %v682_v19, %v674_v18  ;;  %v859_v18 = vpack.c.b16 %v843_v12, %v843_v12  ;;  %v860_v19 = vpack.c.b16 %v844_v13, %v844_v13  ;;  %v6405_v12 = vld [vmem:[%s8256_s14 + $0x78] sm:$0xff] }
 0x38c   :  { %5026 = vmatmul.msk.f32.vlgmr.msra.gmra.mxu0 %vm72_vm0, %v685_v20  ;;  %v861_v20 = vpack.c.b16 %v845_v14, %v845_v14  ;;  %v6413_v13 = vld [vmem:[%s8256_s14 + $0xb8] sm:$0xff]  ;;  %v6396_v14 = vld [vmem:[%s8256_s14 + $0x30] sm:$0xff] }
 0x391   :  { %v660_v21 = vpop.permute.xlu1 %659 }
 0x392   :  { %v680_v22 = vsel %vm130_vm1, %v256_v7, %v660_v21 }
 0x393   :  { %v683_v25 = vsel %vm681_vm2, %v680_v22, %v668_v23  ;;  %v862_v22 = vpack.c.b16 %v846_v16, %v846_v16  ;;  %v888_v23 = vsel %vm874_vm5, %v859_v18, 0  ;;  %v6420_v16 = vld [vmem:[%s8256_s14 + $0xf0] sm:$0xff] }
 0x394   :  { %986 = vmatpush.bf16.msrb.mxu1 %v888_v23  ;;  %v6412_v18 = vld [vmem:[%s8256_s14 + $0xb0] sm:$0xff]  ;;  %v6394_v23 = vld [vmem:[%s8256_s14 + $0x20] sm:$0xff] }
 0x3a1   :  { %v676_v24 = vpop.permute.xlu1 %675 }
 0x3a2   :  { %v686_v26 = vsel %vm684_vm3, %v683_v25, %v676_v24  ;;  %v891_v24 = vsel %vm874_vm5, %v860_v19, 0  ;;  %v894_v25 = vsel %vm874_vm5, %v861_v20, 0  ;;  %v6395_v19 = vld [vmem:[%s8256_s14 + $0x28] sm:$0xff] }
 0x3a3   :  { %5027 = vmatmul.msk.f32.gmra.mxu0 %vm72_vm0, %v686_v26  ;;  %1000 = vmatpush.bf16.msra.mxu2 %v891_v24  ;;  %v897_v26 = vsel %vm874_vm5, %v862_v22, 0  ;;  %v6419_v20 = vld [vmem:[%s8256_s14 + $0xe8] sm:$0xff]  ;;  %v6418_v24 = vld [vmem:[%s8256_s14 + $0xe0] sm:$0xff] }
 0x3a4   :  { %1014 = vmatpush.bf16.msra.mxu3 %v894_v25  ;;  %1028 = vmatpush.bf16.msra.mxu0 %v897_v26  ;;  %v6411_v22 = vld [vmem:[%s8256_s14 + $0xa8] sm:$0xff]  ;;  %v6402_v25 = vld [vmem:[%s8256_s14 + $0x60] sm:$0xff] }
 0x3a5   :  { %v6410_v26 = vld [vmem:[%s8256_s14 + $0xa0] sm:$0xff] }
 0x409   :  { %v715_v28 = vpop.f32.mrf.mxu0 }
 0x40a   :  { %v716_v29 = vadd.f32 %v6689_v27, %v715_v28 }
 0x40c   :  { %v721_v30 = vadd.f32 %v716_v29, %v6904_v4 }
 0x40e   :  { %v725_v31 = vsel %vm72_vm0, %v721_v30, 0.0 }
 0x40f   :  { %726 = vadd.xlane.f32.xlu0 %v725_v31 }
 0x420   :  { %v718_v32 = vpop.f32.mrf.mxu0 }
 0x421   :  { %v719_v33 = vadd.f32 %v6689_v27, %v718_v32 }
 0x423   :  { %v722_v34 = vadd.f32 %v719_v33, %v6913_v6 }
 0x425   :  { %v728_v35 = vsel %vm72_vm0, %v722_v34, 0.0 }
 0x426   :  { %729 = vadd.xlane.f32.xlu2 %v728_v35  ;;  %v6690_v35 = vld [vmem:[%s8253_s8] ss:$0 sm:$0xff] }
 0x482   :  { %v727_v4 = vpop.xlane.xlu0 %726 }
 0x483   :  { %v738_v43 = vmul.f32 %v7038_v42, %v727_v4  ;;  %v848_v4 = vunpack.c.h.b16 %v791_v37  ;;  %v6399_v37 = vld [vmem:[%s8256_s14 + $0x48] sm:$0xff] }
 0x485   :  { %v7041_v44 = vsub.f32 %v721_v30, %v738_v43  ;;  %v6691_v43 = vld [vmem:[%s8254_s9] ss:$0 sm:$0xff] }
 0x487   :  { %v742_v6 = vmul.f32 %v7041_v44, %v7041_v44 }
 0x489   :  { %v744_v45 = vsel %vm72_vm0, %v742_v6, 0.0 }
 0x48a   :  { %745 = vadd.xlane.f32.xlu1 %v744_v45  ;;  %v849_v45 = vunpack.c.l.b16 %v792_v39 }
 0x499   :  { %v730_v15 = vpop.xlane.xlu2 %729 }
 0x49a   :  { %v739_v46 = vmul.f32 %v7038_v42, %v730_v15  ;;  %v850_v15 = vunpack.c.h.b16 %v792_v39  ;;  %v6390_v39 = vld [vmem:[%s8256_s14] sm:$0xff] }
 0x49c   :  { %v7047_v47 = vsub.f32 %v722_v34, %v739_v46  ;;  %v866_v53 = vpack.c.b16 %v850_v15, %v850_v15  ;;  %v6428_v15 = vld [vmem:[%s8256_s14 + $0x130] sm:$0xff] }
 0x49e   :  { %v743_v48 = vmul.f32 %v7047_v47, %v7047_v47  ;;  %v909_v57 = vsel %vm874_vm5, %v866_v53, 0  ;;  %v6451_v53 = vld [vmem:[%s8256_s14 + $0x1e8] sm:$0xff] }
 0x4a0   :  { %v747_v49 = vsel %vm72_vm0, %v743_v48, 0.0  ;;  %v863_v48 = vpack.c.b16 %v847_v41, %v847_v41  ;;  %v6429_v41 = vld [vmem:[%s8256_s14 + $0x138] sm:$0xff] }
 0x4a1   :  { %748 = vadd.xlane.f32.xlu0 %v747_v49  ;;  %v864_v49 = vpack.c.b16 %v848_v4, %v848_v4  ;;  %v6453_v4 = vld [vmem:[%s8256_s14 + $0x1f8] sm:$0xff] }
 0x4a2   :  { %v900_v55 = vsel %vm874_vm5, %v863_v48, 0  ;;  %v6436_v48 = vld [vmem:[%s8256_s14 + $0x170] sm:$0xff] }
 0x4a3   :  { %v903_v56 = vsel %vm874_vm5, %v864_v49, 0  ;;  %v6444_v49 = vld [vmem:[%s8256_s14 + $0x1b0] sm:$0xff] }
 0x4fd   :  { %v746_v50 = vpop.xlane.xlu1 %745 }
 0x4fe   :  { %v750_v51 = vmul.f32 %v746_v50, %v7038_v42 }
 0x500   :  { %v752_v52 = vadd.f32 1e-05, %v750_v51 }
 0x502   :  { %6738 = vrsqrt.f32 %v752_v52  ;;  %vm760_vm7 = vweird.f32 %v752_v52 }
 0x508   :  { %v6739_v59 = vpop.eup %6738 }
 0x509   :  { %v755_v3 = vmul.f32 %v6739_v59, %v752_v52  ;;  %vm761_vm6 = vweird.f32 %v6739_v59  ;;  %v865_v52 = vpack.c.b16 %v849_v45, %v849_v45  ;;  %v6445_v45 = vld [vmem:[%s8256_s14 + $0x1b8] sm:$0xff] }
 0x50a   :  { %vm762_vm8 = vmor %vm760_vm7, %vm761_vm6  ;;  %vm2550_vm7 = vcmask 1041409  }
 0x50b   :  { %v756_v7 = vmul.f32 %v6739_v59, %v755_v3 }
 0x50d   :  { %v757_v21 = vmul.f32 0.5, %v756_v7  ;;  %v915_v7 = vsel %vm874_vm5, %v868_v1, 0  ;;  %v6423_v1 = vld [vmem:[%s8256_s14 + $0x108] sm:$0xff] }
 0x50f   :  { %v758_v27 = vsub.f32 1.5, %v757_v21  ;;  %v6403_v21 = vld [vmem:[%s8256_s14 + $0x68] sm:$0xff] }
 0x511   :  { %v759_v29 = vmul.f32 %v6739_v59, %v758_v27  ;;  %v6393_v27 = vld [vmem:[%s8256_s14 + $0x18] sm:$0xff] }
 0x513   :  { %v763_v32 = vsel %vm762_vm8, %v6739_v59, %v759_v29  ;;  %v794_v59 = vld [vmem:[%s8255_s12 + $0x38] sm:$0xff]  ;;  %vm2628_vm8 = vcmask 57344  }
 0x514   :  { %v749_v8 = vpop.xlane.xlu0 %748  ;;  %v774_v36 = vmul.f32 %v763_v32, %v7041_v44  ;;  %v853_v62 = vunpack.c.l.b16 %v794_v59  ;;  %v854_v63 = vunpack.c.h.b16 %v794_v59  ;;  %v6401_v29 = vld [vmem:[%s8256_s14 + $0x58] sm:$0xff]  ;;  %v6416_v32 = vld [vmem:[%s8256_s14 + $0xd0] sm:$0xff]  ;;  %v6434_v59 = vld [vmem:[%s8256_s14 + $0x160] sm:$0xff] }
 0x515   :  { %v751_v11 = vmul.f32 %v749_v8, %v7038_v42 }
 0x516   :  { %v779_v6 = vmul.f32 %v6690_v35, %v774_v36  ;;  %v869_v2 = vpack.c.b16 %v853_v62, %v853_v62  ;;  %v870_v3 = vpack.c.b16 %v854_v63, %v854_v63  ;;  %v6415_v36 = vld [vmem:[%s8256_s14 + $0xc8] sm:$0xff]  ;;  %v6448_v62 = vld [vmem:[%s8256_s14 + $0x1d0] sm:$0xff]  ;;  %v6433_v63 = vld [vmem:[%s8256_s14 + $0x158] sm:$0xff] }
 0x517   :  { %v753_v17 = vadd.f32 1e-05, %v751_v11  ;;  %v6421_v11 = vld [vmem:[%s8256_s14 + $0xf8] sm:$0xff] }
 0x518   :  { %v7088_v50 = vadd.f32 %v6691_v43, %v779_v6  ;;  %v918_v8 = vsel %vm874_vm5, %v869_v2, 0  ;;  %v921_v9 = vsel %vm874_vm5, %v870_v3, 0  ;;  %v6406_v6 = vld [vmem:[%s8256_s14 + $0x80] sm:$0xff]  ;;  %v6447_v2 = vld [vmem:[%s8256_s14 + $0x1c8] sm:$0xff]  ;;  %v6432_v3 = vld [vmem:[%s8256_s14 + $0x150] sm:$0xff] }
 0x519   :  { %6740 = vrsqrt.f32 %v753_v17  ;;  %vm770_vm10 = vweird.f32 %v753_v17 }
 0x51f   :  { %v6741_v28 = vpop.eup %6740 }
 0x520   :  { %v765_v30 = vmul.f32 %v6741_v28, %v753_v17  ;;  %vm771_vm9 = vweird.f32 %v6741_v28  ;;  %v6404_v17 = vld [vmem:[%s8256_s14 + $0x70] sm:$0xff] }
 0x521   :  { %vm772_vm11 = vmor %vm770_vm10, %vm771_vm9  ;;  %vm3180_vm9 = vcmask 64519  }
 0x522   :  { %v766_v31 = vmul.f32 %v6741_v28, %v765_v30  ;;  %v6409_v30 = vld [vmem:[%s8256_s14 + $0x98] sm:$0xff] }
 0x524   :  { %v767_v33 = vmul.f32 0.5, %v766_v31  ;;  %v6392_v31 = vld [vmem:[%s8256_s14 + $0x10] sm:$0xff] }
 0x526   :  { %v768_v34 = vsub.f32 1.5, %v767_v33  ;;  %v6400_v33 = vld [vmem:[%s8256_s14 + $0x50] sm:$0xff] }
 0x528   :  { %v769_v38 = vmul.f32 %v6741_v28, %v768_v34  ;;  %v6408_v34 = vld [vmem:[%s8256_s14 + $0x90] sm:$0xff] }
 0x52a   :  { %v773_v40 = vsel %vm772_vm11, %v6741_v28, %v769_v38  ;;  %v6417_v28 = vld [vmem:[%s8256_s14 + $0xd8] sm:$0xff]  ;;  %v6407_v38 = vld [vmem:[%s8256_s14 + $0x88] sm:$0xff] }
 0x52b   :  { %v775_v44 = vmul.f32 %v773_v40, %v7047_v47  ;;  %v906_v47 = vsel %vm874_vm5, %v865_v52, 0  ;;  %v6414_v40 = vld [vmem:[%s8256_s14 + $0xc0] sm:$0xff]  ;;  %v6427_v52 = vld [vmem:[%s8256_s14 + $0x128] sm:$0xff] }
 0x52d   :  { %v780_v46 = vmul.f32 %v6690_v35, %v775_v44  ;;  %v6391_v35 = vld [vmem:[%s8256_s14 + $0x8] sm:$0xff]  ;;  %v6437_v44 = vld [vmem:[%s8256_s14 + $0x178] sm:$0xff] }
 0x52f   :  { %v7090_v51 = vadd.f32 %v6691_v43, %v780_v46  ;;  %v6398_v43 = vld [vmem:[%s8256_s14 + $0x40] sm:$0xff]  ;;  %v6452_v46 = vld [vmem:[%s8256_s14 + $0x1f0] sm:$0xff] }
 0x531   :  { %v7094_v54 = vpack.c.bf16 %v7090_v51, %v7088_v50 }
 0x533   :  { %5028 = vmatmul.msk.bf16.vlgmr.msra.gmra.mxu1 %vm72_vm0, %v7094_v54  ;;  %5029 = vmatmul.msk.bf16.vlgmr.msrb.gmra.mxu2 %vm72_vm0, %v7094_v54 }
 0x534   :  { %5030 = vmatmul.msk.bf16.vlgmr.msrb.gmra.mxu3 %vm72_vm0, %v7094_v54  ;;  %5031 = vmatmul.msk.bf16.vlgmr.msrb.gmra.mxu0 %vm72_vm0, %v7094_v54 }
 0x535   :  { %1042 = vmatpush.bf16.msra.mxu1 %v900_v55  ;;  %1056 = vmatpush.bf16.msrb.mxu2 %v903_v56  ;;  %v6450_v55 = vld [vmem:[%s8256_s14 + $0x1e0] sm:$0xff]  ;;  %v6435_v56 = vld [vmem:[%s8256_s14 + $0x168] sm:$0xff] }
 0x536   :  { %1070 = vmatpush.bf16.msrb.mxu3 %v906_v47  ;;  %1084 = vmatpush.bf16.msrb.mxu0 %v909_v57  ;;  %v6443_v47 = vld [vmem:[%s8256_s14 + $0x1a8] sm:$0xff]  ;;  %v6425_v57 = vld [vmem:[%s8256_s14 + $0x118] sm:$0xff] }
 0x543   :  { %5032 = vmatmul.msk.bf16.vlgmr.msrb.gmra.mxu1 %vm72_vm0, %v7094_v54  ;;  %5033 = vmatmul.msk.bf16.vlgmr.msra.gmra.mxu2 %vm72_vm0, %v7094_v54 }
 0x544   :  { %5034 = vmatmul.msk.bf16.vlgmr.msra.gmra.mxu3 %vm72_vm0, %v7094_v54  ;;  %5035 = vmatmul.msk.bf16.vlgmr.msra.gmra.mxu0 %vm72_vm0, %v7094_v54 }
 0x545   :  { %1098 = vmatpush.bf16.msrb.mxu1 %v912_v5  ;;  %1112 = vmatpush.bf16.msra.mxu2 %v915_v7  ;;  %v6440_v5 = vld [vmem:[%s8256_s14 + $0x190] sm:$0xff]  ;;  %v6422_v7 = vld [vmem:[%s8256_s14 + $0x100] sm:$0xff] }
 0x546   :  { %1126 = vmatpush.bf16.msra.mxu3 %v918_v8  ;;  %1140 = vmatpush.bf16.msra.mxu0 %v921_v9  ;;  %v6446_v8 = vld [vmem:[%s8256_s14 + $0x1c0] sm:$0xff]  ;;  %v6431_v9 = vld [vmem:[%s8256_s14 + $0x148] sm:$0xff] }
 0x553   :  { %5036 = vmatmul.msk.bf16.vlgmr.msra.gmra.mxu1 %vm72_vm0, %v7094_v54  ;;  %5037 = vmatmul.msk.bf16.vlgmr.msrb.gmra.mxu2 %vm72_vm0, %v7094_v54 }
 0x554   :  { %5038 = vmatmul.msk.bf16.vlgmr.msrb.gmra.mxu3 %vm72_vm0, %v7094_v54  ;;  %5039 = vmatmul.msk.bf16.vlgmr.msrb.gmra.mxu0 %vm72_vm0, %v7094_v54 }
 0x555   :  { %2223 = vmatpush.bf16.msra.mxu1 %v6397_v10  ;;  %2265 = vmatpush.bf16.msrb.mxu0 %v6421_v11  ;;  %v6439_v10 = vld [vmem:[%s8256_s14 + $0x188] sm:$0xff]  ;;  %v6430_v11 = vld [vmem:[%s8256_s14 + $0x140] sm:$0xff] }
 0x556   :  { %2237 = vmatpush.bf16.msrb.mxu2 %v6405_v12  ;;  %2251 = vmatpush.bf16.msrb.mxu3 %v6413_v13  ;;  %v6438_v12 = vld [vmem:[%s8256_s14 + $0x180] sm:$0xff] }
 0x557   :  { %v7337_v13 = vld [vmem:[%s8258_s13] sm:$0xff] }
 0x559   :  { %2224 = vmatpush.bf16.msra.mxu1 %v6396_v14  ;;  %2266 = vmatpush.bf16.msrb.mxu0 %v6420_v16 }
 0x55a   :  { %2238 = vmatpush.bf16.msrb.mxu2 %v6404_v17  ;;  %2252 = vmatpush.bf16.msrb.mxu3 %v6412_v18  ;;  %v799_v17 = vperm.slane %v7337_v13, 0  ;;  %v802_v18 = vperm.slane %v7337_v13, 3 }
 0x55d   :  { %2225 = vmatpush.bf16.msra.mxu1 %v6395_v19  ;;  %2267 = vmatpush.bf16.msrb.mxu0 %v6419_v20 }
 0x55e   :  { %2239 = vmatpush.bf16.msrb.mxu2 %v6403_v21  ;;  %2253 = vmatpush.bf16.msrb.mxu3 %v6411_v22 }
 0x561   :  { %2226 = vmatpush.bf16.msra.mxu1 %v6394_v23  ;;  %2268 = vmatpush.bf16.msrb.mxu0 %v6418_v24  ;;  %v800_v24 = vperm.slane %v7337_v13, 1 }
 0x562   :  { %2240 = vmatpush.bf16.msrb.mxu2 %v6402_v25  ;;  %2254 = vmatpush.bf16.msrb.mxu3 %v6410_v26 }
 0x563   :  { %5040 = vmatmul.msk.bf16.vlgmr.msrb.gmra.mxu1 %vm72_vm0, %v7094_v54  ;;  %5041 = vmatmul.msk.bf16.vlgmr.msra.gmra.mxu2 %vm72_vm0, %v7094_v54 }
 0x564   :  { %5042 = vmatmul.msk.bf16.vlgmr.msra.gmra.mxu3 %vm72_vm0, %v7094_v54  ;;  %5043 = vmatmul.msk.bf16.vlgmr.msra.gmra.mxu0 %vm72_vm0, %v7094_v54  ;;  %v6426_v54 = vld [vmem:[%s8256_s14 + $0x120] sm:$0xff] }
 0x565   :  { %2227 = vmatpush.bf16.msra.mxu1 %v6393_v27  ;;  %2269 = vmatpush.bf16.msrb.mxu0 %v6417_v28  ;;  %v801_v27 = vperm.slane %v7337_v13, 2 }
 0x566   :  { %2241 = vmatpush.bf16.msrb.mxu2 %v6401_v29  ;;  %2255 = vmatpush.bf16.msrb.mxu3 %v6409_v30 }
 0x569   :  { %2228 = vmatpush.bf16.msra.mxu1 %v6392_v31  ;;  %2270 = vmatpush.bf16.msrb.mxu0 %v6416_v32 }
 0x56a   :  { %2242 = vmatpush.bf16.msrb.mxu2 %v6400_v33  ;;  %2256 = vmatpush.bf16.msrb.mxu3 %v6408_v34  ;;  %v6461_v33 = vld [vmem:[%s8256_s14 + $0x238] sm:$0xff] }
 0x56d   :  { %2229 = vmatpush.bf16.msra.mxu1 %v6391_v35  ;;  %2271 = vmatpush.bf16.msrb.mxu0 %v6415_v36  ;;  %v6485_v36 = vld [vmem:[%s8256_s14 + $0x2f8] sm:$0xff] }
 0x56e   :  { %2243 = vmatpush.bf16.msrb.mxu2 %v6399_v37  ;;  %2257 = vmatpush.bf16.msrb.mxu3 %v6407_v38 }
 0x571   :  { %2230 = vmatpush.bf16.msra.mxu1 %v6390_v39  ;;  %2272 = vmatpush.bf16.msrb.mxu0 %v6414_v40 }
 0x572   :  { %2244 = vmatpush.bf16.msrb.mxu2 %v6398_v43  ;;  %2258 = vmatpush.bf16.msrb.mxu3 %v6406_v6  ;;  %v6460_v6 = vld [vmem:[%s8256_s14 + $0x230] sm:$0xff] }
 0x575   :  { %2279 = vmatpush.bf16.msrb.mxu1 %v6429_v41  ;;  %2321 = vmatpush.bf16.msra.mxu0 %v6453_v4 }
 0x576   :  { %2293 = vmatpush.bf16.msra.mxu2 %v6437_v44  ;;  %2307 = vmatpush.bf16.msra.mxu3 %v6445_v45 }
 0x579   :  { %2280 = vmatpush.bf16.msrb.mxu1 %v6428_v15  ;;  %2322 = vmatpush.bf16.msra.mxu0 %v6452_v46  ;;  %v6484_v46 = vld [vmem:[%s8256_s14 + $0x2f0] sm:$0xff] }
 0x57a   :  { %2294 = vmatpush.bf16.msra.mxu2 %v6436_v48  ;;  %2308 = vmatpush.bf16.msra.mxu3 %v6444_v49 }
 0x57d   :  { %2281 = vmatpush.bf16.msrb.mxu1 %v6427_v52  ;;  %2323 = vmatpush.bf16.msra.mxu0 %v6451_v53  ;;  %v6469_v52 = vld [vmem:[%s8256_s14 + $0x278] sm:$0xff] }
 0x57e   :  { %2295 = vmatpush.bf16.msra.mxu2 %v6435_v56  ;;  %2309 = vmatpush.bf16.msra.mxu3 %v6443_v47  ;;  %v806_v47 = vperm.slane %v7337_v13, 7 }
 0x581   :  { %2282 = vmatpush.bf16.msrb.mxu1 %v6426_v54  ;;  %2324 = vmatpush.bf16.msra.mxu0 %v6450_v55  ;;  %v803_v54 = vperm.slane %v7337_v13, 4  ;;  %v6477_v55 = vld [vmem:[%s8256_s14 + $0x2b8] sm:$0xff] }
 0x582   :  { %2296 = vmatpush.bf16.msra.mxu2 %v6434_v59  ;;  %2310 = vmatpush.bf16.msra.mxu3 %v6442_v60  ;;  %v6468_v60 = vld [vmem:[%s8256_s14 + $0x270] sm:$0xff] }
 0x585   :  { %2283 = vmatpush.bf16.msrb.mxu1 %v6425_v57  ;;  %2325 = vmatpush.bf16.msra.mxu0 %v6449_v58  ;;  %v6459_v57 = vld [vmem:[%s8256_s14 + $0x228] sm:$0xff] }
 0x586   :  { %2297 = vmatpush.bf16.msra.mxu2 %v6433_v63  ;;  %2311 = vmatpush.bf16.msra.mxu3 %v6441_v0  ;;  %v6483_v58 = vld [vmem:[%s8256_s14 + $0x2e8] sm:$0xff]  ;;  %v6476_v63 = vld [vmem:[%s8256_s14 + $0x2b0] sm:$0xff] }
 0x589   :  { %2284 = vmatpush.bf16.msrb.mxu1 %v6424_v61  ;;  %2326 = vmatpush.bf16.msra.mxu0 %v6448_v62 }
 0x58a   :  { %2298 = vmatpush.bf16.msra.mxu2 %v6432_v3  ;;  %2312 = vmatpush.bf16.msra.mxu3 %v6440_v5  ;;  %v804_v3 = vperm.slane %v7337_v13, 5 }
 0x58d   :  { %2285 = vmatpush.bf16.msrb.mxu1 %v6423_v1  ;;  %2327 = vmatpush.bf16.msra.mxu0 %v6447_v2  ;;  %v6458_v2 = vld [vmem:[%s8256_s14 + $0x220] sm:$0xff] }
 0x58e   :  { %2299 = vmatpush.bf16.msra.mxu2 %v6431_v9  ;;  %2313 = vmatpush.bf16.msra.mxu3 %v6439_v10  ;;  %v805_v9 = vperm.slane %v7337_v13, 6  ;;  %v6457_v13 = vld [vmem:[%s8256_s14 + $0x218] sm:$0xff] }
 0x591   :  { %2286 = vmatpush.bf16.msrb.mxu1 %v6422_v7  ;;  %2328 = vmatpush.bf16.msra.mxu0 %v6446_v8  ;;  %v6482_v8 = vld [vmem:[%s8256_s14 + $0x2e0] sm:$0xff] }
 0x592   :  { %2300 = vmatpush.bf16.msra.mxu2 %v6430_v11  ;;  %2314 = vmatpush.bf16.msra.mxu3 %v6438_v12  ;;  %v6467_v11 = vld [vmem:[%s8256_s14 + $0x268] sm:$0xff] }
 0x5b0   :  { %v932_v14 = vpop.f32.mrf.mxu1 }
 0x5b1   :  { %v974_v16 = vpop.f32.mrf.mxu0  ;;  %v933_v20 = vadd.f32 %v932_v14, %v799_v17 }
 0x5b2   :  { %v975_v22 = vadd.f32 %v974_v16, %v802_v18  ;;  %v6475_v16 = vld [vmem:[%s8256_s14 + $0x2a8] sm:$0xff] }
 0x5b3   :  { %v1147_v29 = vmax.f32 %v933_v20, 0.0 }
 0x5b4   :  { %v1150_v31 = vmax.f32 %v975_v22, 0.0 }
 0x5b6   :  { %v946_v19 = vpop.f32.mrf.mxu2 }
 0x5b7   :  { %v960_v21 = vpop.f32.mrf.mxu3  ;;  %v947_v34 = vadd.f32 %v946_v19, %v800_v24 }
 0x5b8   :  { %v934_v23 = vpop.f32.mrf.mxu1  ;;  %v961_v37 = vadd.f32 %v960_v21, %v801_v27  ;;  %v6481_v21 = vld [vmem:[%s8256_s14 + $0x2d8] sm:$0xff] }
 0x5b9   :  { %v935_v25 = vadd.f32 %v934_v23, %v799_v17  ;;  %v976_v26 = vpop.f32.mrf.mxu0  ;;  %v1148_v44 = vmax.f32 %v947_v34, 0.0 }
 0x5ba   :  { %v977_v28 = vadd.f32 %v976_v26, %v802_v18  ;;  %v1149_v48 = vmax.f32 %v961_v37, 0.0 }
 0x5bb   :  { %v1163_v30 = vmax.f32 %v935_v25, 0.0  ;;  %v6466_v25 = vld [vmem:[%s8256_s14 + $0x260] sm:$0xff] }
 0x5bc   :  { %v1166_v32 = vmax.f32 %v977_v28, 0.0  ;;  %v6474_v28 = vld [vmem:[%s8256_s14 + $0x2a0] sm:$0xff] }
 0x5bd   :  { %v1179_v35 = vpack.c.bf16 %v1163_v30, %v1147_v29  ;;  %v7404_v30 = vld [vmem:[%s8258_s13 + $0x8] sm:$0xff] }
 0x5be   :  { %v1182_v38 = vpack.c.bf16 %v1166_v32, %v1150_v31  ;;  %v948_v39 = vpop.f32.mrf.mxu2  ;;  %v6456_v32 = vld [vmem:[%s8256_s14 + $0x210] sm:$0xff] }
 0x5bf   :  { %v949_v40 = vadd.f32 %v948_v39, %v800_v24  ;;  %v962_v41 = vpop.f32.mrf.mxu3  ;;  %2231 = vmatmul.bf16.vlgmr.msra.gmra.mxu1 %v1179_v35  ;;  %v6465_v39 = vld [vmem:[%s8256_s14 + $0x258] sm:$0xff] }
 0x5c0   :  { %v963_v4 = vadd.f32 %v962_v41, %v801_v27  ;;  %2273 = vmatmul.bf16.vlgmr.msrb.gmra.mxu0 %v1182_v38  ;;  %2335 = vmatpush.bf16.msra.mxu1 %v6461_v33  ;;  %v988_v43 = vpop.f32.mrf.mxu1  ;;  %v807_v41 = vperm.slane %v7404_v30, 0 }
 0x5c1   :  { %v1164_v45 = vmax.f32 %v949_v40, 0.0  ;;  %2377 = vmatpush.bf16.msrb.mxu0 %v6485_v36  ;;  %v1030_v15 = vpop.f32.mrf.mxu0  ;;  %v989_v61 = vadd.f32 %v988_v43, %v803_v54  ;;  %v6480_v36 = vld [vmem:[%s8256_s14 + $0x2d0] sm:$0xff] }
 0x5c2   :  { %v1165_v49 = vmax.f32 %v963_v4, 0.0  ;;  %v1031_v0 = vadd.f32 %v1030_v15, %v806_v47  ;;  %v6473_v4 = vld [vmem:[%s8256_s14 + $0x298] sm:$0xff] }
 0x5c3   :  { %v1180_v53 = vpack.c.bf16 %v1164_v45, %v1148_v44  ;;  %v1151_v12 = vmax.f32 %v989_v61, 0.0  ;;  %v6455_v44 = vld [vmem:[%s8256_s14 + $0x208] sm:$0xff] }
 0x5c4   :  { %v1181_v56 = vpack.c.bf16 %v1165_v49, %v1149_v48  ;;  %2336 = vmatpush.bf16.msra.mxu1 %v6460_v6  ;;  %v1154_v17 = vmax.f32 %v1031_v0, 0.0  ;;  %v810_v6 = vperm.slane %v7404_v30, 3  ;;  %v6479_v45 = vld [vmem:[%s8256_s14 + $0x2c8] sm:$0xff] }
 0x5c5   :  { %2378 = vmatpush.bf16.msrb.mxu0 %v6484_v46  ;;  %2245 = vmatmul.bf16.vlgmr.msrb.gmra.mxu2 %v1180_v53  ;;  %v6464_v46 = vld [vmem:[%s8256_s14 + $0x250] sm:$0xff] }
 0x5c6   :  { %2259 = vmatmul.bf16.vlgmr.msrb.gmra.mxu3 %v1181_v56  ;;  %2349 = vmatpush.bf16.msrb.mxu2 %v6469_v52  ;;  %v1002_v59 = vpop.f32.mrf.mxu2  ;;  %v6472_v52 = vld [vmem:[%s8256_s14 + $0x290] sm:$0xff]  ;;  %v808_v56 = vperm.slane %v7404_v30, 1 }
 0x5c7   :  { %2363 = vmatpush.bf16.msrb.mxu3 %v6477_v55  ;;  %v1016_v62 = vpop.f32.mrf.mxu3  ;;  %v1003_v19 = vadd.f32 %v1002_v59, %v804_v3  ;;  %v6454_v55 = vld [vmem:[%s8256_s14 + $0x200] sm:$0xff]  ;;  %v6493_v59 = vld [vmem:[%s8256_s14 + $0x338] sm:$0xff] }
 0x5c8   :  { %2337 = vmatpush.bf16.msra.mxu1 %v6459_v57  ;;  %v990_v1 = vpop.f32.mrf.mxu1  ;;  %v1017_v22 = vadd.f32 %v1016_v62, %v805_v9  ;;  %v6517_v62 = vld [vmem:[%s8256_s14 + $0x3f8] sm:$0xff] }
 0x5c9   :  { %2379 = vmatpush.bf16.msrb.mxu0 %v6483_v58  ;;  %v991_v5 = vadd.f32 %v990_v1, %v803_v54  ;;  %v1032_v7 = vpop.f32.mrf.mxu0  ;;  %v1152_v33 = vmax.f32 %v1003_v19, 0.0  ;;  %v6478_v58 = vld [vmem:[%s8256_s14 + $0x2c0] sm:$0xff]  ;;  %v6501_v19 = vld [vmem:[%s8256_s14 + $0x378] sm:$0xff] }
 0x5ca   :  { %v1033_v10 = vadd.f32 %v1032_v7, %v806_v47  ;;  %2350 = vmatpush.bf16.msrb.mxu2 %v6468_v60  ;;  %v1153_v37 = vmax.f32 %v1017_v22, 0.0  ;;  %v809_v60 = vperm.slane %v7404_v30, 2 }
 0x5cb   :  { %v1167_v14 = vmax.f32 %v991_v5, 0.0  ;;  %2364 = vmatpush.bf16.msrb.mxu3 %v6476_v63  ;;  %v6463_v63 = vld [vmem:[%s8256_s14 + $0x248] sm:$0xff] }
 0x5cc   :  { %v1170_v18 = vmax.f32 %v1033_v10, 0.0  ;;  %2338 = vmatpush.bf16.msra.mxu1 %v6458_v2  ;;  %v6471_v2 = vld [vmem:[%s8256_s14 + $0x288] sm:$0xff] }
 0x5cd   :  { %v1183_v20 = vpack.c.bf16 %v1167_v14, %v1151_v12  ;;  %2380 = vmatpush.bf16.msrb.mxu0 %v6482_v8  ;;  %v6516_v14 = vld [vmem:[%s8256_s14 + $0x3f0] sm:$0xff] }
 0x5ce   :  { %v1186_v23 = vpack.c.bf16 %v1170_v18, %v1154_v17  ;;  %2351 = vmatpush.bf16.msrb.mxu2 %v6467_v11  ;;  %v1004_v24 = vpop.f32.mrf.mxu2 }
 0x5cf   :  { %2365 = vmatpush.bf16.msrb.mxu3 %v6475_v16  ;;  %v1005_v26 = vadd.f32 %v1004_v24, %v804_v3  ;;  %v1018_v27 = vpop.f32.mrf.mxu3  ;;  %2287 = vmatmul.bf16.vlgmr.msrb.gmra.mxu1 %v1183_v20  ;;  %v6462_v16 = vld [vmem:[%s8256_s14 + $0x240] sm:$0xff]  ;;  %v6491_v24 = vld [vmem:[%s8256_s14 + $0x328] sm:$0xff] }
 0x5d0   :  { %v1019_v29 = vadd.f32 %v1018_v27, %v805_v9  ;;  %2329 = vmatmul.bf16.vlgmr.msra.gmra.mxu0 %v1186_v23  ;;  %2339 = vmatpush.bf16.msra.mxu1 %v6457_v13  ;;  %v1044_v31 = vpop.f32.mrf.mxu1  ;;  %v6492_v9 = vld [vmem:[%s8256_s14 + $0x330] sm:$0xff]  ;;  %v6470_v13 = vld [vmem:[%s8256_s14 + $0x280] sm:$0xff]  ;;  %v6515_v27 = vld [vmem:[%s8256_s14 + $0x3e8] sm:$0xff] }
 0x5d1   :  { %v1168_v34 = vmax.f32 %v1005_v26, 0.0  ;;  %2381 = vmatpush.bf16.msrb.mxu0 %v6481_v21  ;;  %v1086_v35 = vpop.f32.mrf.mxu0  ;;  %v1045_v48 = vadd.f32 %v1044_v31, %v807_v41  ;;  %v6509_v21 = vld [vmem:[%s8256_s14 + $0x3b8] sm:$0xff] }
 0x5d2   :  { %v1169_v38 = vmax.f32 %v1019_v29, 0.0  ;;  %2352 = vmatpush.bf16.msrb.mxu2 %v6466_v25  ;;  %v1087_v53 = vadd.f32 %v1086_v35, %v810_v6  ;;  %v6500_v29 = vld [vmem:[%s8256_s14 + $0x370] sm:$0xff] }
 0x5d3   :  { %v1184_v40 = vpack.c.bf16 %v1168_v34, %v1152_v33  ;;  %2366 = vmatpush.bf16.msrb.mxu3 %v6474_v28  ;;  %v1155_v0 = vmax.f32 %v1045_v48, 0.0  ;;  %v6490_v34 = vld [vmem:[%s8256_s14 + $0x320] sm:$0xff]  ;;  %v811_v48 = vperm.slane %v7404_v30, 4 }
 0x5d4   :  { %v1185_v43 = vpack.c.bf16 %v1169_v38, %v1153_v37  ;;  %2340 = vmatpush.bf16.msra.mxu1 %v6456_v32  ;;  %v1158_v3 = vmax.f32 %v1087_v53, 0.0  ;;  %v6508_v32 = vld [vmem:[%s8256_s14 + $0x3b0] sm:$0xff]  ;;  %v6499_v37 = vld [vmem:[%s8256_s14 + $0x368] sm:$0xff]  ;;  %v814_v53 = vperm.slane %v7404_v30, 7 }
 0x5d5   :  { %2382 = vmatpush.bf16.msrb.mxu0 %v6480_v36  ;;  %2301 = vmatmul.bf16.vlgmr.msra.gmra.mxu2 %v1184_v40  ;;  %v6514_v36 = vld [vmem:[%s8256_s14 + $0x3e0] sm:$0xff]  ;;  %v6507_v38 = vld [vmem:[%s8256_s14 + $0x3a8] sm:$0xff]  ;;  %v6513_v40 = vld [vmem:[%s8256_s14 + $0x3d8] sm:$0xff] }
 0x5d6   :  { %2315 = vmatmul.bf16.vlgmr.msra.gmra.mxu3 %v1185_v43  ;;  %2353 = vmatpush.bf16.msrb.mxu2 %v6465_v39  ;;  %v1058_v15 = vpop.f32.mrf.mxu2  ;;  %v6489_v39 = vld [vmem:[%s8256_s14 + $0x318] sm:$0xff] }
 0x5d7   :  { %2367 = vmatpush.bf16.msrb.mxu3 %v6473_v4  ;;  %v1072_v49 = vpop.f32.mrf.mxu3  ;;  %v1059_v7 = vadd.f32 %v1058_v15, %v808_v56  ;;  %v6498_v4 = vld [vmem:[%s8256_s14 + $0x360] sm:$0xff] }
 0x5d8   :  { %2341 = vmatpush.bf16.msra.mxu1 %v6455_v44  ;;  %v1046_v54 = vpop.f32.mrf.mxu1  ;;  %v1073_v10 = vadd.f32 %v1072_v49, %v809_v60  ;;  %v6488_v44 = vld [vmem:[%s8256_s14 + $0x310] sm:$0xff] }
 0x5d9   :  { %2383 = vmatpush.bf16.msrb.mxu0 %v6479_v45  ;;  %v1047_v47 = vadd.f32 %v1046_v54, %v807_v41  ;;  %v1088_v57 = vpop.f32.mrf.mxu0  ;;  %v1156_v22 = vmax.f32 %v1059_v7, 0.0  ;;  %v6512_v45 = vld [vmem:[%s8256_s14 + $0x3d0] sm:$0xff]  ;;  %v6487_v54 = vld [vmem:[%s8256_s14 + $0x308] sm:$0xff] }
 0x5da   :  { %v1089_v61 = vadd.f32 %v1088_v57, %v810_v6  ;;  %2354 = vmatpush.bf16.msrb.mxu2 %v6464_v46  ;;  %v1157_v25 = vmax.f32 %v1073_v10, 0.0  ;;  %v6506_v6 = vld [vmem:[%s8256_s14 + $0x3a0] sm:$0xff]  ;;  %v6497_v46 = vld [vmem:[%s8256_s14 + $0x358] sm:$0xff]  ;;  %v6496_v57 = vld [vmem:[%s8256_s14 + $0x350] sm:$0xff] }
 0x5db   :  { %v1171_v1 = vmax.f32 %v1047_v47, 0.0  ;;  %2368 = vmatpush.bf16.msrb.mxu3 %v6472_v52  ;;  %v6505_v52 = vld [vmem:[%s8256_s14 + $0x398] sm:$0xff] }
 0x5dc   :  { %v1174_v5 = vmax.f32 %v1089_v61, 0.0  ;;  %2342 = vmatpush.bf16.msra.mxu1 %v6454_v55 }
 0x5dd   :  { %v1187_v8 = vpack.c.bf16 %v1171_v1, %v1155_v0  ;;  %2384 = vmatpush.bf16.msrb.mxu0 %v6478_v58 }
 0x5de   :  { %v1190_v11 = vpack.c.bf16 %v1174_v5, %v1158_v3  ;;  %2355 = vmatpush.bf16.msrb.mxu2 %v6463_v63  ;;  %v1060_v12 = vpop.f32.mrf.mxu2  ;;  %v812_v63 = vperm.slane %v7404_v30, 5  ;;  %v5556_v3 = vld [vmem:[%s8280_s29 + $0x8] sm:$0xff]  ;;  %v813_v5 = vperm.slane %v7404_v30, 6 }
 0x5df   :  { %2369 = vmatpush.bf16.msrb.mxu3 %v6471_v2  ;;  %v1061_v17 = vadd.f32 %v1060_v12, %v808_v56  ;;  %v1074_v18 = vpop.f32.mrf.mxu3  ;;  %2343 = vmatmul.bf16.vlgmr.msra.gmra.mxu1 %v1187_v8  ;;  %v6511_v56 = vld [vmem:[%s8256_s14 + $0x3c8] sm:$0xff]  ;;  %v6510_v2 = vld [vmem:[%s8256_s14 + $0x3c0] sm:$0xff] }
 0x5e0   :  { %2391 = vmatpush.bf16.msrb.mxu1 %v6493_v59  ;;  %v1075_v20 = vadd.f32 %v1074_v18, %v809_v60  ;;  %2385 = vmatmul.bf16.vlgmr.msrb.gmra.mxu0 %v1190_v11  ;;  %v1100_v33 = vpop.f32.mrf.mxu1  ;;  %v6504_v59 = vld [vmem:[%s8256_s14 + $0x390] sm:$0xff]  ;;  %v6495_v8 = vld [vmem:[%s8256_s14 + $0x348] sm:$0xff] }
 0x5e1   :  { %2433 = vmatpush.bf16.msra.mxu0 %v6517_v62  ;;  %v1172_v23 = vmax.f32 %v1061_v17, 0.0  ;;  %v1142_v35 = vpop.f32.mrf.mxu0  ;;  %v1101_v58 = vadd.f32 %v1100_v33, %v811_v48  ;;  %v6486_v62 = vld [vmem:[%s8256_s14 + $0x300] sm:$0xff]  ;;  %v6503_v11 = vld [vmem:[%s8256_s14 + $0x388] sm:$0xff] }
 0x5e2   :  { %v1173_v26 = vmax.f32 %v1075_v20, 0.0  ;;  %2356 = vmatpush.bf16.msrb.mxu2 %v6462_v16  ;;  %v1143_v60 = vadd.f32 %v1142_v35, %v814_v53  ;;  %v6502_v20 = vld [vmem:[%s8256_s14 + $0x380] sm:$0xff] }
 0x5e3   :  { %v1188_v28 = vpack.c.bf16 %v1172_v23, %v1156_v22  ;;  %2370 = vmatpush.bf16.msrb.mxu3 %v6470_v13  ;;  %v6494_v13 = vld [vmem:[%s8256_s14 + $0x340] sm:$0xff] }
 0x5e4   :  { %2392 = vmatpush.bf16.msrb.mxu1 %v6492_v9  ;;  %v1189_v31 = vpack.c.bf16 %v1173_v26, %v1157_v25  ;;  %v1159_v9 = vmax.f32 %v1101_v58, 0.0  ;;  %v1162_v12 = vmax.f32 %v1143_v60, 0.0 }
 0x5e5   :  { %2434 = vmatpush.bf16.msra.mxu0 %v6516_v14  ;;  %2357 = vmatmul.bf16.vlgmr.msrb.gmra.mxu2 %v1188_v28 }
 0x5e6   :  { %2405 = vmatpush.bf16.msra.mxu2 %v6501_v19  ;;  %2371 = vmatmul.bf16.vlgmr.msrb.gmra.mxu3 %v1189_v31  ;;  %v1114_v41 = vpop.f32.mrf.mxu2 }
 0x5e7   :  { %2419 = vmatpush.bf16.msra.mxu3 %v6509_v21  ;;  %v1128_v43 = vpop.f32.mrf.mxu3  ;;  %v1115_v16 = vadd.f32 %v1114_v41, %v812_v63  ;;  %v5560_v21 = vld [vmem:[%s8248_s2 + $0x8] sm:$0xff] }
 0x5e8   :  { %2393 = vmatpush.bf16.msrb.mxu1 %v6491_v24  ;;  %v1102_v15 = vpop.f32.mrf.mxu1  ;;  %v1129_v30 = vadd.f32 %v1128_v43, %v813_v5 }
 0x5e9   :  { %2435 = vmatpush.bf16.msra.mxu0 %v6515_v27  ;;  %v1144_v49 = vpop.f32.mrf.mxu0  ;;  %v1103_v55 = vadd.f32 %v1102_v15, %v811_v48  ;;  %v1160_v23 = vmax.f32 %v1115_v16, 0.0 }
 0x5ea   :  { %2406 = vmatpush.bf16.msra.mxu2 %v6500_v29  ;;  %v1145_v47 = vadd.f32 %v1144_v49, %v814_v53  ;;  %v1161_v24 = vmax.f32 %v1129_v30, 0.0 }
 0x5eb   :  { %2420 = vmatpush.bf16.msra.mxu3 %v6508_v32  ;;  %v1175_v0 = vmax.f32 %v1103_v55, 0.0 }
 0x5ec   :  { %2394 = vmatpush.bf16.msrb.mxu1 %v6490_v34  ;;  %v1178_v7 = vmax.f32 %v1145_v47, 0.0 }
 0x5ed   :  { %2436 = vmatpush.bf16.msra.mxu0 %v6514_v36  ;;  %v1191_v17 = vpack.c.bf16 %v1175_v0, %v1159_v9  ;;  %v6692_v36 = vld [vmem:[%s8283_s1] ss:$0 sm:$0xff] }
 0x5ee   :  { %2407 = vmatpush.bf16.msra.mxu2 %v6499_v37  ;;  %v1116_v61 = vpop.f32.mrf.mxu2  ;;  %v1194_v18 = vpack.c.bf16 %v1178_v7, %v1162_v12 }
 0x5ef   :  { %2421 = vmatpush.bf16.msra.mxu3 %v6507_v38  ;;  %v1130_v1 = vpop.f32.mrf.mxu3  ;;  %v1117_v10 = vadd.f32 %v1116_v61, %v812_v63 }
 0x5f0   :  { %2395 = vmatpush.bf16.msrb.mxu1 %v6489_v39  ;;  %v1131_v14 = vadd.f32 %v1130_v1, %v813_v5 }
 0x5f1   :  { %2437 = vmatpush.bf16.msra.mxu0 %v6513_v40  ;;  %v1176_v19 = vmax.f32 %v1117_v10, 0.0 }
 0x5f2   :  { %2408 = vmatpush.bf16.msra.mxu2 %v6498_v4  ;;  %v1177_v22 = vmax.f32 %v1131_v14, 0.0 }
 0x5f3   :  { %2422 = vmatpush.bf16.msra.mxu3 %v6506_v6  ;;  %v1192_v25 = vpack.c.bf16 %v1176_v19, %v1160_v23 }
 0x5f4   :  { %2396 = vmatpush.bf16.msrb.mxu1 %v6488_v44  ;;  %v1193_v26 = vpack.c.bf16 %v1177_v22, %v1161_v24 }
 0x5f5   :  { %2438 = vmatpush.bf16.msra.mxu0 %v6512_v45 }
 0x5f6   :  { %2409 = vmatpush.bf16.msra.mxu2 %v6497_v46 }
 0x5f7   :  { %2423 = vmatpush.bf16.msra.mxu3 %v6505_v52 }
 0x5f8   :  { %2397 = vmatpush.bf16.msrb.mxu1 %v6487_v54 }
 0x5f9   :  { %2439 = vmatpush.bf16.msra.mxu0 %v6511_v56 }
 0x5fa   :  { %2410 = vmatpush.bf16.msra.mxu2 %v6496_v57 }
 0x5fb   :  { %2424 = vmatpush.bf16.msra.mxu3 %v6504_v59 }
 0x5fc   :  { %2398 = vmatpush.bf16.msrb.mxu1 %v6486_v62 }
 0x5fd   :  { %2440 = vmatpush.bf16.msra.mxu0 %v6510_v2 }
 0x5fe   :  { %2411 = vmatpush.bf16.msra.mxu2 %v6495_v8 }
 0x5ff   :  { %2425 = vmatpush.bf16.msra.mxu3 %v6503_v11  ;;  %2399 = vmatmul.bf16.vlgmr.msrb.gmra.mxu1 %v1191_v17 }
 0x600   :  { %2533 = vmatpush.msra.mxu1 %v5556_v3  ;;  %2441 = vmatmul.bf16.vlgmr.msra.gmra.mxu0 %v1194_v18 }
 0x602   :  { %2412 = vmatpush.bf16.msra.mxu2 %v6494_v13 }
 0x603   :  { %2426 = vmatpush.bf16.msra.mxu3 %v6502_v20 }
 0x605   :  { %2413 = vmatmul.bf16.vlgmr.msra.gmra.mxu2 %v1192_v25 }
 0x606   :  { %2569 = vmatpush.msrb.mxu2 %v5560_v21  ;;  %2427 = vmatmul.bf16.vlgmr.msra.gmra.mxu3 %v1193_v26 }
 0x63c   :  { %v2232_v27 = vpop.f32.mrf.mxu1 }
 0x63d   :  { %v2274_v31 = vpop.f32.mrf.mxu0  ;;  %v2233_v38 = vadd.f32 %v6692_v36, %v2232_v27 }
 0x644   :  { %v2234_v32 = vpop.f32.mrf.mxu1 }
 0x645   :  { %v2276_v35 = vpop.f32.mrf.mxu0  ;;  %v2235_v44 = vadd.f32 %v6692_v36, %v2234_v32 }
 0x648   :  { %v2246_v28 = vpop.f32.mrf.mxu2 }
 0x649   :  { %v2260_v29 = vpop.f32.mrf.mxu3  ;;  %v2247_v39 = vadd.f32 %v2246_v28, %v2233_v38 }
 0x64b   :  { %v2261_v43 = vadd.f32 %v2260_v29, %v2247_v39 }
 0x64c   :  { %v2288_v37 = vpop.f32.mrf.mxu1 }
 0x64d   :  { %v2330_v4 = vpop.f32.mrf.mxu0  ;;  %v2275_v45 = vadd.f32 %v2274_v31, %v2261_v43 }
 0x64f   :  { %v2289_v48 = vadd.f32 %v2288_v37, %v2275_v45 }
 0x650   :  { %v2248_v33 = vpop.f32.mrf.mxu2 }
 0x651   :  { %v2262_v34 = vpop.f32.mrf.mxu3  ;;  %v2249_v15 = vadd.f32 %v2248_v33, %v2235_v44 }
 0x653   :  { %v2263_v49 = vadd.f32 %v2262_v34, %v2249_v15 }
 0x654   :  { %v2290_v6 = vpop.f32.mrf.mxu1 }
 0x655   :  { %v2332_v53 = vpop.f32.mrf.mxu0  ;;  %v2277_v56 = vadd.f32 %v2276_v35, %v2263_v49 }
 0x657   :  { %v2291_v57 = vadd.f32 %v2290_v6, %v2277_v56 }
 0x658   :  { %v2302_v40 = vpop.f32.mrf.mxu2 }
 0x659   :  { %v2316_v41 = vpop.f32.mrf.mxu3  ;;  %v2303_v54 = vadd.f32 %v2302_v40, %v2289_v48 }
 0x65b   :  { %v2317_v47 = vadd.f32 %v2316_v41, %v2303_v54 }
 0x65c   :  { %v2344_v55 = vpop.f32.mrf.mxu1 }
 0x65d   :  { %v2331_v59 = vadd.f32 %v2330_v4, %v2317_v47  ;;  %v2386_v62 = vpop.f32.mrf.mxu0 }
 0x65f   :  { %v2345_v0 = vadd.f32 %v2344_v55, %v2331_v59 }
 0x660   :  { %v2304_v46 = vpop.f32.mrf.mxu2 }
 0x661   :  { %v2318_v52 = vpop.f32.mrf.mxu3  ;;  %v2305_v60 = vadd.f32 %v2304_v46, %v2291_v57 }
 0x663   :  { %v2319_v1 = vadd.f32 %v2318_v52, %v2305_v60 }
 0x664   :  { %v2346_v63 = vpop.f32.mrf.mxu1 }
 0x665   :  { %v2333_v3 = vadd.f32 %v2332_v53, %v2319_v1  ;;  %v2388_v9 = vpop.f32.mrf.mxu0 }
 0x667   :  { %v2347_v11 = vadd.f32 %v2346_v63, %v2333_v3 }
 0x668   :  { %v2358_v58 = vpop.f32.mrf.mxu2 }
 0x669   :  { %v2372_v61 = vpop.f32.mrf.mxu3  ;;  %v2359_v2 = vadd.f32 %v2358_v58, %v2345_v0  ;;  %v6693_v58 = vld [vmem:[%s8259_s10] ss:$0 sm:$0xff] }
 0x66b   :  { %v2373_v7 = vadd.f32 %v2372_v61, %v2359_v2 }
 0x66d   :  { %v2387_v14 = vadd.f32 %v2386_v62, %v2373_v7  ;;  %v6694_v62 = vld [vmem:[%s8260_s11] ss:$0 sm:$0xff] }
 0x670   :  { %v2360_v5 = vpop.f32.mrf.mxu2 }
 0x671   :  { %v2374_v8 = vpop.f32.mrf.mxu3  ;;  %v2361_v12 = vadd.f32 %v2360_v5, %v2347_v11 }
 0x673   :  { %v2375_v30 = vadd.f32 %v2374_v8, %v2361_v12 }
 0x675   :  { %v2389_v22 = vadd.f32 %v2388_v9, %v2375_v30 }
 0x67c   :  { %v2400_v10 = vpop.f32.mrf.mxu1 }
 0x67d   :  { %v2401_v16 = vadd.f32 %v2400_v10, %v2387_v14  ;;  %v2442_v19 = vpop.f32.mrf.mxu0  ;;  %v6695_v14 = vld [vmem:[%s8249_s5 + $0x1] ss:$0 sm:$0xff] }
 0x684   :  { %v2402_v21 = vpop.f32.mrf.mxu1 }
 0x685   :  { %v2403_v24 = vadd.f32 %v2402_v21, %v2389_v22  ;;  %v2444_v32 = vpop.f32.mrf.mxu0 }
 0x688   :  { %v2414_v17 = vpop.f32.mrf.mxu2 }
 0x689   :  { %v2415_v18 = vadd.f32 %v2414_v17, %v2401_v16  ;;  %v2428_v13 = vpop.f32.mrf.mxu3 }
 0x68b   :  { %v2429_v20 = vadd.f32 %v2428_v13, %v2415_v18  ;;  %v6696_v13 = vld [vmem:[%s8250_s3 + $0x1] ss:$0 sm:$0xff]  ;;  %s8284_s3 = smov 116  }
 0x68d   :  { %v2443_v23 = vadd.f32 %v2442_v19, %v2429_v20 }
 0x68f   :  { %v2447_v25 = vadd.f32 %v2443_v23, %v7088_v50 }
 0x690   :  { %v2416_v26 = vpop.f32.mrf.mxu2 }
 0x691   :  { %v2417_v27 = vadd.f32 %v2416_v26, %v2403_v24  ;;  %v2451_v28 = vsel %vm72_vm0, %v2447_v25, 0.0  ;;  %v2430_v29 = vpop.f32.mrf.mxu3 }
 0x692   :  { %2452 = vadd.xlane.f32.xlu2 %v2451_v28 }
 0x693   :  { %v2431_v31 = vadd.f32 %v2430_v29, %v2417_v27 }
 0x695   :  { %v2445_v33 = vadd.f32 %v2444_v32, %v2431_v31 }
 0x697   :  { %v2448_v34 = vadd.f32 %v2445_v33, %v7090_v51 }
 0x699   :  { %v2454_v35 = vsel %vm72_vm0, %v2448_v34, 0.0 }
 0x69a   :  { %2455 = vadd.xlane.f32.xlu1 %v2454_v35 }
 0x705   :  { %v2453_v36 = vpop.xlane.xlu2 %2452 }
 0x706   :  { %v2457_v37 = vmul.f32 %v2453_v36, %v7038_v42 }
 0x708   :  { %v2459_v38 = vsub.f32 %v2447_v25, %v2457_v37 }
 0x70a   :  { %v2461_v39 = vmul.f32 %v2459_v38, %v2459_v38 }
 0x70c   :  { %v2463_v50 = vsel %vm72_vm0, %v2461_v39, 0.0 }
 0x70d   :  { %v2456_v40 = vpop.xlane.xlu1 %2455  ;;  %2464 = vadd.xlane.f32.xlu0 %v2463_v50 }
 0x70e   :  { %v2458_v41 = vmul.f32 %v2456_v40, %v7038_v42 }
 0x710   :  { %v2460_v4 = vsub.f32 %v2448_v34, %v2458_v41 }
 0x712   :  { %v2462_v43 = vmul.f32 %v2460_v4, %v2460_v4 }
 0x714   :  { %v2466_v6 = vsel %vm72_vm0, %v2462_v43, 0.0 }
 0x715   :  { %2467 = vadd.xlane.f32.xlu2 %v2466_v6 }
 0x780   :  { %v2465_v51 = vpop.xlane.xlu0 %2464 }
 0x781   :  { %v2469_v44 = vmul.f32 %v2465_v51, %v7038_v42 }
 0x783   :  { %v2471_v45 = vadd.f32 1e-05, %v2469_v44 }
 0x785   :  { %6742 = vrsqrt.f32 %v2471_v45  ;;  %vm2479_vm13 = vweird.f32 %v2471_v45 }
 0x788   :  { %v2468_v15 = vpop.xlane.xlu2 %2467 }
 0x789   :  { %v2470_v46 = vmul.f32 %v2468_v15, %v7038_v42 }
 0x78b   :  { %v6743_v48 = vpop.eup %6742  ;;  %v2472_v49 = vadd.f32 1e-05, %v2470_v46 }
 0x78c   :  { %v2474_v52 = vmul.f32 %v6743_v48, %v2471_v45  ;;  %vm2480_vm12 = vweird.f32 %v6743_v48 }
 0x78d   :  { %6744 = vrsqrt.f32 %v2472_v49  ;;  %vm2481_vm14 = vmor %vm2479_vm13, %vm2480_vm12  ;;  %vm2489_vm4 = vweird.f32 %v2472_v49 }
 0x78e   :  { %v2475_v53 = vmul.f32 %v6743_v48, %v2474_v52 }
 0x790   :  { %v2476_v54 = vmul.f32 0.5, %v2475_v53 }
 0x792   :  { %v2477_v55 = vsub.f32 1.5, %v2476_v54 }
 0x793   :  { %v6745_v56 = vpop.eup %6744 }
 0x794   :  { %v2478_v47 = vmul.f32 %v6743_v48, %v2477_v55  ;;  %v2484_v57 = vmul.f32 %v6745_v56, %v2472_v49  ;;  %vm2490_vm15 = vweird.f32 %v6745_v56 }
 0x795   :  { %vm2491_vm6 = vmor %vm2489_vm4, %vm2490_vm15 }
 0x796   :  { %v2482_v59 = vsel %vm2481_vm14, %v6743_v48, %v2478_v47  ;;  %v2485_v60 = vmul.f32 %v6745_v56, %v2484_v57 }
 0x797   :  { %v2493_v61 = vmul.f32 %v2482_v59, %v2459_v38 }
 0x798   :  { %v2486_v63 = vmul.f32 0.5, %v2485_v60 }
 0x799   :  { %v2498_v0 = vmul.f32 %v6693_v58, %v2493_v61 }
 0x79a   :  { %v2487_v1 = vsub.f32 1.5, %v2486_v63 }
 0x79b   :  { %v7577_v2 = vadd.f32 %v6694_v62, %v2498_v0 }
 0x79c   :  { %v2488_v3 = vmul.f32 %v6745_v56, %v2487_v1 }
 0x79d   :  { %5558 = vmatmul.msk.f32.vlgmr.msra.gmra.mxu1 %vm72_vm0, %v7577_v2  ;;  %v2548_v11 = vrot.slane %v7577_v2, 7 }
 0x79e   :  { %v2492_v5 = vsel %vm2491_vm6, %v6745_v56, %v2488_v3 }
 0x79f   :  { %v2494_v7 = vmul.f32 %v2492_v5, %v2460_v4 }
 0x7a1   :  { %v2499_v8 = vmul.f32 %v6693_v58, %v2494_v7 }
 0x7a3   :  { %v7581_v9 = vadd.f32 %v6694_v62, %v2499_v8 }
 0x7a5   :  { %5559 = vmatmul.msk.f32.gmra.mxu1 %vm72_vm0, %v7581_v9  ;;  %v2549_v10 = vrot.slane %v7581_v9, 6 }
 0x7a7   :  { %v2551_v12 = vsel %vm2550_vm7, %v2549_v10, %v2548_v11 }
 0x7a8   :  { %5562 = vmatmul.msk.f32.vlgmr.msrb.gmra.mxu2 %vm72_vm0, %v2551_v12 }
 0x81a   :  { %v2535_v16 = vpop.f32.mrf.mxu1 }
 0x81b   :  { %v7592_v17 = vadd.f32 %v6695_v14, %v2535_v16 }
 0x81d   :  { %2706 = vrot.lane.b32.xlu0 %v7592_v17, %s6787_s28  ;;  %5563 = vmatpush.xpose.msk.msrb.mxu3 %vm130_vm1, %v7592_v17 }
 0x822   :  { %v2538_v30 = vpop.f32.mrf.mxu1 }
 0x823   :  { %v7598_v18 = vadd.f32 %v6695_v14, %v2538_v30 }
 0x825   :  { %2735 = vrot.lane.b32.xlu1 %v7598_v18, %s6787_s28  ;;  %5565 = vmatpush.xpose.msk.msra.mxu2 %vm130_vm1, %v7598_v18  ;;  %v6672_v8 = vpack.i.bf16 %v7598_v18, %v7592_v17 }
 0x82b   :  { %v2571_v19 = vpop.f32.mrf.mxu2 }
 0x82c   :  { %v2572_v20 = vadd.f32 %v6696_v13, %v2571_v19 }
 0x82d   :  { %2867 = vrot.lane.b32.xlu1 %v7598_v18, %s6786_s15 }
 0x82e   :  { %v2575_v21 = vrot.slane %v2572_v20, 1  ;;  %5564 = vmatmul.msk.f32.vlgmr.msrb.gmra.mxu3 %vm130_vm1, %v2572_v20  ;;  %v2703_v22 = vperm.slane %v2572_v20, 0 }
 0x830   :  { %2704 = vrot.lane.b32.xlu0 %v2703_v22, %s6787_s28  ;;  %5566 = vmatmul.msk.f32.vlgmr.msra.gmra.mxu2 %vm130_vm1, %v2575_v21  ;;  %v2732_v23 = vperm.slane %v2575_v21, 0 }
 0x832   :  { %2733 = vrot.lane.b32.xlu2 %v2732_v23, %s6787_s28  ;;  %s8286_s28 = smov 2  }
 0x835   :  { %2837 = vrot.lane.b32.xlu1 %v2703_v22, %s6786_s15 }
 0x838   :  { %2865 = vrot.lane.b32.xlu0 %v2732_v23, %s6786_s15 }
 0x83a   :  { %2839 = vrot.lane.b32.xlu2 %v7592_v17, %s6786_s15  ;;  %s8285_s15 = smov 114  }
 0x83d   :  { %2997 = vrot.lane.b32.xlu1 %v2732_v23, %s6788_s30 }
 0x840   :  { %2971 = vrot.lane.b32.xlu0 %v7592_v17, %s6788_s30 }
 0x842   :  { %2999 = vrot.lane.b32.xlu2 %v7598_v18, %s6788_s30 }
 0x84a   :  { %2969 = vrot.lane.b32.xlu2 %v2703_v22, %s6788_s30  ;;  %s8287_s30 = smov 4  }
 0x88c   :  { %v2734_v24 = vpop.permute.xlu2 %2733 }
 0x88f   :  { %v2707_v25 = vpop.permute.xlu0 %2706 }
 0x890   :  { %5569 = vmatpush.xpose.msk.msrb.mxu1 %vm130_vm1, %v2707_v25 }
 0x894   :  { %v2840_v26 = vpop.permute.xlu2 %2839 }
 0x895   :  { %5575 = vmatpush.xpose.msk.msra.mxu1 %vm130_vm1, %v2840_v26 }
 0x897   :  { %v2736_v27 = vpop.permute.xlu1 %2735 }
 0x898   :  { %5571 = vmatpush.xpose.msk.msrb.mxu2 %vm130_vm1, %v2736_v27 }
 0x89b   :  { %5572 = vmatmul.msk.f32.vlgmr.msrb.gmra.mxu2 %vm130_vm1, %v2734_v24 }
 0x89c   :  { %v3000_v29 = vpop.permute.xlu2 %2999 }
 0x89f   :  { %v2868_v28 = vpop.permute.xlu1 %2867 }
 0x8a0   :  { %5577 = vmatpush.xpose.msk.msra.mxu2 %vm130_vm1, %v2868_v28 }
 0x8a2   :  { %v2705_v31 = vpop.permute.xlu0 %2704 }
 0x8a3   :  { %5570 = vmatmul.msk.f32.vlgmr.msrb.gmra.mxu1 %vm130_vm1, %v2705_v31 }
 0x8a4   :  { %5583 = vmatpush.xpose.msk.msrb.mxu2 %vm130_vm1, %v3000_v29  ;;  %v2970_v40 = vpop.permute.xlu2 %2969 }
 0x8a7   :  { %v2838_v32 = vpop.permute.xlu1 %2837 }
 0x8aa   :  { %v2866_v33 = vpop.permute.xlu0 %2865 }
 0x8ab   :  { %5576 = vmatmul.msk.f32.vlgmr.msra.gmra.mxu1 %vm130_vm1, %v2838_v32  ;;  %5578 = vmatmul.msk.f32.vlgmr.msra.gmra.mxu2 %vm130_vm1, %v2866_v33 }
 0x8af   :  { %v2998_v35 = vpop.permute.xlu1 %2997 }
 0x8b1   :  { %v2598_v34 = vpop.f32.mrf.mxu3 }
 0x8b2   :  { %v2626_v36 = vmul.f32 0.70710677, %v2598_v34  ;;  %v2972_v37 = vpop.permute.xlu0 %2971 }
 0x8b3   :  { %v2623_v38 = vpop.f32.mrf.mxu2  ;;  %5581 = vmatpush.xpose.msk.msrb.mxu1 %vm130_vm1, %v2972_v37  ;;  %5584 = vmatmul.msk.f32.vlgmr.msrb.gmra.mxu2 %vm130_vm1, %v2998_v35 }
 0x8b4   :  { %v2627_v39 = vmul.f32 0.70710677, %v2623_v38  ;;  %v2629_v50 = vsel %vm2628_vm8, %v2626_v36, -inf }
 0x8b5   :  { %2630 = vmax.xlane.f32.xlu0 %v2629_v50 }
 0x8b6   :  { %5582 = vmatmul.msk.f32.vlgmr.msrb.gmra.mxu1 %vm130_vm1, %v2970_v40  ;;  %v2632_v41 = vsel %vm2628_vm8, %v2627_v39, -inf }
 0x8b7   :  { %2633 = vmax.xlane.f32.xlu1 %v2632_v41 }
 0x91e   :  { %v2758_v4 = vpop.f32.mrf.mxu2 }
 0x91f   :  { %v2762_v43 = vmul.f32 0.70710677, %v2758_v4 }
 0x920   :  { %v2729_v6 = vpop.f32.mrf.mxu1 }
 0x921   :  { %v2761_v51 = vmul.f32 0.70710677, %v2729_v6  ;;  %v2766_v44 = vsel %vm2628_vm8, %v2762_v43, -inf }
 0x922   :  { %2767 = vmax.xlane.f32.xlu0 %v2766_v44 }
 0x923   :  { %v2763_v45 = vsel %vm2628_vm8, %v2761_v51, -inf }
 0x924   :  { %2764 = vmax.xlane.f32.xlu2 %v2763_v45 }
 0x928   :  { %v2631_v15 = vpop.xlane.xlu0 %2630  ;;  %v2862_v46 = vpop.f32.mrf.mxu1 }
 0x929   :  { %v2635_v48 = vsub.f32 %v2626_v36, %v2631_v15  ;;  %v2893_v49 = vmul.f32 0.70710677, %v2862_v46 }
 0x92a   :  { %v2634_v52 = vpop.xlane.xlu1 %2633 }
 0x92b   :  { %v2895_v53 = vsel %vm2628_vm8, %v2893_v49, -inf  ;;  %v2637_v54 = vmul.f32 1.442695, %v2635_v48  ;;  %v2636_v55 = vsub.f32 %v2627_v39, %v2634_v52 }
 0x92c   :  { %2896 = vmax.xlane.f32.xlu1 %v2895_v53 }
 0x92d   :  { %6746 = vpow2.f32 %v2637_v54  ;;  %v2639_v57 = vmul.f32 1.442695, %v2636_v55 }
 0x92e   :  { %v2890_v56 = vpop.f32.mrf.mxu2 }
 0x92f   :  { %v2894_v47 = vmul.f32 0.70710677, %v2890_v56  ;;  %6748 = vpow2.f32 %v2639_v57 }
 0x931   :  { %v2898_v58 = vsel %vm2628_vm8, %v2894_v47, -inf }
 0x932   :  { %2899 = vmax.xlane.f32.xlu2 %v2898_v58 }
 0x933   :  { %v2994_v59 = vpop.f32.mrf.mxu1  ;;  %v6747_v61 = vpop.eup %6746 }
 0x934   :  { %v3025_v60 = vmul.f32 0.70710677, %v2994_v59  ;;  %v2641_v1 = vsel %vm2628_vm8, %v6747_v61, 0.0 }
 0x935   :  { %v6749_v5 = vpop.eup %6748 }
 0x936   :  { %v3022_v62 = vpop.f32.mrf.mxu2  ;;  %v3027_v63 = vsel %vm2628_vm8, %v3025_v60, -inf  ;;  %v2644_v7 = vsel %vm2628_vm8, %v6749_v5, 0.0 }
 0x937   :  { %v3026_v0 = vmul.f32 0.70710677, %v3022_v62  ;;  %3028 = vmax.xlane.f32.xlu0 %v3027_v63 }
 0x939   :  { %v3030_v3 = vsel %vm2628_vm8, %v3026_v0, -inf }
 0x93a   :  { %2642 = vadd.xlane.f32.xlu2 %v2641_v1  ;;  %3031 = vmax.xlane.f32.xlu1 %v3030_v3 }
 0x93f   :  { %2645 = vadd.xlane.f32.xlu0 %v2644_v7 }
 0x952   :  { %6673 = vrot.lane.b32.xlu2 %v6672_v8, %s6790_s19 }
 0x953   :  { %6678 = vrot.lane.b32.xlu0 %v6672_v8, %s6789_s4  ;;  %s8288_s4 = smov 6  }
 0x95a   :  { %6683 = vrot.lane.b32.xlu2 %v6672_v8, %s8284_s3 }
 0x962   :  { %3075 = vrot.lane.b32.xlu2 %v7598_v18, %s8285_s15 }
 0x995   :  { %v2768_v10 = vpop.xlane.xlu0 %2767 }
 0x996   :  { %v2770_v11 = vsub.f32 %v2762_v43, %v2768_v10 }
 0x997   :  { %v2765_v12 = vpop.xlane.xlu2 %2764 }
 0x998   :  { %v2773_v14 = vmul.f32 1.442695, %v2770_v11  ;;  %v2769_v16 = vsub.f32 %v2761_v51, %v2765_v12 }
 0x99a   :  { %6750 = vpow2.f32 %v2773_v14  ;;  %v2771_v30 = vmul.f32 1.442695, %v2769_v16 }
 0x99c   :  { %6752 = vpow2.f32 %v2771_v30 }
 0x99f   :  { %v2897_v13 = vpop.xlane.xlu1 %2896 }
 0x9a0   :  { %v7652_v19 = vpop.eup %6750  ;;  %v2901_v20 = vsub.f32 %v2893_v49, %v2897_v13 }
 0x9a1   :  { %v2778_v21 = vsel %vm2628_vm8, %v7652_v19, 0.0 }
 0x9a2   :  { %v7656_v22 = vpop.eup %6752  ;;  %v2903_v23 = vmul.f32 1.442695, %v2901_v20  ;;  %2779 = vadd.xlane.f32.xlu0 %v2778_v21 }
 0x9a3   :  { %v2775_v18 = vsel %vm2628_vm8, %v7656_v22, 0.0 }
 0x9a4   :  { %6754 = vpow2.f32 %v2903_v23  ;;  %2776 = vadd.xlane.f32.xlu1 %v2775_v18  ;;  %v5587_v18 = vld [vmem:[%s8252_s6 + $0x8] sm:$0xff] }
 0x9a5   :  { %v2900_v24 = vpop.xlane.xlu2 %2899  ;;  %3159 = vmatpush.msra.mxu1 %v5587_v18 }
 0x9a6   :  { %v2902_v25 = vsub.f32 %v2894_v47, %v2900_v24 }
 0x9a8   :  { %v2905_v26 = vmul.f32 1.442695, %v2902_v25 }
 0x9aa   :  { %v6755_v27 = vpop.eup %6754  ;;  %6756 = vpow2.f32 %v2905_v26  ;;  %v3029_v28 = vpop.xlane.xlu0 %3028 }
 0x9ab   :  { %v3033_v29 = vsub.f32 %v3025_v60, %v3029_v28  ;;  %v2907_v31 = vsel %vm2628_vm8, %v6755_v27, 0.0 }
 0x9ac   :  { %2908 = vadd.xlane.f32.xlu1 %v2907_v31 }
 0x9ad   :  { %v2643_v32 = vpop.xlane.xlu2 %2642  ;;  %v3035_v33 = vmul.f32 1.442695, %v3033_v29  ;;  %v3032_v34 = vpop.xlane.xlu1 %3031 }
 0x9ae   :  { %6758 = vrcp.f32 %v2643_v32  ;;  %v3034_v36 = vsub.f32 %v3026_v0, %v3032_v34 }
 0x9af   :  { %6760 = vpow2.f32 %v3035_v33 }
 0x9b0   :  { %v6757_v35 = vpop.eup %6756  ;;  %v3037_v40 = vmul.f32 1.442695, %v3034_v36 }
 0x9b1   :  { %v2910_v38 = vsel %vm2628_vm8, %v6757_v35, 0.0 }
 0x9b2   :  { %v2646_v37 = vpop.xlane.xlu0 %2645 }
 0x9b3   :  { %6762 = vrcp.f32 %v2646_v37 }
 0x9b4   :  { %v6759_v39 = vpop.eup %6758  ;;  %2911 = vadd.xlane.f32.xlu1 %v2910_v38  ;;  %6764 = vpow2.f32 %v3037_v40 }
 0x9b5   :  { %v6674_v50 = vpop.permute.xlu2 %6673  ;;  %v2649_v43 = vmul.f32 %v6759_v39, %v6747_v61  ;;  %v6761_v6 = vpop.eup %6760  ;;  %v6697_v39 = vld [vmem:[%s8251_s7 + $0x1] ss:$0 sm:$0xff] }
 0x9b6   :  { %v6676_v41 = vunpack.i.h.bf16 %v6674_v50  ;;  %v6675_v4 = vunpack.i.l.bf16 %v6674_v50  ;;  %3049 = vrot.lane.b32.xlu0 %v7592_v17, %s8285_s15  ;;  %v3039_v45 = vsel %vm2628_vm8, %v6761_v6, 0.0 }
 0x9b8   :  { %2672 = vmatpush.msra.mxu3 %v6675_v4  ;;  %2698 = vmatpush.msrb.mxu0 %v6676_v41 }
 0x9b9   :  { %v6763_v51 = vpop.eup %6762  ;;  %5567 = vmatmul.msk.f32.vlgmr.msra.gmra.mxu3 %vm72_vm0, %v2649_v43 }
 0x9ba   :  { %v2650_v44 = vmul.f32 %v6763_v51, %v6749_v5  ;;  %v6765_v15 = vpop.eup %6764 }
 0x9bb   :  { %v3042_v46 = vsel %vm2628_vm8, %v6765_v15, 0.0 }
 0x9bc   :  { %5568 = vmatmul.msk.f32.vlgmr.msrb.gmra.mxu0 %vm72_vm0, %v2650_v44  ;;  %3040 = vadd.xlane.f32.xlu1 %v3039_v45 }
 0x9bd   :  { %v6684_v48 = vpop.permute.xlu2 %6683 }
 0x9be   :  { %v6686_v53 = vunpack.i.h.bf16 %v6684_v48  ;;  %v6685_v54 = vunpack.i.l.bf16 %v6684_v48 }
 0x9c4   :  { %3043 = vadd.xlane.f32.xlu1 %v3042_v46 }
 0x9c5   :  { %v6679_v17 = vpop.permute.xlu0 %6678  ;;  %v3076_v59 = vpop.permute.xlu2 %3075 }
 0x9c6   :  { %v6681_v49 = vunpack.i.h.bf16 %v6679_v17  ;;  %v6680_v52 = vunpack.i.l.bf16 %v6679_v17 }
 0x9c8   :  { %2806 = vmatpush.msrb.mxu3 %v6680_v52  ;;  %2832 = vmatpush.msra.mxu0 %v6681_v49 }
 0x9ca   :  { %2938 = vmatpush.msra.mxu3 %v6685_v54  ;;  %2964 = vmatpush.msrb.mxu0 %v6686_v53 }
 0xa15   :  { %v2780_v55 = vpop.xlane.xlu0 %2779 }
 0xa16   :  { %6766 = vrcp.f32 %v2780_v55 }
 0xa17   :  { %v2777_v56 = vpop.xlane.xlu1 %2776 }
 0xa18   :  { %6768 = vrcp.f32 %v2777_v56 }
 0xa1c   :  { %v6767_v47 = vpop.eup %6766 }
 0xa1d   :  { %v2784_v57 = vmul.f32 %v6767_v47, %v7652_v19 }
 0xa1e   :  { %v6769_v58 = vpop.eup %6768 }
 0xa1f   :  { %v2783_v60 = vmul.f32 %v6769_v58, %v7656_v22  ;;  %5574 = vmatmul.msk.f32.vlgmr.msra.gmra.mxu0 %vm72_vm0, %v2784_v57  ;;  %v2909_v61 = vpop.xlane.xlu1 %2908 }
 0xa20   :  { %3096 = vmatpush.msra.mxu0 %v3076_v59  ;;  %6770 = vrcp.f32 %v2909_v61  ;;  %v5593_v61 = vld [vmem:[%s8255_s12 + $0x48] sm:$0xff] }
 0xa21   :  { %5573 = vmatmul.msk.f32.vlgmr.msrb.gmra.mxu3 %vm72_vm0, %v2783_v60  ;;  %v5592_v60 = vld [vmem:[%s8255_s12 + $0x40] sm:$0xff] }
 0xa26   :  { %v6771_v62 = vpop.eup %6770 }
 0xa27   :  { %v2915_v63 = vmul.f32 %v6771_v62, %v6755_v27  ;;  %v2912_v0 = vpop.xlane.xlu1 %2911 }
 0xa28   :  { %6772 = vrcp.f32 %v2912_v0  ;;  %v3050_v1 = vpop.permute.xlu0 %3049  ;;  %v3315_v0 = vunpack.c.h.b16 %v5592_v60 }
 0xa29   :  { %5579 = vmatmul.msk.f32.vlgmr.msra.gmra.mxu3 %vm72_vm0, %v2915_v63  ;;  %v3314_v63 = vunpack.c.l.b16 %v5592_v60 }
 0xa2a   :  { %3070 = vmatpush.msrb.mxu3 %v3050_v1  ;;  %v3316_v1 = vunpack.c.l.b16 %v5593_v61 }
 0xa2e   :  { %v6773_v3 = vpop.eup %6772 }
 0xa2f   :  { %v2916_v5 = vmul.f32 %v6773_v3, %v6757_v35  ;;  %v3041_v7 = vpop.xlane.xlu1 %3040  ;;  %v3317_v3 = vunpack.c.h.b16 %v5593_v61 }
 0xa30   :  { %6774 = vrcp.f32 %v3041_v7  ;;  %v3330_v7 = vpack.c.b16 %v3314_v63, %v3314_v63 }
 0xa31   :  { %5580 = vmatmul.msk.f32.vlgmr.msrb.gmra.mxu0 %vm72_vm0, %v2916_v5 }
 0xa36   :  { %v6775_v8 = vpop.eup %6774 }
 0xa37   :  { %v3047_v10 = vmul.f32 %v6775_v8, %v6761_v6  ;;  %v3044_v11 = vpop.xlane.xlu1 %3043  ;;  %v3331_v8 = vpack.c.b16 %v3315_v0, %v3315_v0 }
 0xa38   :  { %6776 = vrcp.f32 %v3044_v11  ;;  %v3333_v11 = vpack.c.b16 %v3317_v3, %v3317_v3 }
 0xa39   :  { %5585 = vmatmul.msk.f32.vlgmr.msrb.gmra.mxu3 %vm72_vm0, %v3047_v10  ;;  %v2700_v16 = vpop.f32.mrf.mxu0  ;;  %v3332_v10 = vpack.c.b16 %v3316_v1, %v3316_v1 }
 0xa3c   :  { %v2674_v30 = vpop.f32.mrf.mxu3 }
 0xa3e   :  { %v6777_v12 = vpop.eup %6776 }
 0xa3f   :  { %v3048_v14 = vmul.f32 %v6777_v12, %v6765_v15 }
 0xa41   :  { %5586 = vmatmul.msk.f32.vlgmr.msra.gmra.mxu0 %vm72_vm0, %v3048_v14  ;;  %v3350_v14 = vsel %vm874_vm5, %v3330_v7, 0 }
 0xa42   :  { %3404 = vmatpush.bf16.msra.mxu2 %v3350_v14  ;;  %v5599_v14 = vld [vmem:[%s8255_s12 + $0x78] sm:$0xff] }
 0xa9c   :  { %v2834_v13 = vpop.f32.mrf.mxu0 }
 0xa9d   :  { %3105 = vrot.lane.b32.xlu1 %v2834_v13, %s8286_s28  ;;  %v3356_v13 = vsel %vm874_vm5, %v3332_v10, 0 }
 0xa9e   :  { %3430 = vmatpush.bf16.msrb.mxu0 %v3356_v13  ;;  %v3328_v13 = vunpack.c.l.b16 %v5599_v14 }
 0xaa4   :  { %v2808_v19 = vpop.f32.mrf.mxu3 }
 0xaa5   :  { %3103 = vrot.lane.b32.xlu2 %v2808_v19, %s8286_s28  ;;  %v3359_v19 = vsel %vm874_vm5, %v3333_v11, 0 }
 0xaa6   :  { %3443 = vmatpush.bf16.msrb.mxu1 %v3359_v19  ;;  %v3329_v19 = vunpack.c.h.b16 %v5599_v14  ;;  %v6569_v14 = vld [vmem:[%s8256_s14 + $0x598] sm:$0xff] }
 0xaac   :  { %v2940_v20 = vpop.f32.mrf.mxu3 }
 0xaad   :  { %3111 = vrot.lane.b32.xlu2 %v2940_v20, %s8287_s30 }
 0xaae   :  { %v2966_v21 = vpop.f32.mrf.mxu0 }
 0xaaf   :  { %3113 = vrot.lane.b32.xlu0 %v2966_v21, %s8287_s30  ;;  %v5594_v21 = vld [vmem:[%s8255_s12 + $0x50] sm:$0xff] }
 0xab0   :  { %v3318_v18 = vunpack.c.l.b16 %v5594_v21 }
 0xabc   :  { %v3072_v23 = vpop.f32.mrf.mxu3 }
 0xabe   :  { %v3098_v22 = vpop.f32.mrf.mxu0 }
 0xabf   :  { %3121 = vrot.lane.b32.xlu0 %v3098_v22, %s8288_s4  ;;  %v5595_v22 = vld [vmem:[%s8255_s12 + $0x58] sm:$0xff] }
 0xac7   :  { %3119 = vrot.lane.b32.xlu0 %v3072_v23, %s8288_s4 }
 0xaff   :  { %v3104_v25 = vpop.permute.xlu2 %3103 }
 0xb00   :  { %v3125_v33 = vsel %vm130_vm1, %v2674_v30, %v3104_v25  ;;  %v3320_v25 = vunpack.c.l.b16 %v5595_v22 }
 0xb07   :  { %v3112_v31 = vpop.permute.xlu2 %3111 }
 0xb08   :  { %v3127_v34 = vsel %vm681_vm2, %v3125_v33, %v3112_v31  ;;  %v3334_v31 = vpack.c.b16 %v3318_v18, %v3318_v18  ;;  %v3336_v33 = vpack.c.b16 %v3320_v25, %v3320_v25 }
 0xb0f   :  { %v3106_v26 = vpop.permute.xlu1 %3105 }
 0xb10   :  { %v3126_v28 = vsel %vm130_vm1, %v2700_v16, %v3106_v26  ;;  %v3353_v16 = vsel %vm874_vm5, %v3331_v8, 0 }
 0xb11   :  { %3417 = vmatpush.bf16.msra.mxu3 %v3353_v16 }
 0xb21   :  { %v3114_v24 = vpop.permute.xlu0 %3113 }
 0xb22   :  { %v3128_v29 = vsel %vm681_vm2, %v3126_v28, %v3114_v24  ;;  %v3319_v24 = vunpack.c.h.b16 %v5594_v21 }
 0xb31   :  { %v3122_v27 = vpop.permute.xlu0 %3121 }
 0xb32   :  { %v3130_v32 = vsel %vm684_vm3, %v3128_v29, %v3122_v27  ;;  %v3321_v27 = vunpack.c.h.b16 %v5595_v22  ;;  %v3344_v22 = vpack.c.b16 %v3328_v13, %v3328_v13  ;;  %v6576_v13 = vld [vmem:[%s8256_s14 + $0x5d0] sm:$0xff] }
 0xb33   :  { %v3140_v35 = vrot.slane %v3130_v32, 7  ;;  %v3335_v32 = vpack.c.b16 %v3319_v24, %v3319_v24 }
 0xb34   :  { %v3392_v25 = vsel %vm874_vm5, %v3344_v22, 0  ;;  %v6575_v22 = vld [vmem:[%s8256_s14 + $0x5c8] sm:$0xff] }
 0xb39   :  { %v3120_v36 = vpop.permute.xlu0 %3119 }
 0xb3a   :  { %v3129_v37 = vsel %vm684_vm3, %v3127_v34, %v3120_v36  ;;  %v3337_v34 = vpack.c.b16 %v3321_v27, %v3321_v27  ;;  %v6541_v27 = vld [vmem:[%s8256_s14 + $0x4b8] sm:$0xff] }
 0xb3b   :  { %v3141_v38 = vsel %vm2550_vm7, %v3140_v35, %v3129_v37  ;;  %v3362_v37 = vsel %vm874_vm5, %v3334_v31, 0  ;;  %v6533_v31 = vld [vmem:[%s8256_s14 + $0x478] sm:$0xff] }
 0xb3c   :  { %5589 = vmatmul.msk.f32.vlgmr.msra.gmra.mxu1 %vm72_vm0, %v3141_v38  ;;  %v6698_v38 = vld [vmem:[%s8253_s8 + $0x1] ss:$0 sm:$0xff]  ;;  %3456 = vmatpush.bf16.msrb.mxu2 %v3362_v37  ;;  %v6547_v37 = vld [vmem:[%s8256_s14 + $0x4e8] sm:$0xff] }
 0xbb9   :  { %v3161_v50 = vpop.f32.mrf.mxu1 }
 0xbba   :  { %v3162_v40 = vadd.f32 %v6697_v39, %v3161_v50  ;;  %v3365_v39 = vsel %vm874_vm5, %v3335_v32, 0  ;;  %v3368_v50 = vsel %vm874_vm5, %v3336_v33, 0  ;;  %v6540_v32 = vld [vmem:[%s8256_s14 + $0x4b0] sm:$0xff] }
 0xbbb   :  { %3469 = vmatpush.bf16.msrb.mxu3 %v3365_v39  ;;  %3482 = vmatpush.bf16.msra.mxu0 %v3368_v50  ;;  %v6548_v33 = vld [vmem:[%s8256_s14 + $0x4f0] sm:$0xff]  ;;  %v6531_v39 = vld [vmem:[%s8256_s14 + $0x468] sm:$0xff]  ;;  %v6538_v50 = vld [vmem:[%s8256_s14 + $0x4a0] sm:$0xff] }
 0xbbc   :  { %v3165_v41 = vrot.slane %v3162_v40, 1  ;;  %v3166_v4 = vrot.slane %v3162_v40, 2  ;;  %v3371_v40 = vsel %vm874_vm5, %v3337_v34, 0  ;;  %v6524_v34 = vld [vmem:[%s8256_s14 + $0x430] sm:$0xff] }
 0xbbd   :  { %3495 = vmatpush.bf16.msra.mxu1 %v3371_v40  ;;  %v6546_v40 = vld [vmem:[%s8256_s14 + $0x4e0] sm:$0xff] }
 0xbbe   :  { %v3169_v43 = vadd.f32 %v3165_v41, %v7577_v2  ;;  %v3170_v6 = vadd.f32 %v3166_v4, %v7581_v9 }
 0xbc0   :  { %v3181_v51 = vsel %vm3180_vm9, %v3169_v43, 0.0  ;;  %v3177_v44 = vrot.slane %v3170_v6, 7 }
 0xbc1   :  { %3182 = vadd.xlane.f32.xlu1 %v3181_v51  ;;  %v6699_v51 = vld [vmem:[%s8254_s9 + $0x1] ss:$0 sm:$0xff] }
 0xbc2   :  { %v3184_v45 = vsel %vm2628_vm8, %v3177_v44, 0.0 }
 0xbc3   :  { %3185 = vadd.xlane.f32.xlu2 %v3184_v45 }
 0xc34   :  { %v3183_v15 = vpop.xlane.xlu1 %3182 }
 0xc35   :  { %v3187_v46 = vmul.f32 %v3183_v15, %v7038_v42 }
 0xc36   :  { %v3186_v48 = vpop.xlane.xlu2 %3185 }
 0xc37   :  { %v7701_v17 = vsub.f32 %v3169_v43, %v3187_v46  ;;  %v3188_v49 = vmul.f32 %v3186_v48, %v7038_v42 }
 0xc39   :  { %v3191_v52 = vrot.slane %v3188_v49, 1  ;;  %v3196_v2 = vmul.f32 %v7701_v17, %v7701_v17 }
 0xc3b   :  { %v7706_v9 = vsub.f32 %v3170_v6, %v3191_v52  ;;  %v3203_v53 = vsel %vm3180_vm9, %v3196_v2, 0.0  ;;  %v5596_v2 = vld [vmem:[%s8255_s12 + $0x60] sm:$0xff] }
 0xc3c   :  { %3204 = vadd.xlane.f32.xlu2 %v3203_v53 }
 0xc3d   :  { %v3197_v54 = vmul.f32 %v7706_v9, %v7706_v9 }
 0xc3f   :  { %v3200_v55 = vrot.slane %v3197_v54, 7  ;;  %v5597_v54 = vld [vmem:[%s8255_s12 + $0x68] sm:$0xff] }
 0xc41   :  { %v3206_v56 = vsel %vm2628_vm8, %v3200_v55, 0.0 }
 0xc42   :  { %3207 = vadd.xlane.f32.xlu0 %v3206_v56 }
 0xcaf   :  { %v3205_v47 = vpop.xlane.xlu2 %3204 }
 0xcb0   :  { %v3209_v57 = vmul.f32 %v3205_v47, %v7038_v42  ;;  %v3322_v47 = vunpack.c.l.b16 %v5596_v2 }
 0xcb2   :  { %v3211_v58 = vadd.f32 1e-05, %v3209_v57  ;;  %v3324_v57 = vunpack.c.l.b16 %v5597_v54 }
 0xcb4   :  { %6778 = vrsqrt.f32 %v3211_v58  ;;  %vm3219_vm2 = vweird.f32 %v3211_v58  ;;  %v3340_v0 = vpack.c.b16 %v3324_v57, %v3324_v57  ;;  %v6518_v57 = vld [vmem:[%s8256_s14 + $0x400] sm:$0xff] }
 0xcb5   :  { %v3208_v59 = vpop.xlane.xlu0 %3207 }
 0xcb6   :  { %v3210_v62 = vmul.f32 %v3208_v59, %v7038_v42  ;;  %v3380_v10 = vsel %vm874_vm5, %v3340_v0, 0  ;;  %v6564_v0 = vld [vmem:[%s8256_s14 + $0x570] sm:$0xff] }
 0xcb8   :  { %v3212_v5 = vadd.f32 1e-05, %v3210_v62  ;;  %v3338_v62 = vpack.c.b16 %v3322_v47, %v3322_v47  ;;  %v6573_v47 = vld [vmem:[%s8256_s14 + $0x5b8] sm:$0xff] }
 0xcba   :  { %v6779_v12 = vpop.eup %6778  ;;  %6780 = vrsqrt.f32 %v3212_v5  ;;  %vm3229_vm11 = vweird.f32 %v3212_v5  ;;  %v3374_v7 = vsel %vm874_vm5, %v3338_v62, 0  ;;  %v6580_v62 = vld [vmem:[%s8256_s14 + $0x5f0] sm:$0xff] }
 0xcbb   :  { %v3214_v30 = vmul.f32 %v6779_v12, %v3211_v58  ;;  %vm3220_vm1 = vweird.f32 %v6779_v12  ;;  %v3325_v58 = vunpack.c.h.b16 %v5597_v54  ;;  %v6527_v54 = vld [vmem:[%s8256_s14 + $0x448] sm:$0xff] }
 0xcbc   :  { %vm3221_vm3 = vmor %vm3219_vm2, %vm3220_vm1 }
 0xcbd   :  { %v3215_v20 = vmul.f32 %v6779_v12, %v3214_v30  ;;  %v3341_v1 = vpack.c.b16 %v3325_v58, %v3325_v58  ;;  %v6526_v58 = vld [vmem:[%s8256_s14 + $0x440] sm:$0xff] }
 0xcbf   :  { %v3216_v23 = vmul.f32 0.5, %v3215_v20  ;;  %v3383_v11 = vsel %vm874_vm5, %v3341_v1, 0  ;;  %v6571_v1 = vld [vmem:[%s8256_s14 + $0x5a8] sm:$0xff] }
 0xcc0   :  { %v6781_v26 = vpop.eup %6780 }
 0xcc1   :  { %v3217_v28 = vsub.f32 1.5, %v3216_v23  ;;  %v3224_v29 = vmul.f32 %v6781_v26, %v3212_v5  ;;  %vm3230_vm10 = vweird.f32 %v6781_v26  ;;  %v3345_v23 = vpack.c.b16 %v3329_v19, %v3329_v19  ;;  %v6553_v19 = vld [vmem:[%s8256_s14 + $0x518] sm:$0xff] }
 0xcc2   :  { %vm3231_vm12 = vmor %vm3229_vm11, %vm3230_vm10 }
 0xcc3   :  { %v3218_v35 = vmul.f32 %v6779_v12, %v3217_v28  ;;  %v3225_v36 = vmul.f32 %v6781_v26, %v3224_v29  ;;  %v6549_v28 = vld [vmem:[%s8256_s14 + $0x4f8] sm:$0xff] }
 0xcc4   :  { %v6525_v29 = vld [vmem:[%s8256_s14 + $0x438] sm:$0xff] }
 0xcc5   :  { %v3222_v41 = vsel %vm3221_vm3, %v6779_v12, %v3218_v35  ;;  %v3226_v4 = vmul.f32 0.5, %v3225_v36  ;;  %v5598_v12 = vld [vmem:[%s8255_s12 + $0x70] sm:$0xff]  ;;  %v6539_v36 = vld [vmem:[%s8256_s14 + $0x4a8] sm:$0xff] }
 0xcc6   :  { %v3238_v43 = vmul.f32 %v3222_v41, %v7701_v17  ;;  %v3326_v16 = vunpack.c.l.b16 %v5598_v12  ;;  %v3327_v30 = vunpack.c.h.b16 %v5598_v12  ;;  %v6532_v35 = vld [vmem:[%s8256_s14 + $0x470] sm:$0xff]  ;;  %v6522_v41 = vld [vmem:[%s8256_s14 + $0x420] sm:$0xff] }
 0xcc7   :  { %v3227_v6 = vsub.f32 1.5, %v3226_v4  ;;  %v6530_v4 = vld [vmem:[%s8256_s14 + $0x460] sm:$0xff] }
 0xcc8   :  { %v3243_v44 = vmul.f32 %v6698_v38, %v3238_v43  ;;  %v3342_v20 = vpack.c.b16 %v3326_v16, %v3326_v16  ;;  %v3343_v21 = vpack.c.b16 %v3327_v30, %v3327_v30  ;;  %v6537_v43 = vld [vmem:[%s8256_s14 + $0x498] sm:$0xff]  ;;  %v6562_v12 = vld [vmem:[%s8256_s14 + $0x560] sm:$0xff]  ;;  %v6568_v30 = vld [vmem:[%s8256_s14 + $0x590] sm:$0xff] }
 0xcc9   :  { %v3228_v45 = vmul.f32 %v6781_v26, %v3227_v6  ;;  %v6545_v6 = vld [vmem:[%s8256_s14 + $0x4d8] sm:$0xff] }
 0xcca   :  { %v7741_v46 = vadd.f32 %v6699_v51, %v3243_v44  ;;  %v3386_v18 = vsel %vm874_vm5, %v3342_v20, 0  ;;  %v3389_v24 = vsel %vm874_vm5, %v3343_v21, 0  ;;  %v6529_v44 = vld [vmem:[%s8256_s14 + $0x458] sm:$0xff]  ;;  %v6567_v21 = vld [vmem:[%s8256_s14 + $0x588] sm:$0xff] }
 0xccb   :  { %v3232_v15 = vsel %vm3231_vm12, %v6781_v26, %v3228_v45  ;;  %v3395_v26 = vsel %vm874_vm5, %v3345_v23, 0  ;;  %v6536_v45 = vld [vmem:[%s8256_s14 + $0x490] sm:$0xff]  ;;  %v6577_v16 = vld [vmem:[%s8256_s14 + $0x5d8] sm:$0xff] }
 0xccc   :  { %v3235_v48 = vrot.slane %v3232_v15, 1  ;;  %v3250_v17 = vpack.c.bf16 %v7741_v46, %v7741_v46  ;;  %v6544_v15 = vld [vmem:[%s8256_s14 + $0x4d0] sm:$0xff]  ;;  %v6561_v20 = vld [vmem:[%s8256_s14 + $0x558] sm:$0xff] }
 0xccd   :  { %v6552_v23 = vld [vmem:[%s8256_s14 + $0x510] sm:$0xff] }
 0xcce   :  { %v3239_v49 = vmul.f32 %v3235_v48, %v7706_v9  ;;  %v3300_v55 = vunpack.c.l.b16 %v3250_v17  ;;  %v3323_v9 = vunpack.c.h.b16 %v5596_v2  ;;  %v6520_v48 = vld [vmem:[%s8256_s14 + $0x410] sm:$0xff]  ;;  %v6535_v17 = vld [vmem:[%s8256_s14 + $0x488] sm:$0xff] }
 0xccf   :  { %v6519_v2 = vld [vmem:[%s8256_s14 + $0x408] sm:$0xff] }
 0xcd0   :  { %v3244_v52 = vmul.f32 %v6698_v38, %v3239_v49  ;;  %v3302_v60 = vrot.slane %v3300_v55, 7  ;;  %v3339_v63 = vpack.c.b16 %v3323_v9, %v3323_v9  ;;  %v6523_v38 = vld [vmem:[%s8256_s14 + $0x428] sm:$0xff]  ;;  %v6528_v49 = vld [vmem:[%s8256_s14 + $0x450] sm:$0xff]  ;;  %v6534_v55 = vld [vmem:[%s8256_s14 + $0x480] sm:$0xff] }
 0xcd1   :  { %v6581_v9 = vld [vmem:[%s8256_s14 + $0x5f8] sm:$0xff] }
 0xcd2   :  { %v7749_v53 = vadd.f32 %v6699_v51, %v3244_v52  ;;  %v3377_v8 = vsel %vm874_vm5, %v3339_v63, 0  ;;  %v6521_v51 = vld [vmem:[%s8256_s14 + $0x418] sm:$0xff]  ;;  %v6543_v52 = vld [vmem:[%s8256_s14 + $0x4c8] sm:$0xff]  ;;  %v6556_v63 = vld [vmem:[%s8256_s14 + $0x530] sm:$0xff] }
 0xcd4   :  { %v3251_v56 = vpack.c.bf16 %v7749_v53, %v7749_v53 }
 0xcd6   :  { %v3301_v59 = vunpack.c.l.b16 %v3251_v56  ;;  %v6542_v56 = vld [vmem:[%s8256_s14 + $0x4c0] sm:$0xff] }
 0xcd8   :  { %v3303_v61 = vrot.slane %v3301_v59, 6  ;;  %v6557_v59 = vld [vmem:[%s8256_s14 + $0x538] sm:$0xff] }
 0xcda   :  { %v3304_v3 = vsel %vm2550_vm7, %v3303_v61, %v3302_v60  ;;  %v6565_v60 = vld [vmem:[%s8256_s14 + $0x578] sm:$0xff]  ;;  %v6572_v61 = vld [vmem:[%s8256_s14 + $0x5b0] sm:$0xff] }
 0xcdb   :  { %v7757_v5 = vpack.c.b16 %v3304_v3, %v3304_v3  ;;  %v6579_v3 = vld [vmem:[%s8256_s14 + $0x5e8] sm:$0xff] }
 0xcdd   :  { %5602 = vmatmul.msk.bf16.vlgmr.msra.gmra.mxu2 %vm72_vm0, %v7757_v5  ;;  %5603 = vmatmul.msk.bf16.vlgmr.msra.gmra.mxu3 %vm72_vm0, %v7757_v5 }
 0xcde   :  { %5604 = vmatmul.msk.bf16.vlgmr.msrb.gmra.mxu0 %vm72_vm0, %v7757_v5  ;;  %5605 = vmatmul.msk.bf16.vlgmr.msrb.gmra.mxu1 %vm72_vm0, %v7757_v5 }
 0xcdf   :  { %3508 = vmatpush.bf16.msra.mxu2 %v3374_v7  ;;  %3521 = vmatpush.bf16.msra.mxu3 %v3377_v8  ;;  %v6563_v7 = vld [vmem:[%s8256_s14 + $0x568] sm:$0xff]  ;;  %v6570_v8 = vld [vmem:[%s8256_s14 + $0x5a0] sm:$0xff] }
 0xce0   :  { %3534 = vmatpush.bf16.msrb.mxu0 %v3380_v10  ;;  %3547 = vmatpush.bf16.msrb.mxu1 %v3383_v11  ;;  %v6578_v10 = vld [vmem:[%s8256_s14 + $0x5e0] sm:$0xff] }
 0xce1   :  { %v6554_v11 = vld [vmem:[%s8256_s14 + $0x520] sm:$0xff] }
 0xced   :  { %5606 = vmatmul.msk.bf16.vlgmr.msrb.gmra.mxu2 %vm72_vm0, %v7757_v5  ;;  %5607 = vmatmul.msk.bf16.vlgmr.msrb.gmra.mxu3 %vm72_vm0, %v7757_v5 }
 0xcee   :  { %5608 = vmatmul.msk.bf16.vlgmr.msra.gmra.mxu0 %vm72_vm0, %v7757_v5  ;;  %5609 = vmatmul.msk.bf16.vlgmr.msra.gmra.mxu1 %vm72_vm0, %v7757_v5 }
 0xcef   :  { %3560 = vmatpush.bf16.msrb.mxu2 %v3386_v18  ;;  %3573 = vmatpush.bf16.msrb.mxu3 %v3389_v24  ;;  %v6560_v18 = vld [vmem:[%s8256_s14 + $0x550] sm:$0xff]  ;;  %v6566_v24 = vld [vmem:[%s8256_s14 + $0x580] sm:$0xff] }
 0xcf0   :  { %3586 = vmatpush.bf16.msra.mxu0 %v3392_v25  ;;  %3599 = vmatpush.bf16.msra.mxu1 %v3395_v26  ;;  %v6574_v25 = vld [vmem:[%s8256_s14 + $0x5c0] sm:$0xff]  ;;  %v6551_v26 = vld [vmem:[%s8256_s14 + $0x508] sm:$0xff] }
 0xcfd   :  { %5610 = vmatmul.msk.bf16.vlgmr.msra.gmra.mxu2 %vm72_vm0, %v7757_v5  ;;  %5611 = vmatmul.msk.bf16.vlgmr.msra.gmra.mxu3 %vm72_vm0, %v7757_v5 }
 0xcfe   :  { %5612 = vmatmul.msk.bf16.vlgmr.msrb.gmra.mxu0 %vm72_vm0, %v7757_v5  ;;  %5613 = vmatmul.msk.bf16.vlgmr.msrb.gmra.mxu1 %vm72_vm0, %v7757_v5 }
 0xcff   :  { %4693 = vmatpush.bf16.msrb.mxu0 %v6541_v27  ;;  %4706 = vmatpush.bf16.msrb.mxu1 %v6549_v28  ;;  %v6559_v27 = vld [vmem:[%s8256_s14 + $0x548] sm:$0xff]  ;;  %v6550_v28 = vld [vmem:[%s8256_s14 + $0x500] sm:$0xff] }
 0xd00   :  { %4667 = vmatpush.bf16.msra.mxu2 %v6525_v29  ;;  %4680 = vmatpush.bf16.msra.mxu3 %v6533_v31  ;;  %v6558_v29 = vld [vmem:[%s8256_s14 + $0x540] sm:$0xff]  ;;  %v8000_v31 = vld [vmem:[%s8258_s13 + $0x10] sm:$0xff] }
 0xd03   :  { %4694 = vmatpush.bf16.msrb.mxu0 %v6540_v32  ;;  %4707 = vmatpush.bf16.msrb.mxu1 %v6548_v33  ;;  %v3268_v32 = vperm.slane %v8000_v31, 2  ;;  %v3269_v33 = vperm.slane %v8000_v31, 3 }
 0xd04   :  { %4668 = vmatpush.bf16.msra.mxu2 %v6524_v34  ;;  %4681 = vmatpush.bf16.msra.mxu3 %v6532_v35 }
 0xd07   :  { %4695 = vmatpush.bf16.msrb.mxu0 %v6539_v36  ;;  %4708 = vmatpush.bf16.msrb.mxu1 %v6547_v37 }
 0xd08   :  { %4669 = vmatpush.bf16.msra.mxu2 %v6523_v38  ;;  %4682 = vmatpush.bf16.msra.mxu3 %v6531_v39  ;;  %v3266_v38 = vperm.slane %v8000_v31, 0  ;;  %v3267_v39 = vperm.slane %v8000_v31, 1 }
 0xd0b   :  { %4696 = vmatpush.bf16.msrb.mxu0 %v6538_v50  ;;  %4709 = vmatpush.bf16.msrb.mxu1 %v6546_v40 }
 0xd0c   :  { %4670 = vmatpush.bf16.msra.mxu2 %v6522_v41  ;;  %4683 = vmatpush.bf16.msra.mxu3 %v6530_v4  ;;  %v6605_v41 = vld [vmem:[%s8256_s14 + $0x6b8] sm:$0xff] }
 0xd0d   :  { %5614 = vmatmul.msk.bf16.vlgmr.msrb.gmra.mxu2 %vm72_vm0, %v7757_v5  ;;  %5615 = vmatmul.msk.bf16.vlgmr.msrb.gmra.mxu3 %vm72_vm0, %v7757_v5  ;;  %v6613_v4 = vld [vmem:[%s8256_s14 + $0x6f8] sm:$0xff] }
 0xd0e   :  { %5616 = vmatmul.msk.bf16.vlgmr.msra.gmra.mxu0 %vm72_vm0, %v7757_v5  ;;  %5617 = vmatmul.msk.bf16.vlgmr.msra.gmra.mxu1 %vm72_vm0, %v7757_v5  ;;  %v6555_v5 = vld [vmem:[%s8256_s14 + $0x528] sm:$0xff] }
 0xd0f   :  { %4697 = vmatpush.bf16.msrb.mxu0 %v6537_v43  ;;  %4710 = vmatpush.bf16.msrb.mxu1 %v6545_v6 }
 0xd10   :  { %4671 = vmatpush.bf16.msra.mxu2 %v6521_v51  ;;  %4684 = vmatpush.bf16.msra.mxu3 %v6529_v44 }
 0xd13   :  { %4698 = vmatpush.bf16.msrb.mxu0 %v6536_v45  ;;  %4711 = vmatpush.bf16.msrb.mxu1 %v6544_v15 }
 0xd14   :  { %4672 = vmatpush.bf16.msra.mxu2 %v6520_v48  ;;  %4685 = vmatpush.bf16.msra.mxu3 %v6528_v49 }
 0xd17   :  { %4699 = vmatpush.bf16.msrb.mxu0 %v6535_v17  ;;  %4712 = vmatpush.bf16.msrb.mxu1 %v6543_v52 }
 0xd18   :  { %4673 = vmatpush.bf16.msra.mxu2 %v6519_v2  ;;  %4686 = vmatpush.bf16.msra.mxu3 %v6527_v54  ;;  %v6604_v2 = vld [vmem:[%s8256_s14 + $0x6b0] sm:$0xff] }
 0xd19   :  { %v6612_v54 = vld [vmem:[%s8256_s14 + $0x6f0] sm:$0xff] }
 0xd1b   :  { %4700 = vmatpush.bf16.msrb.mxu0 %v6534_v55  ;;  %4713 = vmatpush.bf16.msrb.mxu1 %v6542_v56 }
 0xd1c   :  { %4674 = vmatpush.bf16.msra.mxu2 %v6518_v57  ;;  %4687 = vmatpush.bf16.msra.mxu3 %v6526_v58  ;;  %v6603_v57 = vld [vmem:[%s8256_s14 + $0x6a8] sm:$0xff] }
 0xd1d   :  { %v6611_v58 = vld [vmem:[%s8256_s14 + $0x6e8] sm:$0xff] }
 0xd1f   :  { %4745 = vmatpush.bf16.msra.mxu0 %v6573_v47  ;;  %4758 = vmatpush.bf16.msra.mxu1 %v6581_v9  ;;  %v6589_v47 = vld [vmem:[%s8256_s14 + $0x638] sm:$0xff] }
 0xd20   :  { %4719 = vmatpush.bf16.msrb.mxu2 %v6557_v59  ;;  %4732 = vmatpush.bf16.msrb.mxu3 %v6565_v60  ;;  %v6597_v9 = vld [vmem:[%s8256_s14 + $0x678] sm:$0xff] }
 0xd23   :  { %4746 = vmatpush.bf16.msra.mxu0 %v6572_v61  ;;  %4759 = vmatpush.bf16.msra.mxu1 %v6580_v62  ;;  %v3272_v61 = vperm.slane %v8000_v31, 6  ;;  %v3273_v62 = vperm.slane %v8000_v31, 7 }
 0xd24   :  { %4720 = vmatpush.bf16.msrb.mxu2 %v6556_v63  ;;  %4733 = vmatpush.bf16.msrb.mxu3 %v6564_v0  ;;  %v6588_v63 = vld [vmem:[%s8256_s14 + $0x630] sm:$0xff] }
 0xd25   :  { %v6596_v0 = vld [vmem:[%s8256_s14 + $0x670] sm:$0xff] }
 0xd27   :  { %4747 = vmatpush.bf16.msra.mxu0 %v6571_v1  ;;  %4760 = vmatpush.bf16.msra.mxu1 %v6579_v3 }
 0xd28   :  { %4721 = vmatpush.bf16.msrb.mxu2 %v6555_v5  ;;  %4734 = vmatpush.bf16.msrb.mxu3 %v6563_v7  ;;  %v6602_v5 = vld [vmem:[%s8256_s14 + $0x6a0] sm:$0xff] }
 0xd29   :  { %v6610_v7 = vld [vmem:[%s8256_s14 + $0x6e0] sm:$0xff] }
 0xd2b   :  { %4748 = vmatpush.bf16.msra.mxu0 %v6570_v8  ;;  %4761 = vmatpush.bf16.msra.mxu1 %v6578_v10 }
 0xd2c   :  { %4722 = vmatpush.bf16.msrb.mxu2 %v6554_v11  ;;  %4735 = vmatpush.bf16.msrb.mxu3 %v6562_v12  ;;  %v6587_v11 = vld [vmem:[%s8256_s14 + $0x628] sm:$0xff] }
 0xd2d   :  { %v6595_v12 = vld [vmem:[%s8256_s14 + $0x668] sm:$0xff] }
 0xd2f   :  { %4749 = vmatpush.bf16.msra.mxu0 %v6569_v14  ;;  %4762 = vmatpush.bf16.msra.mxu1 %v6577_v16  ;;  %v3270_v14 = vperm.slane %v8000_v31, 4  ;;  %v3271_v16 = vperm.slane %v8000_v31, 5 }
 0xd30   :  { %4723 = vmatpush.bf16.msrb.mxu2 %v6553_v19  ;;  %4736 = vmatpush.bf16.msrb.mxu3 %v6561_v20  ;;  %v6601_v19 = vld [vmem:[%s8256_s14 + $0x698] sm:$0xff] }
 0xd31   :  { %v6609_v20 = vld [vmem:[%s8256_s14 + $0x6d8] sm:$0xff] }
 0xd33   :  { %4750 = vmatpush.bf16.msra.mxu0 %v6568_v30  ;;  %4763 = vmatpush.bf16.msra.mxu1 %v6576_v13 }
 0xd34   :  { %4724 = vmatpush.bf16.msrb.mxu2 %v6552_v23  ;;  %4737 = vmatpush.bf16.msrb.mxu3 %v6560_v18 }
 0xd37   :  { %4751 = vmatpush.bf16.msra.mxu0 %v6567_v21  ;;  %4764 = vmatpush.bf16.msra.mxu1 %v6575_v22 }
 0xd38   :  { %4725 = vmatpush.bf16.msrb.mxu2 %v6551_v26  ;;  %4738 = vmatpush.bf16.msrb.mxu3 %v6559_v27  ;;  %v6586_v26 = vld [vmem:[%s8256_s14 + $0x620] sm:$0xff] }
 0xd39   :  { %v6594_v27 = vld [vmem:[%s8256_s14 + $0x660] sm:$0xff] }
 0xd3b   :  { %4752 = vmatpush.bf16.msra.mxu0 %v6566_v24  ;;  %4765 = vmatpush.bf16.msra.mxu1 %v6574_v25 }
 0xd3c   :  { %4726 = vmatpush.bf16.msrb.mxu2 %v6550_v28  ;;  %4739 = vmatpush.bf16.msrb.mxu3 %v6558_v29 }
 0xd5b   :  { %v3432_v34 = vpop.f32.mrf.mxu0  ;;  %v3445_v35 = vpop.f32.mrf.mxu1 }
 0xd5c   :  { %v3433_v36 = vadd.f32 %v3432_v34, %v3268_v32  ;;  %v3446_v37 = vadd.f32 %v3445_v35, %v3269_v33  ;;  %v6600_v33 = vld [vmem:[%s8256_s14 + $0x690] sm:$0xff] }
 0xd5d   :  { %v6608_v34 = vld [vmem:[%s8256_s14 + $0x6d0] sm:$0xff] }
 0xd5e   :  { %v3607_v50 = vmax.f32 %v3433_v36, 0.0  ;;  %v3608_v40 = vmax.f32 %v3446_v37, 0.0  ;;  %v6585_v37 = vld [vmem:[%s8256_s14 + $0x618] sm:$0xff] }
 0xd60   :  { %v3623_v43 = vpack.c.bf16 %v3607_v50, %v3607_v50  ;;  %v3624_v6 = vpack.c.bf16 %v3608_v40, %v3608_v40  ;;  %v3406_v51 = vpop.f32.mrf.mxu2  ;;  %v3419_v44 = vpop.f32.mrf.mxu3  ;;  %v6599_v50 = vld [vmem:[%s8256_s14 + $0x688] sm:$0xff] }
 0xd61   :  { %v3407_v45 = vadd.f32 %v3406_v51, %v3266_v38  ;;  %v3420_v15 = vadd.f32 %v3419_v44, %v3267_v39  ;;  %v6593_v38 = vld [vmem:[%s8256_s14 + $0x658] sm:$0xff]  ;;  %v6607_v40 = vld [vmem:[%s8256_s14 + $0x6c8] sm:$0xff]  ;;  %v6584_v51 = vld [vmem:[%s8256_s14 + $0x610] sm:$0xff] }
 0xd62   :  { %4701 = vmatmul.bf16.vlgmr.msrb.gmra.mxu0 %v3623_v43  ;;  %4714 = vmatmul.bf16.vlgmr.msrb.gmra.mxu1 %v3624_v6  ;;  %v8079_v39 = vld [vmem:[%s8258_s13 + $0x18] sm:$0xff]  ;;  %v6592_v44 = vld [vmem:[%s8256_s14 + $0x650] sm:$0xff] }
 0xd63   :  { %v3605_v48 = vmax.f32 %v3407_v45, 0.0  ;;  %v3606_v49 = vmax.f32 %v3420_v15, 0.0  ;;  %4797 = vmatpush.bf16.msrb.mxu0 %v6605_v41  ;;  %4810 = vmatpush.bf16.msrb.mxu1 %v6613_v4  ;;  %v3434_v17 = vpop.f32.mrf.mxu0  ;;  %v3447_v52 = vpop.f32.mrf.mxu1  ;;  %v3276_v43 = vperm.slane %v8079_v39, 2  ;;  %v3277_v6 = vperm.slane %v8079_v39, 3 }
 0xd65   :  { %v3621_v55 = vpack.c.bf16 %v3605_v48, %v3605_v48  ;;  %v3622_v56 = vpack.c.bf16 %v3606_v49, %v3606_v49  ;;  %v6598_v48 = vld [vmem:[%s8256_s14 + $0x680] sm:$0xff] }
 0xd66   :  { %v6606_v49 = vld [vmem:[%s8256_s14 + $0x6c0] sm:$0xff] }
 0xd67   :  { %4798 = vmatpush.bf16.msrb.mxu0 %v6604_v2  ;;  %4811 = vmatpush.bf16.msrb.mxu1 %v6612_v54  ;;  %v6637_v2 = vld [vmem:[%s8256_s14 + $0x7b8] sm:$0xff] }
 0xd68   :  { %4675 = vmatmul.bf16.vlgmr.msra.gmra.mxu2 %v3621_v55  ;;  %4688 = vmatmul.bf16.vlgmr.msra.gmra.mxu3 %v3622_v56  ;;  %v3408_v59 = vpop.f32.mrf.mxu2  ;;  %v3421_v60 = vpop.f32.mrf.mxu3  ;;  %v6645_v54 = vld [vmem:[%s8256_s14 + $0x7f8] sm:$0xff]  ;;  %v6583_v55 = vld [vmem:[%s8256_s14 + $0x608] sm:$0xff] }
 0xd69   :  { %4771 = vmatpush.bf16.msra.mxu2 %v6589_v47  ;;  %4784 = vmatpush.bf16.msra.mxu3 %v6597_v9  ;;  %v6591_v56 = vld [vmem:[%s8256_s14 + $0x648] sm:$0xff]  ;;  %v3274_v47 = vperm.slane %v8079_v39, 0  ;;  %v3275_v9 = vperm.slane %v8079_v39, 1 }
 0xd6b   :  { %4799 = vmatpush.bf16.msrb.mxu0 %v6603_v57  ;;  %4812 = vmatpush.bf16.msrb.mxu1 %v6611_v58  ;;  %v3484_v1 = vpop.f32.mrf.mxu0  ;;  %v3497_v3 = vpop.f32.mrf.mxu1 }
 0xd6c   :  { %v3485_v8 = vadd.f32 %v3484_v1, %v3272_v61  ;;  %v3498_v10 = vadd.f32 %v3497_v3, %v3273_v62 }
 0xd6d   :  { %4772 = vmatpush.bf16.msra.mxu2 %v6588_v63  ;;  %4785 = vmatpush.bf16.msra.mxu3 %v6596_v0  ;;  %v6636_v63 = vld [vmem:[%s8256_s14 + $0x7b0] sm:$0xff] }
 0xd6e   :  { %v3611_v30 = vmax.f32 %v3485_v8, 0.0  ;;  %v3612_v13 = vmax.f32 %v3498_v10, 0.0  ;;  %v6644_v0 = vld [vmem:[%s8256_s14 + $0x7f0] sm:$0xff]  ;;  %v6621_v8 = vld [vmem:[%s8256_s14 + $0x738] sm:$0xff] }
 0xd6f   :  { %4800 = vmatpush.bf16.msrb.mxu0 %v6602_v5  ;;  %4813 = vmatpush.bf16.msrb.mxu1 %v6610_v7  ;;  %v6582_v5 = vld [vmem:[%s8256_s14 + $0x600] sm:$0xff]  ;;  %v6629_v10 = vld [vmem:[%s8256_s14 + $0x778] sm:$0xff] }
 0xd70   :  { %v3627_v21 = vpack.c.bf16 %v3611_v30, %v3611_v30  ;;  %v3628_v22 = vpack.c.bf16 %v3612_v13, %v3612_v13  ;;  %v3458_v23 = vpop.f32.mrf.mxu2  ;;  %v3471_v18 = vpop.f32.mrf.mxu3  ;;  %v6590_v7 = vld [vmem:[%s8256_s14 + $0x640] sm:$0xff]  ;;  %v6635_v30 = vld [vmem:[%s8256_s14 + $0x7a8] sm:$0xff] }
 0xd71   :  { %4773 = vmatpush.bf16.msra.mxu2 %v6587_v11  ;;  %4786 = vmatpush.bf16.msra.mxu3 %v6595_v12  ;;  %v3459_v24 = vadd.f32 %v3458_v23, %v3270_v14  ;;  %v3472_v25 = vadd.f32 %v3471_v18, %v3271_v16  ;;  %v6643_v13 = vld [vmem:[%s8256_s14 + $0x7e8] sm:$0xff] }
 0xd72   :  { %4753 = vmatmul.bf16.vlgmr.msra.gmra.mxu0 %v3627_v21  ;;  %4766 = vmatmul.bf16.vlgmr.msra.gmra.mxu1 %v3628_v22  ;;  %v6620_v21 = vld [vmem:[%s8256_s14 + $0x730] sm:$0xff] }
 0xd73   :  { %v3609_v28 = vmax.f32 %v3459_v24, 0.0  ;;  %v3610_v29 = vmax.f32 %v3472_v25, 0.0  ;;  %4801 = vmatpush.bf16.msrb.mxu0 %v6601_v19  ;;  %4814 = vmatpush.bf16.msrb.mxu1 %v6609_v20  ;;  %v3486_v31 = vpop.f32.mrf.mxu0  ;;  %v3499_v32 = vpop.f32.mrf.mxu1  ;;  %v6628_v22 = vld [vmem:[%s8256_s14 + $0x770] sm:$0xff]  ;;  %v6634_v24 = vld [vmem:[%s8256_s14 + $0x7a0] sm:$0xff] }
 0xd74   :  { %v6642_v25 = vld [vmem:[%s8256_s14 + $0x7e0] sm:$0xff]  ;;  %v6633_v31 = vld [vmem:[%s8256_s14 + $0x798] sm:$0xff] }
 0xd75   :  { %v3625_v35 = vpack.c.bf16 %v3609_v28, %v3609_v28  ;;  %v3626_v36 = vpack.c.bf16 %v3610_v29, %v3610_v29  ;;  %4774 = vmatpush.bf16.msra.mxu2 %v6586_v26  ;;  %4787 = vmatpush.bf16.msra.mxu3 %v6594_v27  ;;  %v6619_v26 = vld [vmem:[%s8256_s14 + $0x728] sm:$0xff]  ;;  %v6641_v32 = vld [vmem:[%s8256_s14 + $0x7d8] sm:$0xff] }
 0xd76   :  { %v6627_v27 = vld [vmem:[%s8256_s14 + $0x768] sm:$0xff] }
 0xd77   :  { %4802 = vmatpush.bf16.msrb.mxu0 %v6600_v33  ;;  %4815 = vmatpush.bf16.msrb.mxu1 %v6608_v34  ;;  %v6618_v33 = vld [vmem:[%s8256_s14 + $0x720] sm:$0xff] }
 0xd78   :  { %4727 = vmatmul.bf16.vlgmr.msrb.gmra.mxu2 %v3625_v35  ;;  %4740 = vmatmul.bf16.vlgmr.msrb.gmra.mxu3 %v3626_v36  ;;  %v3460_v41 = vpop.f32.mrf.mxu2  ;;  %v3473_v4 = vpop.f32.mrf.mxu3  ;;  %v6626_v34 = vld [vmem:[%s8256_s14 + $0x760] sm:$0xff] }
 0xd79   :  { %4775 = vmatpush.bf16.msra.mxu2 %v6585_v37  ;;  %4788 = vmatpush.bf16.msra.mxu3 %v6593_v38  ;;  %v6632_v37 = vld [vmem:[%s8256_s14 + $0x790] sm:$0xff]  ;;  %v6617_v41 = vld [vmem:[%s8256_s14 + $0x718] sm:$0xff] }
 0xd7a   :  { %v6640_v38 = vld [vmem:[%s8256_s14 + $0x7d0] sm:$0xff]  ;;  %v6625_v4 = vld [vmem:[%s8256_s14 + $0x758] sm:$0xff] }
 0xd7b   :  { %4803 = vmatpush.bf16.msrb.mxu0 %v6599_v50  ;;  %4816 = vmatpush.bf16.msrb.mxu1 %v6607_v40  ;;  %v3536_v45 = vpop.f32.mrf.mxu0  ;;  %v3549_v15 = vpop.f32.mrf.mxu1  ;;  %v3280_v50 = vperm.slane %v8079_v39, 6  ;;  %v3281_v40 = vperm.slane %v8079_v39, 7 }
 0xd7c   :  { %v3537_v17 = vadd.f32 %v3536_v45, %v3276_v43  ;;  %v3550_v52 = vadd.f32 %v3549_v15, %v3277_v6 }
 0xd7d   :  { %4776 = vmatpush.bf16.msra.mxu2 %v6584_v51  ;;  %4789 = vmatpush.bf16.msra.mxu3 %v6592_v44  ;;  %v6631_v51 = vld [vmem:[%s8256_s14 + $0x788] sm:$0xff] }
 0xd7e   :  { %v3615_v57 = vmax.f32 %v3537_v17, 0.0  ;;  %v3616_v58 = vmax.f32 %v3550_v52, 0.0  ;;  %v6639_v44 = vld [vmem:[%s8256_s14 + $0x7c8] sm:$0xff]  ;;  %v3278_v17 = vperm.slane %v8079_v39, 4  ;;  %v3279_v52 = vperm.slane %v8079_v39, 5 }
 0xd7f   :  { %4804 = vmatpush.bf16.msrb.mxu0 %v6598_v48  ;;  %4817 = vmatpush.bf16.msrb.mxu1 %v6606_v49  ;;  %v6616_v48 = vld [vmem:[%s8256_s14 + $0x710] sm:$0xff]  ;;  %v6615_v39 = vld [vmem:[%s8256_s14 + $0x708] sm:$0xff] }
 0xd80   :  { %v3631_v59 = vpack.c.bf16 %v3615_v57, %v3615_v57  ;;  %v3632_v60 = vpack.c.bf16 %v3616_v58, %v3616_v58  ;;  %v3510_v61 = vpop.f32.mrf.mxu2  ;;  %v3523_v62 = vpop.f32.mrf.mxu3  ;;  %v6624_v49 = vld [vmem:[%s8256_s14 + $0x750] sm:$0xff]  ;;  %v6623_v57 = vld [vmem:[%s8256_s14 + $0x748] sm:$0xff] }
 0xd81   :  { %4777 = vmatpush.bf16.msra.mxu2 %v6583_v55  ;;  %4790 = vmatpush.bf16.msra.mxu3 %v6591_v56  ;;  %v3511_v1 = vadd.f32 %v3510_v61, %v3274_v47  ;;  %v3524_v3 = vadd.f32 %v3523_v62, %v3275_v9  ;;  %v6630_v55 = vld [vmem:[%s8256_s14 + $0x780] sm:$0xff] }
 0xd82   :  { %4805 = vmatmul.bf16.vlgmr.msrb.gmra.mxu0 %v3631_v59  ;;  %4818 = vmatmul.bf16.vlgmr.msrb.gmra.mxu1 %v3632_v60  ;;  %v6638_v56 = vld [vmem:[%s8256_s14 + $0x7c0] sm:$0xff] }
 0xd83   :  { %4849 = vmatpush.bf16.msra.mxu0 %v6637_v2  ;;  %4862 = vmatpush.bf16.msra.mxu1 %v6645_v54  ;;  %v3613_v11 = vmax.f32 %v3511_v1, 0.0  ;;  %v3614_v12 = vmax.f32 %v3524_v3, 0.0  ;;  %v3538_v14 = vpop.f32.mrf.mxu0  ;;  %v3551_v16 = vpop.f32.mrf.mxu1  ;;  %v6614_v62 = vld [vmem:[%s8256_s14 + $0x700] sm:$0xff] }
 0xd85   :  { %v3629_v19 = vpack.c.bf16 %v3613_v11, %v3613_v11  ;;  %v3630_v20 = vpack.c.bf16 %v3614_v12, %v3614_v12  ;;  %4778 = vmatpush.bf16.msra.mxu2 %v6582_v5  ;;  %4791 = vmatpush.bf16.msra.mxu3 %v6590_v7 }
 0xd87   :  { %4850 = vmatpush.bf16.msra.mxu0 %v6636_v63  ;;  %4863 = vmatpush.bf16.msra.mxu1 %v6644_v0  ;;  %v6622_v63 = vld [vmem:[%s8256_s14 + $0x740] sm:$0xff] }
 0xd88   :  { %v3512_v23 = vpop.f32.mrf.mxu2  ;;  %v3525_v18 = vpop.f32.mrf.mxu3  ;;  %4779 = vmatmul.bf16.vlgmr.msra.gmra.mxu2 %v3629_v19  ;;  %4792 = vmatmul.bf16.vlgmr.msra.gmra.mxu3 %v3630_v20 }
 0xd89   :  { %4823 = vmatpush.bf16.msrb.mxu2 %v6621_v8  ;;  %4836 = vmatpush.bf16.msrb.mxu3 %v6629_v10 }
 0xd8b   :  { %4851 = vmatpush.bf16.msra.mxu0 %v6635_v30  ;;  %4864 = vmatpush.bf16.msra.mxu1 %v6643_v13  ;;  %v3588_v28 = vpop.f32.mrf.mxu0  ;;  %v3601_v29 = vpop.f32.mrf.mxu1 }
 0xd8c   :  { %v3589_v45 = vadd.f32 %v3588_v28, %v3280_v50  ;;  %v3602_v15 = vadd.f32 %v3601_v29, %v3281_v40 }
 0xd8d   :  { %4824 = vmatpush.bf16.msrb.mxu2 %v6620_v21  ;;  %4837 = vmatpush.bf16.msrb.mxu3 %v6628_v22  ;;  %v6700_v22 = vld [vmem:[%s8283_s1 + $0x1] ss:$0 sm:$0xff] }
 0xd8e   :  { %v3619_v47 = vmax.f32 %v3589_v45, 0.0  ;;  %v3620_v9 = vmax.f32 %v3602_v15, 0.0 }
 0xd8f   :  { %4852 = vmatpush.bf16.msra.mxu0 %v6634_v24  ;;  %4865 = vmatpush.bf16.msra.mxu1 %v6642_v25 }
 0xd90   :  { %v3562_v35 = vpop.f32.mrf.mxu2  ;;  %v3575_v36 = vpop.f32.mrf.mxu3  ;;  %v3635_v60 = vpack.c.bf16 %v3619_v47, %v3619_v47  ;;  %v3636_v61 = vpack.c.bf16 %v3620_v9, %v3620_v9 }
 0xd91   :  { %4825 = vmatpush.bf16.msrb.mxu2 %v6619_v26  ;;  %4838 = vmatpush.bf16.msrb.mxu3 %v6627_v27  ;;  %v3563_v58 = vadd.f32 %v3562_v35, %v3278_v17  ;;  %v3576_v59 = vadd.f32 %v3575_v36, %v3279_v52 }
 0xd93   :  { %4853 = vmatpush.bf16.msra.mxu0 %v6633_v31  ;;  %4866 = vmatpush.bf16.msra.mxu1 %v6641_v32  ;;  %v3590_v43 = vpop.f32.mrf.mxu0  ;;  %v3603_v6 = vpop.f32.mrf.mxu1  ;;  %v3617_v0 = vmax.f32 %v3563_v58, 0.0  ;;  %v3618_v1 = vmax.f32 %v3576_v59, 0.0 }
 0xd95   :  { %4826 = vmatpush.bf16.msrb.mxu2 %v6618_v33  ;;  %4839 = vmatpush.bf16.msrb.mxu3 %v6626_v34  ;;  %v3633_v3 = vpack.c.bf16 %v3617_v0, %v3617_v0  ;;  %v3634_v5 = vpack.c.bf16 %v3618_v1, %v3618_v1 }
 0xd97   :  { %4854 = vmatpush.bf16.msra.mxu0 %v6632_v37  ;;  %4867 = vmatpush.bf16.msra.mxu1 %v6640_v38 }
 0xd98   :  { %v3564_v2 = vpop.f32.mrf.mxu2  ;;  %v3577_v54 = vpop.f32.mrf.mxu3 }
 0xd99   :  { %4827 = vmatpush.bf16.msrb.mxu2 %v6617_v41  ;;  %4840 = vmatpush.bf16.msrb.mxu3 %v6625_v4 }
 0xd9b   :  { %4855 = vmatpush.bf16.msra.mxu0 %v6631_v51  ;;  %4868 = vmatpush.bf16.msra.mxu1 %v6639_v44 }
 0xd9d   :  { %4828 = vmatpush.bf16.msrb.mxu2 %v6616_v48  ;;  %4841 = vmatpush.bf16.msrb.mxu3 %v6624_v49 }
 0xd9f   :  { %4856 = vmatpush.bf16.msra.mxu0 %v6630_v55  ;;  %4869 = vmatpush.bf16.msra.mxu1 %v6638_v56 }
 0xda1   :  { %4829 = vmatpush.bf16.msrb.mxu2 %v6615_v39  ;;  %4842 = vmatpush.bf16.msrb.mxu3 %v6623_v57 }
 0xda2   :  { %4857 = vmatmul.bf16.vlgmr.msra.gmra.mxu0 %v3635_v60  ;;  %4870 = vmatmul.bf16.vlgmr.msra.gmra.mxu1 %v3636_v61 }
 0xda5   :  { %4830 = vmatpush.bf16.msrb.mxu2 %v6614_v62  ;;  %4843 = vmatpush.bf16.msrb.mxu3 %v6622_v63 }
 0xda8   :  { %4831 = vmatmul.bf16.vlgmr.msrb.gmra.mxu2 %v3633_v3  ;;  %4844 = vmatmul.bf16.vlgmr.msrb.gmra.mxu3 %v3634_v5 }
 0xddf   :  { %v4702_v7 = vpop.f32.mrf.mxu0  ;;  %v4715_v8 = vpop.f32.mrf.mxu1 }
 0xde7   :  { %v4704_v10 = vpop.f32.mrf.mxu0  ;;  %v4717_v11 = vpop.f32.mrf.mxu1 }
 0xdeb   :  { %v4676_v12 = vpop.f32.mrf.mxu2  ;;  %v4689_v14 = vpop.f32.mrf.mxu3 }
 0xdec   :  { %v4677_v24 = vadd.f32 %v6700_v22, %v4676_v12 }
 0xdee   :  { %v4690_v27 = vadd.f32 %v4689_v14, %v4677_v24 }
 0xdef   :  { %v4754_v16 = vpop.f32.mrf.mxu0  ;;  %v4767_v30 = vpop.f32.mrf.mxu1 }
 0xdf0   :  { %v4703_v31 = vadd.f32 %v4702_v7, %v4690_v27 }
 0xdf2   :  { %v4716_v34 = vadd.f32 %v4715_v8, %v4703_v31 }
 0xdf3   :  { %v4678_v13 = vpop.f32.mrf.mxu2  ;;  %v4691_v19 = vpop.f32.mrf.mxu3 }
 0xdf7   :  { %v4756_v20 = vpop.f32.mrf.mxu0  ;;  %v4769_v21 = vpop.f32.mrf.mxu1 }
 0xdf8   :  { %v23_v21 = vstv %s8262_s17 }
 0xdf9   :  { %24 = vst [vmem:[#allocation2] sm:$0x1] %v23_v21 }
 0xdfb   :  { %v4728_v23 = vpop.f32.mrf.mxu2  ;;  %v4741_v18 = vpop.f32.mrf.mxu3 }
 0xdfc   :  { %v4729_v37 = vadd.f32 %v4728_v23, %v4716_v34  ;;  %v6701_v34 = vld [vmem:[%s8259_s10 + $0x1] ss:$0 sm:$0xff] }
 0xdfe   :  { %v4742_v38 = vadd.f32 %v4741_v18, %v4729_v37 }
 0xdff   :  { %v4806_v25 = vpop.f32.mrf.mxu0  ;;  %v4819_v26 = vpop.f32.mrf.mxu1 }
 0xe00   :  { %v4755_v41 = vadd.f32 %v4754_v16, %v4742_v38 }
 0xe02   :  { %v4768_v4 = vadd.f32 %v4767_v30, %v4755_v41  ;;  %v4960_v30 = vld [vmem:[%s8261_s16] sm:$0xff] }
 0xe03   :  { %v4730_v28 = vpop.f32.mrf.mxu2  ;;  %v4743_v29 = vpop.f32.mrf.mxu3  ;;  %4987 = vmatpush.msra.mxu2 %v4960_v30 }
 0xe07   :  { %v4808_v32 = vpop.f32.mrf.mxu0  ;;  %v4821_v33 = vpop.f32.mrf.mxu1 }
 0xe0b   :  { %v4780_v35 = vpop.f32.mrf.mxu2  ;;  %v4793_v36 = vpop.f32.mrf.mxu3 }
 0xe0c   :  { %v4781_v43 = vadd.f32 %v4780_v35, %v4768_v4 }
 0xe0e   :  { %v4794_v44 = vadd.f32 %v4793_v36, %v4781_v43 }
 0xe10   :  { %v4807_v45 = vadd.f32 %v4806_v25, %v4794_v44 }
 0xe12   :  { %v4820_v49 = vadd.f32 %v4819_v26, %v4807_v45 }
 0xe13   :  { %v4782_v50 = vpop.f32.mrf.mxu2  ;;  %v4795_v40 = vpop.f32.mrf.mxu3 }
 0xe14   :  { %v6702_v40 = vld [vmem:[%s8260_s11 + $0x1] ss:$0 sm:$0xff] }
 0xe1f   :  { %v4858_v6 = vpop.f32.mrf.mxu0  ;;  %v4871_v51 = vpop.f32.mrf.mxu1 }
 0xe27   :  { %v4860_v15 = vpop.f32.mrf.mxu0  ;;  %v4873_v48 = vpop.f32.mrf.mxu1 }
 0xe28   :  { %v6703_v15 = vld [vmem:[#allocation2] ss:$0 sm:$0xff] }
 0xe2b   :  { %v4832_v17 = vpop.f32.mrf.mxu2  ;;  %v4845_v52 = vpop.f32.mrf.mxu3 }
 0xe2c   :  { %v4833_v2 = vadd.f32 %v4832_v17, %v4820_v49 }
 0xe2e   :  { %v4846_v54 = vadd.f32 %v4845_v52, %v4833_v2 }
 0xe30   :  { %v4859_v55 = vadd.f32 %v4858_v6, %v4846_v54 }
 0xe32   :  { %v4872_v56 = vadd.f32 %v4871_v51, %v4859_v55 }
 0xe33   :  { %v4834_v47 = vpop.f32.mrf.mxu2  ;;  %v4847_v9 = vpop.f32.mrf.mxu3 }
 0xe34   :  { %v4876_v39 = vrot.slane %v4872_v56, 1  ;;  %v4877_v57 = vrot.slane %v4872_v56, 2 }
 0xe36   :  { %v4880_v58 = vadd.f32 %v4876_v39, %v7741_v46  ;;  %v4881_v59 = vadd.f32 %v4877_v57, %v7749_v53 }
 0xe38   :  { %v4891_v60 = vsel %vm3180_vm9, %v4880_v58, 0.0  ;;  %v4888_v61 = vrot.slane %v4881_v59, 7 }
 0xe39   :  { %4892 = vadd.xlane.f32.xlu0 %v4891_v60 }
 0xe3a   :  { %v4894_v62 = vsel %vm2628_vm8, %v4888_v61, 0.0 }
 0xe3b   :  { %4895 = vadd.xlane.f32.xlu1 %v4894_v62 }
 0xeac   :  { %v4893_v63 = vpop.xlane.xlu0 %4892 }
 0xead   :  { %v4897_v0 = vmul.f32 %v4893_v63, %v7038_v42 }
 0xeae   :  { %v4896_v1 = vpop.xlane.xlu1 %4895 }
 0xeaf   :  { %v4904_v3 = vsub.f32 %v4880_v58, %v4897_v0  ;;  %v4898_v5 = vmul.f32 %v4896_v1, %v7038_v42 }
 0xeb1   :  { %v4901_v7 = vrot.slane %v4898_v5, 1  ;;  %v4906_v8 = vmul.f32 %v4904_v3, %v4904_v3 }
 0xeb3   :  { %v4905_v10 = vsub.f32 %v4881_v59, %v4901_v7  ;;  %v4913_v46 = vsel %vm3180_vm9, %v4906_v8, 0.0 }
 0xeb4   :  { %4914 = vadd.xlane.f32.xlu1 %v4913_v46 }
 0xeb5   :  { %v4907_v53 = vmul.f32 %v4905_v10, %v4905_v10 }
 0xeb7   :  { %v4910_v11 = vrot.slane %v4907_v53, 7 }
 0xeb9   :  { %v4916_v12 = vsel %vm2628_vm8, %v4910_v11, 0.0  ;;  %vm4992_vm8 = vcmask 1024  }
 0xeba   :  { %4917 = vadd.xlane.f32.xlu2 %v4916_v12 }
 0xf27   :  { %v4915_v14 = vpop.xlane.xlu1 %4914 }
 0xf28   :  { %v4919_v16 = vmul.f32 %v4915_v14, %v7038_v42 }
 0xf2a   :  { %v4921_v13 = vadd.f32 1e-05, %v4919_v16 }
 0xf2c   :  { %6782 = vrsqrt.f32 %v4921_v13  ;;  %vm4929_vm13 = vweird.f32 %v4921_v13 }
 0xf2d   :  { %v4918_v19 = vpop.xlane.xlu2 %4917 }
 0xf2e   :  { %v4920_v20 = vmul.f32 %v4918_v19, %v7038_v42 }
 0xf30   :  { %v4922_v22 = vadd.f32 1e-05, %v4920_v20 }
 0xf32   :  { %v6783_v23 = vpop.eup %6782  ;;  %6784 = vrsqrt.f32 %v4922_v22  ;;  %vm4939_vm4 = vweird.f32 %v4922_v22 }
 0xf33   :  { %v4924_v18 = vmul.f32 %v6783_v23, %v4921_v13  ;;  %vm4930_vm5 = vweird.f32 %v6783_v23 }
 0xf34   :  { %vm4931_vm14 = vmor %vm4929_vm13, %vm4930_vm5 }
 0xf35   :  { %v4925_v24 = vmul.f32 %v6783_v23, %v4924_v18 }
 0xf37   :  { %v4926_v25 = vmul.f32 0.5, %v4925_v24 }
 0xf38   :  { %v6785_v26 = vpop.eup %6784 }
 0xf39   :  { %v4927_v27 = vsub.f32 1.5, %v4926_v25  ;;  %v4934_v28 = vmul.f32 %v6785_v26, %v4922_v22  ;;  %vm4940_vm15 = vweird.f32 %v6785_v26 }
 0xf3a   :  { %vm4941_vm6 = vmor %vm4939_vm4, %vm4940_vm15 }
 0xf3b   :  { %v4928_v29 = vmul.f32 %v6783_v23, %v4927_v27  ;;  %v4935_v31 = vmul.f32 %v6785_v26, %v4934_v28 }
 0xf3d   :  { %v4932_v42 = vsel %vm4931_vm14, %v6783_v23, %v4928_v29  ;;  %v4936_v32 = vmul.f32 0.5, %v4935_v31 }
 0xf3e   :  { %v4948_v35 = vmul.f32 %v4932_v42, %v4904_v3 }
 0xf3f   :  { %v4937_v33 = vsub.f32 1.5, %v4936_v32 }
 0xf40   :  { %v4953_v38 = vmul.f32 %v6701_v34, %v4948_v35 }
 0xf41   :  { %v4938_v36 = vmul.f32 %v6785_v26, %v4937_v33 }
 0xf42   :  { %v4958_v43 = vadd.f32 %v6702_v40, %v4953_v38 }
 0xf43   :  { %v4942_v37 = vsel %vm4941_vm6, %v6785_v26, %v4938_v36 }
 0xf44   :  { %v4945_v50 = vrot.slane %v4942_v37, 1  ;;  %v4967_v51 = vrot.slane %v4958_v43, 7 }
 0xf46   :  { %v4949_v41 = vmul.f32 %v4945_v50, %v4905_v10 }
 0xf48   :  { %v4954_v4 = vmul.f32 %v6701_v34, %v4949_v41 }
 0xf4a   :  { %v4959_v6 = vadd.f32 %v6702_v40, %v4954_v4 }
 0xf4c   :  { %v4968_v44 = vrot.slane %v4959_v6, 6 }
 0xf4e   :  { %v4969_v45 = vsel %vm2550_vm7, %v4968_v44, %v4967_v51 }
 0xf4f   :  { %6389 = vmatmul.msk.f32.vlgmr.msra.gmra.mxu2 %vm72_vm0, %v4969_v45 }
 0xfd2   :  { %v4989_v48 = vpop.f32.mrf.mxu2 }
 0xfd3   :  { %v4990_v49 = vadd.f32 %v6703_v15, %v4989_v48 }
 0xfd5   :  { %4993 = vst.msk [vmem:[%s8263_s18] sm:$0x3] %vm4992_vm8, %v4990_v49 }

</bundles_post_ra>
